<compile_context>
chip_gen: v7x
topology: tpu7x:2x2x1
jax: 0.10.0
libtpu: 0.0.40
codegen_flags: <defaults>
</compile_context>

<pallas_src>
import jax
import jax.numpy as jnp
from jax import lax
from jax.experimental import pallas as pl
from jax.experimental.pallas import tpu as pltpu

# ---------------- model dims (from the PyTorch module) ----------------
INPUT_SIZE = 2
HIDDEN_SIZE = 4
OUTPUT_SIZE = 1
NUM_LAYERS = 2

# ---------------- padded dims for TPU ----------------
B_PAD = 8            # sublane
F_PAD = 128          # lane padding for input / hidden / output features
G_PAD = 4 * F_PAD    # i, f, g, o gate blocks, each in its own 128-wide slot


def _cell_update(gates, c):
    """LSTM elementwise cell update. gates: (B_PAD, G_PAD), c: (B_PAD, F_PAD)."""
    i = jax.nn.sigmoid(gates[:, 0 * F_PAD:1 * F_PAD])
    f = jax.nn.sigmoid(gates[:, 1 * F_PAD:2 * F_PAD])
    g = jnp.tanh(gates[:, 2 * F_PAD:3 * F_PAD])
    o = jax.nn.sigmoid(gates[:, 3 * F_PAD:4 * F_PAD])
    c_new = f * c + i * g
    h_new = o * jnp.tanh(c_new)
    return h_new, c_new


def lstm_kernel(x_ref, wih1_ref, b1_ref, whh1_ref, w2_ref, b2_ref,
                wlin_ref, blin_ref,
                out_ref,
                pre1_ref, h2seq_ref):
    seq = x_ref.shape[0]

    # ---- (hoist) layer-1 input projection for ALL timesteps: one big matmul.
    x2d = x_ref[...].reshape(seq * B_PAD, F_PAD)
    pre1 = (jnp.dot(x2d, wih1_ref[...], preferred_element_type=jnp.float32)
            + b1_ref[...])
    pre1_ref[...] = pre1.reshape(seq, B_PAD, G_PAD)

    # ---- whole recurrence inside a single invocation; only recurrent work
    # ---- (h @ W_hh, fused layer-2 matmul, cell updates) on the serial path.
    def step(t, carry):
        h1, c1, h2, c2 = carry

        gates1 = pre1_ref[t] + jnp.dot(h1, whh1_ref[...],
                                       preferred_element_type=jnp.float32)
        h1, c1 = _cell_update(gates1, c1)

        # Fused layer-2 input + recurrent matmul: [h1 | h2] @ [W_ih_l1 ; W_hh_l1]
        xh = jnp.concatenate([h1, h2], axis=-1)               # (B_PAD, 2*F_PAD)
        gates2 = (jnp.dot(xh, w2_ref[...], preferred_element_type=jnp.float32)
                  + b2_ref[...])
        h2, c2 = _cell_update(gates2, c2)

        h2seq_ref[t] = h2
        return (h1, c1, h2, c2)

    z = jnp.zeros((B_PAD, F_PAD), jnp.float32)
    # seq is small here; unroll gives the LLO scheduler full visibility.
    lax.fori_loop(0, seq, step, (z, z, z, z), unroll=True)

    # ---- (hoist) final Linear over the whole h2 sequence; one bulk,
    # ---- lane-dense (128) store of the output.
    h2all = h2seq_ref[...].reshape(seq * B_PAD, F_PAD)
    out = (jnp.dot(h2all, wlin_ref[...], preferred_element_type=jnp.float32)
           + blin_ref[...])
    out_ref[...] = out.reshape(seq, B_PAD, F_PAD)


# ---------------- weight packing helpers (plain-JAX glue) ----------------
def _pack_gate_matrix(w_t, n_rows):
    """w_t: (in_dim, 4H) transposed PyTorch gate matrix -> (n_rows, G_PAD).

    PyTorch gate order along the 4*H axis is [i, f, g, o]; each H-wide gate
    block goes into its own 128-wide lane slot so the kernel slices at
    128-aligned boundaries.
    """
    in_dim = w_t.shape[0]
    out = jnp.zeros((n_rows, G_PAD), jnp.float32)
    for g in range(4):
        out = out.at[:in_dim, g * F_PAD:g * F_PAD + HIDDEN_SIZE].set(
            w_t[:, g * HIDDEN_SIZE:(g + 1) * HIDDEN_SIZE])
    return out


def _pack_gate_bias(b):
    """b: (4*H,) -> (G_PAD,), gates in 128-wide slots."""
    out = jnp.zeros((G_PAD,), jnp.float32)
    for g in range(4):
        out = out.at[g * F_PAD:g * F_PAD + HIDDEN_SIZE].set(
            b[g * HIDDEN_SIZE:(g + 1) * HIDDEN_SIZE])
    return out


@jax.jit
def lstm_forward(x, params):
    """x: (seq, batch, INPUT_SIZE) f32 -> (seq, batch, OUTPUT_SIZE) f32."""
    seq, batch, _ = x.shape

    # ---- pad inputs / weights to TPU-friendly shapes ----
    x_pad = jnp.zeros((seq, B_PAD, F_PAD), jnp.float32)
    x_pad = x_pad.at[:, :batch, :INPUT_SIZE].set(x)

    wih1 = _pack_gate_matrix(params["w_ih_l0"].T, F_PAD)            # (128, 512)
    whh1 = _pack_gate_matrix(params["w_hh_l0"].T, F_PAD)            # (128, 512)
    b1 = _pack_gate_bias(params["b_ih_l0"] + params["b_hh_l0"])[None, :]  # (1, 512)

    # Stacked layer-2 weight for the fused [h1 | h2] @ [W_ih ; W_hh] matmul.
    w2 = jnp.concatenate(
        [_pack_gate_matrix(params["w_ih_l1"].T, F_PAD),
         _pack_gate_matrix(params["w_hh_l1"].T, F_PAD)], axis=0)    # (256, 512)
    b2 = jnp.tile(
        _pack_gate_bias(params["b_ih_l1"] + params["b_hh_l1"])[None, :],
        (B_PAD, 1))                                                  # (8, 512)

    wlin = jnp.zeros((F_PAD, F_PAD), jnp.float32)
    wlin = wlin.at[:HIDDEN_SIZE, :OUTPUT_SIZE].set(params["w_lin"].T)
    blin = jnp.zeros((1, F_PAD), jnp.float32)
    blin = blin.at[0, :OUTPUT_SIZE].set(params["b_lin"])

    vmem = pl.BlockSpec(memory_space=pltpu.MemorySpace.VMEM)

    out_pad = pl.pallas_call(
        lstm_kernel,
        out_shape=jax.ShapeDtypeStruct((seq, B_PAD, F_PAD), jnp.float32),
        in_specs=[vmem] * 8,
        out_specs=vmem,
        scratch_shapes=[
            pltpu.VMEM((seq, B_PAD, G_PAD), jnp.float32),   # pre1 (all steps)
            pltpu.VMEM((seq, B_PAD, F_PAD), jnp.float32),   # h2 sequence
        ],
    )(x_pad, wih1, b1, whh1, w2, b2, wlin, blin)

    return out_pad[:, :batch, :OUTPUT_SIZE]


# ---------------- pure-JAX reference (PyTorch LSTM semantics) ----------------
def lstm_reference(x, params):
    seq, batch, _ = x.shape

    def run_layer(xs, wih, whh, bih, bhh):
        h = jnp.zeros((batch, HIDDEN_SIZE), jnp.float32)
        c = jnp.zeros((batch, HIDDEN_SIZE), jnp.float32)
        outs = []
        for t in range(seq):
            gates = xs[t] @ wih.T + bih + h @ whh.T + bhh
            i, f, g, o = jnp.split(gates, 4, axis=-1)
            i, f, o = jax.nn.sigmoid(i), jax.nn.sigmoid(f), jax.nn.sigmoid(o)
            g = jnp.tanh(g)
            c = f * c + i * g
            h = o * jnp.tanh(c)
            outs.append(h)
        return jnp.stack(outs)

    h1 = run_layer(x, params["w_ih_l0"], params["w_hh_l0"],
                   params["b_ih_l0"], params["b_hh_l0"])
    h2 = run_layer(h1, params["w_ih_l1"], params["w_hh_l1"],
                   params["b_ih_l1"], params["b_hh_l1"])
    out = h2.reshape(seq * batch, HIDDEN_SIZE) @ params["w_lin"].T + params["b_lin"]
    return out.reshape(seq, batch, OUTPUT_SIZE)


def init_params(key):
    """Deterministic init matching PyTorch shapes (uniform +-1/sqrt(hidden))."""
    k = 1.0 / jnp.sqrt(HIDDEN_SIZE)
    names_shapes = [
        ("w_ih_l0", (4 * HIDDEN_SIZE, INPUT_SIZE)),
        ("w_hh_l0", (4 * HIDDEN_SIZE, HIDDEN_SIZE)),
        ("b_ih_l0", (4 * HIDDEN_SIZE,)),
        ("b_hh_l0", (4 * HIDDEN_SIZE,)),
        ("w_ih_l1", (4 * HIDDEN_SIZE, HIDDEN_SIZE)),
        ("w_hh_l1", (4 * HIDDEN_SIZE, HIDDEN_SIZE)),
        ("b_ih_l1", (4 * HIDDEN_SIZE,)),
        ("b_hh_l1", (4 * HIDDEN_SIZE,)),
        ("w_lin", (OUTPUT_SIZE, HIDDEN_SIZE)),
        ("b_lin", (OUTPUT_SIZE,)),
    ]
    params = {}
    keys = jax.random.split(key, len(names_shapes))
    for sub, (name, shape) in zip(keys, names_shapes):
        params[name] = jax.random.uniform(sub, shape, jnp.float32, -k, k)
    return params


if __name__ == "__main__":
    key = jax.random.PRNGKey(0)
    pkey, xkey = jax.random.split(key)

    params = init_params(pkey)

    SEQ, BATCH = 8, 2
    x = jax.random.normal(xkey, (SEQ, BATCH, INPUT_SIZE), jnp.float32)

    out = lstm_forward(x, params)
    out = jax.block_until_ready(out)

    ref = lstm_reference(x, params)
    assert out.shape == (SEQ, BATCH, OUTPUT_SIZE), out.shape
    assert jnp.allclose(out, ref, atol=1e-5, rtol=1e-5), (
        float(jnp.max(jnp.abs(out - ref))))

    print("KERNEL_OK")
</pallas_src>

<mosaic_0001>
module attributes {stable_mosaic.version = 11 : i64} {
  func.func @lstm_kernel(%arg0: memref<8x8x128xf32, #tpu.memory_space<vmem>>, %arg1: memref<128x512xf32, #tpu.memory_space<vmem>>, %arg2: memref<1x512xf32, #tpu.memory_space<vmem>>, %arg3: memref<128x512xf32, #tpu.memory_space<vmem>>, %arg4: memref<256x512xf32, #tpu.memory_space<vmem>>, %arg5: memref<8x512xf32, #tpu.memory_space<vmem>>, %arg6: memref<128x128xf32, #tpu.memory_space<vmem>>, %arg7: memref<1x128xf32, #tpu.memory_space<vmem>>, %arg8: memref<8x8x128xf32, #tpu.memory_space<vmem>>, %arg9: memref<8x8x512xf32, #tpu.memory_space<vmem>>, %arg10: memref<8x8x128xf32, #tpu.memory_space<vmem>>) attributes {dimension_semantics = [], scalar_prefetch = 0 : i64, scratch_operands = 2 : i64, tpu.core_type = #tpu.core_type<tc>} {
    %c0 = arith.constant 0 : index
    %c0_0 = arith.constant 0 : index
    %c0_1 = arith.constant 0 : index
    %0 = vector.load %arg0[%c0, %c0_0, %c0_1] : memref<8x8x128xf32, #tpu.memory_space<vmem>>, vector<8x8x128xf32>
    %1 = vector.shape_cast %0 : vector<8x8x128xf32> to vector<64x128xf32>
    %c0_2 = arith.constant 0 : index
    %c0_3 = arith.constant 0 : index
    %2 = vector.load %arg1[%c0_2, %c0_3] : memref<128x512xf32, #tpu.memory_space<vmem>>, vector<128x512xf32>
    %cst = arith.constant dense<0.000000e+00> : vector<64x512xf32>
    %3 = tpu.matmul %1, %2, %cst {dimension_numbers = #tpu.dot_dimension_numbers<[1], [0], [0], [1], [0, 0, 1, 1], [], []>} : vector<64x128xf32>, vector<128x512xf32>, vector<64x512xf32> -> vector<64x512xf32>
    %c0_4 = arith.constant 0 : index
    %c0_5 = arith.constant 0 : index
    %4 = vector.load %arg2[%c0_4, %c0_5] : memref<1x512xf32, #tpu.memory_space<vmem>>, vector<1x512xf32>
    %5 = vector.broadcast %4 : vector<1x512xf32> to vector<64x512xf32>
    %6 = arith.addf %3, %5 : vector<64x512xf32>
    %7 = vector.shape_cast %6 : vector<64x512xf32> to vector<8x8x512xf32>
    %c0_6 = arith.constant 0 : index
    %c0_7 = arith.constant 0 : index
    %c0_8 = arith.constant 0 : index
    %8 = vector.load %arg9[%c0_6, %c0_7, %c0_8] : memref<8x8x512xf32, #tpu.memory_space<vmem>>, vector<8x8x512xf32>
    tpu.vector_store %arg9[%c0_6, %c0_7, %c0_8], %7 {strides = array<i32>} : memref<8x8x512xf32, #tpu.memory_space<vmem>>, vector<8x8x512xf32>,
    %cst_9 = arith.constant 0.000000e+00 : f32
    %9 = vector.broadcast %cst_9 : f32 to vector<8x128xf32>
    %c0_i32 = arith.constant 0 : i32
    %10 = arith.index_cast %c0_i32 : i32 to index
    %c0_10 = arith.constant 0 : index
    %c0_11 = arith.constant 0 : index
    %11 = vector.load %arg9[%10, %c0_10, %c0_11] : memref<8x8x512xf32, #tpu.memory_space<vmem>>, vector<1x8x512xf32>
    %12 = vector.shape_cast %11 : vector<1x8x512xf32> to vector<8x512xf32>
    %c0_12 = arith.constant 0 : index
    %c0_13 = arith.constant 0 : index
    %13 = vector.load %arg3[%c0_12, %c0_13] : memref<128x512xf32, #tpu.memory_space<vmem>>, vector<128x512xf32>
    %cst_14 = arith.constant dense<0.000000e+00> : vector<8x512xf32>
    %14 = tpu.matmul %9, %13, %cst_14 {dimension_numbers = #tpu.dot_dimension_numbers<[1], [0], [0], [1], [0, 0, 1, 1], [], []>} : vector<8x128xf32>, vector<128x512xf32>, vector<8x512xf32> -> vector<8x512xf32>
    %15 = arith.addf %12, %14 : vector<8x512xf32>
    %16 = vector.extract_strided_slice %15 {offsets = [0, 0], sizes = [8, 128], strides = [1, 1]} : vector<8x512xf32> to vector<8x128xf32>
    %17 = arith.negf %16 : vector<8x128xf32>
    %18 = math.exp %17 : vector<8x128xf32>
    %cst_15 = arith.constant 1.000000e+00 : f32
    %19 = vector.broadcast %cst_15 : f32 to vector<8x128xf32>
    %20 = arith.addf %19, %18 : vector<8x128xf32>
    %21 = arith.divf %19, %20 : vector<8x128xf32>
    %22 = vector.extract_strided_slice %15 {offsets = [0, 128], sizes = [8, 128], strides = [1, 1]} : vector<8x512xf32> to vector<8x128xf32>
    %23 = arith.negf %22 : vector<8x128xf32>
    %24 = math.exp %23 : vector<8x128xf32>
    %cst_16 = arith.constant 1.000000e+00 : f32
    %25 = vector.broadcast %cst_16 : f32 to vector<8x128xf32>
    %26 = arith.addf %25, %24 : vector<8x128xf32>
    %27 = arith.divf %25, %26 : vector<8x128xf32>
    %28 = vector.extract_strided_slice %15 {offsets = [0, 256], sizes = [8, 128], strides = [1, 1]} : vector<8x512xf32> to vector<8x128xf32>
    %29 = math.tanh %28 : vector<8x128xf32>
    %30 = vector.extract_strided_slice %15 {offsets = [0, 384], sizes = [8, 128], strides = [1, 1]} : vector<8x512xf32> to vector<8x128xf32>
    %31 = arith.negf %30 : vector<8x128xf32>
    %32 = math.exp %31 : vector<8x128xf32>
    %cst_17 = arith.constant 1.000000e+00 : f32
    %33 = vector.broadcast %cst_17 : f32 to vector<8x128xf32>
    %34 = arith.addf %33, %32 : vector<8x128xf32>
    %35 = arith.divf %33, %34 : vector<8x128xf32>
    %36 = arith.mulf %27, %9 : vector<8x128xf32>
    %37 = arith.mulf %21, %29 : vector<8x128xf32>
    %38 = arith.addf %36, %37 : vector<8x128xf32>
    %39 = math.tanh %38 : vector<8x128xf32>
    %40 = arith.mulf %35, %39 : vector<8x128xf32>
    %41 = tpu.concatenate %40, %9 in 1 : vector<8x128xf32>, vector<8x128xf32> -> vector<8x256xf32>
    %c0_18 = arith.constant 0 : index
    %c0_19 = arith.constant 0 : index
    %42 = vector.load %arg4[%c0_18, %c0_19] : memref<256x512xf32, #tpu.memory_space<vmem>>, vector<256x512xf32>
    %cst_20 = arith.constant dense<0.000000e+00> : vector<8x512xf32>
    %43 = tpu.matmul %41, %42, %cst_20 {dimension_numbers = #tpu.dot_dimension_numbers<[1], [0], [0], [1], [0, 0, 1, 1], [], []>} : vector<8x256xf32>, vector<256x512xf32>, vector<8x512xf32> -> vector<8x512xf32>
    %c0_21 = arith.constant 0 : index
    %c0_22 = arith.constant 0 : index
    %44 = vector.load %arg5[%c0_21, %c0_22] : memref<8x512xf32, #tpu.memory_space<vmem>>, vector<8x512xf32>
    %45 = arith.addf %43, %44 : vector<8x512xf32>
    %46 = vector.extract_strided_slice %45 {offsets = [0, 0], sizes = [8, 128], strides = [1, 1]} : vector<8x512xf32> to vector<8x128xf32>
    %47 = arith.negf %46 : vector<8x128xf32>
    %48 = math.exp %47 : vector<8x128xf32>
    %cst_23 = arith.constant 1.000000e+00 : f32
    %49 = vector.broadcast %cst_23 : f32 to vector<8x128xf32>
    %50 = arith.addf %49, %48 : vector<8x128xf32>
    %51 = arith.divf %49, %50 : vector<8x128xf32>
    %52 = vector.extract_strided_slice %45 {offsets = [0, 128], sizes = [8, 128], strides = [1, 1]} : vector<8x512xf32> to vector<8x128xf32>
    %53 = arith.negf %52 : vector<8x128xf32>
    %54 = math.exp %53 : vector<8x128xf32>
    %cst_24 = arith.constant 1.000000e+00 : f32
    %55 = vector.broadcast %cst_24 : f32 to vector<8x128xf32>
    %56 = arith.addf %55, %54 : vector<8x128xf32>
    %57 = arith.divf %55, %56 : vector<8x128xf32>
    %58 = vector.extract_strided_slice %45 {offsets = [0, 256], sizes = [8, 128], strides = [1, 1]} : vector<8x512xf32> to vector<8x128xf32>
    %59 = math.tanh %58 : vector<8x128xf32>
    %60 = vector.extract_strided_slice %45 {offsets = [0, 384], sizes = [8, 128], strides = [1, 1]} : vector<8x512xf32> to vector<8x128xf32>
    %61 = arith.negf %60 : vector<8x128xf32>
    %62 = math.exp %61 : vector<8x128xf32>
    %cst_25 = arith.constant 1.000000e+00 : f32
    %63 = vector.broadcast %cst_25 : f32 to vector<8x128xf32>
    %64 = arith.addf %63, %62 : vector<8x128xf32>
    %65 = arith.divf %63, %64 : vector<8x128xf32>
    %66 = arith.mulf %57, %9 : vector<8x128xf32>
    %67 = arith.mulf %51, %59 : vector<8x128xf32>
    %68 = arith.addf %66, %67 : vector<8x128xf32>
    %69 = math.tanh %68 : vector<8x128xf32>
    %70 = arith.mulf %65, %69 : vector<8x128xf32>
    %71 = arith.index_cast %c0_i32 : i32 to index
    %c0_26 = arith.constant 0 : index
    %c0_27 = arith.constant 0 : index
    %72 = vector.load %arg10[%71, %c0_26, %c0_27] : memref<8x8x128xf32, #tpu.memory_space<vmem>>, vector<1x8x128xf32>
    %73 = vector.shape_cast %72 : vector<1x8x128xf32> to vector<8x128xf32>
    %74 = vector.shape_cast %70 : vector<8x128xf32> to vector<1x8x128xf32>
    tpu.vector_store %arg10[%71, %c0_26, %c0_27], %74 {strides = array<i32>} : memref<8x8x128xf32, #tpu.memory_space<vmem>>, vector<1x8x128xf32>,
    %c1_i32 = arith.constant 1 : i32
    %75 = arith.index_cast %c1_i32 : i32 to index
    %c0_28 = arith.constant 0 : index
    %c0_29 = arith.constant 0 : index
    %76 = vector.load %arg9[%75, %c0_28, %c0_29] : memref<8x8x512xf32, #tpu.memory_space<vmem>>, vector<1x8x512xf32>
    %77 = vector.shape_cast %76 : vector<1x8x512xf32> to vector<8x512xf32>
    %c0_30 = arith.constant 0 : index
    %c0_31 = arith.constant 0 : index
    %78 = vector.load %arg3[%c0_30, %c0_31] : memref<128x512xf32, #tpu.memory_space<vmem>>, vector<128x512xf32>
    %cst_32 = arith.constant dense<0.000000e+00> : vector<8x512xf32>
    %79 = tpu.matmul %40, %78, %cst_32 {dimension_numbers = #tpu.dot_dimension_numbers<[1], [0], [0], [1], [0, 0, 1, 1], [], []>} : vector<8x128xf32>, vector<128x512xf32>, vector<8x512xf32> -> vector<8x512xf32>
    %80 = arith.addf %77, %79 : vector<8x512xf32>
    %81 = vector.extract_strided_slice %80 {offsets = [0, 0], sizes = [8, 128], strides = [1, 1]} : vector<8x512xf32> to vector<8x128xf32>
    %82 = arith.negf %81 : vector<8x128xf32>
    %83 = math.exp %82 : vector<8x128xf32>
    %cst_33 = arith.constant 1.000000e+00 : f32
    %84 = vector.broadcast %cst_33 : f32 to vector<8x128xf32>
    %85 = arith.addf %84, %83 : vector<8x128xf32>
    %86 = arith.divf %84, %85 : vector<8x128xf32>
    %87 = vector.extract_strided_slice %80 {offsets = [0, 128], sizes = [8, 128], strides = [1, 1]} : vector<8x512xf32> to vector<8x128xf32>
    %88 = arith.negf %87 : vector<8x128xf32>
    %89 = math.exp %88 : vector<8x128xf32>
    %cst_34 = arith.constant 1.000000e+00 : f32
    %90 = vector.broadcast %cst_34 : f32 to vector<8x128xf32>
    %91 = arith.addf %90, %89 : vector<8x128xf32>
    %92 = arith.divf %90, %91 : vector<8x128xf32>
    %93 = vector.extract_strided_slice %80 {offsets = [0, 256], sizes = [8, 128], strides = [1, 1]} : vector<8x512xf32> to vector<8x128xf32>
    %94 = math.tanh %93 : vector<8x128xf32>
    %95 = vector.extract_strided_slice %80 {offsets = [0, 384], sizes = [8, 128], strides = [1, 1]} : vector<8x512xf32> to vector<8x128xf32>
    %96 = arith.negf %95 : vector<8x128xf32>
    %97 = math.exp %96 : vector<8x128xf32>
    %cst_35 = arith.constant 1.000000e+00 : f32
    %98 = vector.broadcast %cst_35 : f32 to vector<8x128xf32>
    %99 = arith.addf %98, %97 : vector<8x128xf32>
    %100 = arith.divf %98, %99 : vector<8x128xf32>
    %101 = arith.mulf %92, %38 : vector<8x128xf32>
    %102 = arith.mulf %86, %94 : vector<8x128xf32>
    %103 = arith.addf %101, %102 : vector<8x128xf32>
    %104 = math.tanh %103 : vector<8x128xf32>
    %105 = arith.mulf %100, %104 : vector<8x128xf32>
    %106 = tpu.concatenate %105, %70 in 1 : vector<8x128xf32>, vector<8x128xf32> -> vector<8x256xf32>
    %c0_36 = arith.constant 0 : index
    %c0_37 = arith.constant 0 : index
    %107 = vector.load %arg4[%c0_36, %c0_37] : memref<256x512xf32, #tpu.memory_space<vmem>>, vector<256x512xf32>
    %cst_38 = arith.constant dense<0.000000e+00> : vector<8x512xf32>
    %108 = tpu.matmul %106, %107, %cst_38 {dimension_numbers = #tpu.dot_dimension_numbers<[1], [0], [0], [1], [0, 0, 1, 1], [], []>} : vector<8x256xf32>, vector<256x512xf32>, vector<8x512xf32> -> vector<8x512xf32>
    %c0_39 = arith.constant 0 : index
    %c0_40 = arith.constant 0 : index
    %109 = vector.load %arg5[%c0_39, %c0_40] : memref<8x512xf32, #tpu.memory_space<vmem>>, vector<8x512xf32>
    %110 = arith.addf %108, %109 : vector<8x512xf32>
    %111 = vector.extract_strided_slice %110 {offsets = [0, 0], sizes = [8, 128], strides = [1, 1]} : vector<8x512xf32> to vector<8x128xf32>
    %112 = arith.negf %111 : vector<8x128xf32>
    %113 = math.exp %112 : vector<8x128xf32>
    %cst_41 = arith.constant 1.000000e+00 : f32
    %114 = vector.broadcast %cst_41 : f32 to vector<8x128xf32>
    %115 = arith.addf %114, %113 : vector<8x128xf32>
    %116 = arith.divf %114, %115 : vector<8x128xf32>
    %117 = vector.extract_strided_slice %110 {offsets = [0, 128], sizes = [8, 128], strides = [1, 1]} : vector<8x512xf32> to vector<8x128xf32>
    %118 = arith.negf %117 : vector<8x128xf32>
    %119 = math.exp %118 : vector<8x128xf32>
    %cst_42 = arith.constant 1.000000e+00 : f32
    %120 = vector.broadcast %cst_42 : f32 to vector<8x128xf32>
    %121 = arith.addf %120, %119 : vector<8x128xf32>
    %122 = arith.divf %120, %121 : vector<8x128xf32>
    %123 = vector.extract_strided_slice %110 {offsets = [0, 256], sizes = [8, 128], strides = [1, 1]} : vector<8x512xf32> to vector<8x128xf32>
    %124 = math.tanh %123 : vector<8x128xf32>
    %125 = vector.extract_strided_slice %110 {offsets = [0, 384], sizes = [8, 128], strides = [1, 1]} : vector<8x512xf32> to vector<8x128xf32>
    %126 = arith.negf %125 : vector<8x128xf32>
    %127 = math.exp %126 : vector<8x128xf32>
    %cst_43 = arith.constant 1.000000e+00 : f32
    %128 = vector.broadcast %cst_43 : f32 to vector<8x128xf32>
    %129 = arith.addf %128, %127 : vector<8x128xf32>
    %130 = arith.divf %128, %129 : vector<8x128xf32>
    %131 = arith.mulf %122, %68 : vector<8x128xf32>
    %132 = arith.mulf %116, %124 : vector<8x128xf32>
    %133 = arith.addf %131, %132 : vector<8x128xf32>
    %134 = math.tanh %133 : vector<8x128xf32>
    %135 = arith.mulf %130, %134 : vector<8x128xf32>
    %136 = arith.index_cast %c1_i32 : i32 to index
    %c0_44 = arith.constant 0 : index
    %c0_45 = arith.constant 0 : index
    %137 = vector.load %arg10[%136, %c0_44, %c0_45] : memref<8x8x128xf32, #tpu.memory_space<vmem>>, vector<1x8x128xf32>
    %138 = vector.shape_cast %137 : vector<1x8x128xf32> to vector<8x128xf32>
    %139 = vector.shape_cast %135 : vector<8x128xf32> to vector<1x8x128xf32>
    tpu.vector_store %arg10[%136, %c0_44, %c0_45], %139 {strides = array<i32>} : memref<8x8x128xf32, #tpu.memory_space<vmem>>, vector<1x8x128xf32>,
    %c2_i32 = arith.constant 2 : i32
    %140 = arith.index_cast %c2_i32 : i32 to index
    %c0_46 = arith.constant 0 : index
    %c0_47 = arith.constant 0 : index
    %141 = vector.load %arg9[%140, %c0_46, %c0_47] : memref<8x8x512xf32, #tpu.memory_space<vmem>>, vector<1x8x512xf32>
    %142 = vector.shape_cast %141 : vector<1x8x512xf32> to vector<8x512xf32>
    %c0_48 = arith.constant 0 : index
    %c0_49 = arith.constant 0 : index
    %143 = vector.load %arg3[%c0_48, %c0_49] : memref<128x512xf32, #tpu.memory_space<vmem>>, vector<128x512xf32>
    %cst_50 = arith.constant dense<0.000000e+00> : vector<8x512xf32>
    %144 = tpu.matmul %105, %143, %cst_50 {dimension_numbers = #tpu.dot_dimension_numbers<[1], [0], [0], [1], [0, 0, 1, 1], [], []>} : vector<8x128xf32>, vector<128x512xf32>, vector<8x512xf32> -> vector<8x512xf32>
    %145 = arith.addf %142, %144 : vector<8x512xf32>
    %146 = vector.extract_strided_slice %145 {offsets = [0, 0], sizes = [8, 128], strides = [1, 1]} : vector<8x512xf32> to vector<8x128xf32>
    %147 = arith.negf %146 : vector<8x128xf32>
    %148 = math.exp %147 : vector<8x128xf32>
    %cst_51 = arith.constant 1.000000e+00 : f32
    %149 = vector.broadcast %cst_51 : f32 to vector<8x128xf32>
    %150 = arith.addf %149, %148 : vector<8x128xf32>
    %151 = arith.divf %149, %150 : vector<8x128xf32>
    %152 = vector.extract_strided_slice %145 {offsets = [0, 128], sizes = [8, 128], strides = [1, 1]} : vector<8x512xf32> to vector<8x128xf32>
    %153 = arith.negf %152 : vector<8x128xf32>
    %154 = math.exp %153 : vector<8x128xf32>
    %cst_52 = arith.constant 1.000000e+00 : f32
    %155 = vector.broadcast %cst_52 : f32 to vector<8x128xf32>
    %156 = arith.addf %155, %154 : vector<8x128xf32>
    %157 = arith.divf %155, %156 : vector<8x128xf32>
    %158 = vector.extract_strided_slice %145 {offsets = [0, 256], sizes = [8, 128], strides = [1, 1]} : vector<8x512xf32> to vector<8x128xf32>
    %159 = math.tanh %158 : vector<8x128xf32>
    %160 = vector.extract_strided_slice %145 {offsets = [0, 384], sizes = [8, 128], strides = [1, 1]} : vector<8x512xf32> to vector<8x128xf32>
    %161 = arith.negf %160 : vector<8x128xf32>
    %162 = math.exp %161 : vector<8x128xf32>
    %cst_53 = arith.constant 1.000000e+00 : f32
    %163 = vector.broadcast %cst_53 : f32 to vector<8x128xf32>
    %164 = arith.addf %163, %162 : vector<8x128xf32>
    %165 = arith.divf %163, %164 : vector<8x128xf32>
    %166 = arith.mulf %157, %103 : vector<8x128xf32>
    %167 = arith.mulf %151, %159 : vector<8x128xf32>
    %168 = arith.addf %166, %167 : vector<8x128xf32>
    %169 = math.tanh %168 : vector<8x128xf32>
    %170 = arith.mulf %165, %169 : vector<8x128xf32>
    %171 = tpu.concatenate %170, %135 in 1 : vector<8x128xf32>, vector<8x128xf32> -> vector<8x256xf32>
    %c0_54 = arith.constant 0 : index
    %c0_55 = arith.constant 0 : index
    %172 = vector.load %arg4[%c0_54, %c0_55] : memref<256x512xf32, #tpu.memory_space<vmem>>, vector<256x512xf32>
    %cst_56 = arith.constant dense<0.000000e+00> : vector<8x512xf32>
    %173 = tpu.matmul %171, %172, %cst_56 {dimension_numbers = #tpu.dot_dimension_numbers<[1], [0], [0], [1], [0, 0, 1, 1], [], []>} : vector<8x256xf32>, vector<256x512xf32>, vector<8x512xf32> -> vector<8x512xf32>
    %c0_57 = arith.constant 0 : index
    %c0_58 = arith.constant 0 : index
    %174 = vector.load %arg5[%c0_57, %c0_58] : memref<8x512xf32, #tpu.memory_space<vmem>>, vector<8x512xf32>
    %175 = arith.addf %173, %174 : vector<8x512xf32>
    %176 = vector.extract_strided_slice %175 {offsets = [0, 0], sizes = [8, 128], strides = [1, 1]} : vector<8x512xf32> to vector<8x128xf32>
    %177 = arith.negf %176 : vector<8x128xf32>
    %178 = math.exp %177 : vector<8x128xf32>
    %cst_59 = arith.constant 1.000000e+00 : f32
    %179 = vector.broadcast %cst_59 : f32 to vector<8x128xf32>
    %180 = arith.addf %179, %178 : vector<8x128xf32>
    %181 = arith.divf %179, %180 : vector<8x128xf32>
    %182 = vector.extract_strided_slice %175 {offsets = [0, 128], sizes = [8, 128], strides = [1, 1]} : vector<8x512xf32> to vector<8x128xf32>
    %183 = arith.negf %182 : vector<8x128xf32>
    %184 = math.exp %183 : vector<8x128xf32>
    %cst_60 = arith.constant 1.000000e+00 : f32
    %185 = vector.broadcast %cst_60 : f32 to vector<8x128xf32>
    %186 = arith.addf %185, %184 : vector<8x128xf32>
    %187 = arith.divf %185, %186 : vector<8x128xf32>
    %188 = vector.extract_strided_slice %175 {offsets = [0, 256], sizes = [8, 128], strides = [1, 1]} : vector<8x512xf32> to vector<8x128xf32>
    %189 = math.tanh %188 : vector<8x128xf32>
    %190 = vector.extract_strided_slice %175 {offsets = [0, 384], sizes = [8, 128], strides = [1, 1]} : vector<8x512xf32> to vector<8x128xf32>
    %191 = arith.negf %190 : vector<8x128xf32>
    %192 = math.exp %191 : vector<8x128xf32>
    %cst_61 = arith.constant 1.000000e+00 : f32
    %193 = vector.broadcast %cst_61 : f32 to vector<8x128xf32>
    %194 = arith.addf %193, %192 : vector<8x128xf32>
    %195 = arith.divf %193, %194 : vector<8x128xf32>
    %196 = arith.mulf %187, %133 : vector<8x128xf32>
    %197 = arith.mulf %181, %189 : vector<8x128xf32>
    %198 = arith.addf %196, %197 : vector<8x128xf32>
    %199 = math.tanh %198 : vector<8x128xf32>
    %200 = arith.mulf %195, %199 : vector<8x128xf32>
    %201 = arith.index_cast %c2_i32 : i32 to index
    %c0_62 = arith.constant 0 : index
    %c0_63 = arith.constant 0 : index
    %202 = vector.load %arg10[%201, %c0_62, %c0_63] : memref<8x8x128xf32, #tpu.memory_space<vmem>>, vector<1x8x128xf32>
    %203 = vector.shape_cast %202 : vector<1x8x128xf32> to vector<8x128xf32>
    %204 = vector.shape_cast %200 : vector<8x128xf32> to vector<1x8x128xf32>
    tpu.vector_store %arg10[%201, %c0_62, %c0_63], %204 {strides = array<i32>} : memref<8x8x128xf32, #tpu.memory_space<vmem>>, vector<1x8x128xf32>,
    %c3_i32 = arith.constant 3 : i32
    %205 = arith.index_cast %c3_i32 : i32 to index
    %c0_64 = arith.constant 0 : index
    %c0_65 = arith.constant 0 : index
    %206 = vector.load %arg9[%205, %c0_64, %c0_65] : memref<8x8x512xf32, #tpu.memory_space<vmem>>, vector<1x8x512xf32>
    %207 = vector.shape_cast %206 : vector<1x8x512xf32> to vector<8x512xf32>
    %c0_66 = arith.constant 0 : index
    %c0_67 = arith.constant 0 : index
    %208 = vector.load %arg3[%c0_66, %c0_67] : memref<128x512xf32, #tpu.memory_space<vmem>>, vector<128x512xf32>
    %cst_68 = arith.constant dense<0.000000e+00> : vector<8x512xf32>
    %209 = tpu.matmul %170, %208, %cst_68 {dimension_numbers = #tpu.dot_dimension_numbers<[1], [0], [0], [1], [0, 0, 1, 1], [], []>} : vector<8x128xf32>, vector<128x512xf32>, vector<8x512xf32> -> vector<8x512xf32>
    %210 = arith.addf %207, %209 : vector<8x512xf32>
    %211 = vector.extract_strided_slice %210 {offsets = [0, 0], sizes = [8, 128], strides = [1, 1]} : vector<8x512xf32> to vector<8x128xf32>
    %212 = arith.negf %211 : vector<8x128xf32>
    %213 = math.exp %212 : vector<8x128xf32>
    %cst_69 = arith.constant 1.000000e+00 : f32
    %214 = vector.broadcast %cst_69 : f32 to vector<8x128xf32>
    %215 = arith.addf %214, %213 : vector<8x128xf32>
    %216 = arith.divf %214, %215 : vector<8x128xf32>
    %217 = vector.extract_strided_slice %210 {offsets = [0, 128], sizes = [8, 128], strides = [1, 1]} : vector<8x512xf32> to vector<8x128xf32>
    %218 = arith.negf %217 : vector<8x128xf32>
    %219 = math.exp %218 : vector<8x128xf32>
    %cst_70 = arith.constant 1.000000e+00 : f32
    %220 = vector.broadcast %cst_70 : f32 to vector<8x128xf32>
    %221 = arith.addf %220, %219 : vector<8x128xf32>
    %222 = arith.divf %220, %221 : vector<8x128xf32>
    %223 = vector.extract_strided_slice %210 {offsets = [0, 256], sizes = [8, 128], strides = [1, 1]} : vector<8x512xf32> to vector<8x128xf32>
    %224 = math.tanh %223 : vector<8x128xf32>
    %225 = vector.extract_strided_slice %210 {offsets = [0, 384], sizes = [8, 128], strides = [1, 1]} : vector<8x512xf32> to vector<8x128xf32>
    %226 = arith.negf %225 : vector<8x128xf32>
    %227 = math.exp %226 : vector<8x128xf32>
    %cst_71 = arith.constant 1.000000e+00 : f32
    %228 = vector.broadcast %cst_71 : f32 to vector<8x128xf32>
    %229 = arith.addf %228, %227 : vector<8x128xf32>
    %230 = arith.divf %228, %229 : vector<8x128xf32>
    %231 = arith.mulf %222, %168 : vector<8x128xf32>
    %232 = arith.mulf %216, %224 : vector<8x128xf32>
    %233 = arith.addf %231, %232 : vector<8x128xf32>
    %234 = math.tanh %233 : vector<8x128xf32>
    %235 = arith.mulf %230, %234 : vector<8x128xf32>
    %236 = tpu.concatenate %235, %200 in 1 : vector<8x128xf32>, vector<8x128xf32> -> vector<8x256xf32>
    %c0_72 = arith.constant 0 : index
    %c0_73 = arith.constant 0 : index
    %237 = vector.load %arg4[%c0_72, %c0_73] : memref<256x512xf32, #tpu.memory_space<vmem>>, vector<256x512xf32>
    %cst_74 = arith.constant dense<0.000000e+00> : vector<8x512xf32>
    %238 = tpu.matmul %236, %237, %cst_74 {dimension_numbers = #tpu.dot_dimension_numbers<[1], [0], [0], [1], [0, 0, 1, 1], [], []>} : vector<8x256xf32>, vector<256x512xf32>, vector<8x512xf32> -> vector<8x512xf32>
    %c0_75 = arith.constant 0 : index
    %c0_76 = arith.constant 0 : index
    %239 = vector.load %arg5[%c0_75, %c0_76] : memref<8x512xf32, #tpu.memory_space<vmem>>, vector<8x512xf32>
    %240 = arith.addf %238, %239 : vector<8x512xf32>
    %241 = vector.extract_strided_slice %240 {offsets = [0, 0], sizes = [8, 128], strides = [1, 1]} : vector<8x512xf32> to vector<8x128xf32>
    %242 = arith.negf %241 : vector<8x128xf32>
    %243 = math.exp %242 : vector<8x128xf32>
    %cst_77 = arith.constant 1.000000e+00 : f32
    %244 = vector.broadcast %cst_77 : f32 to vector<8x128xf32>
    %245 = arith.addf %244, %243 : vector<8x128xf32>
    %246 = arith.divf %244, %245 : vector<8x128xf32>
    %247 = vector.extract_strided_slice %240 {offsets = [0, 128], sizes = [8, 128], strides = [1, 1]} : vector<8x512xf32> to vector<8x128xf32>
    %248 = arith.negf %247 : vector<8x128xf32>
    %249 = math.exp %248 : vector<8x128xf32>
    %cst_78 = arith.constant 1.000000e+00 : f32
    %250 = vector.broadcast %cst_78 : f32 to vector<8x128xf32>
    %251 = arith.addf %250, %249 : vector<8x128xf32>
    %252 = arith.divf %250, %251 : vector<8x128xf32>
    %253 = vector.extract_strided_slice %240 {offsets = [0, 256], sizes = [8, 128], strides = [1, 1]} : vector<8x512xf32> to vector<8x128xf32>
    %254 = math.tanh %253 : vector<8x128xf32>
    %255 = vector.extract_strided_slice %240 {offsets = [0, 384], sizes = [8, 128], strides = [1, 1]} : vector<8x512xf32> to vector<8x128xf32>
    %256 = arith.negf %255 : vector<8x128xf32>
    %257 = math.exp %256 : vector<8x128xf32>
    %cst_79 = arith.constant 1.000000e+00 : f32
    %258 = vector.broadcast %cst_79 : f32 to vector<8x128xf32>
    %259 = arith.addf %258, %257 : vector<8x128xf32>
    %260 = arith.divf %258, %259 : vector<8x128xf32>
    %261 = arith.mulf %252, %198 : vector<8x128xf32>
    %262 = arith.mulf %246, %254 : vector<8x128xf32>
    %263 = arith.addf %261, %262 : vector<8x128xf32>
    %264 = math.tanh %263 : vector<8x128xf32>
    %265 = arith.mulf %260, %264 : vector<8x128xf32>
    %266 = arith.index_cast %c3_i32 : i32 to index
    %c0_80 = arith.constant 0 : index
    %c0_81 = arith.constant 0 : index
    %267 = vector.load %arg10[%266, %c0_80, %c0_81] : memref<8x8x128xf32, #tpu.memory_space<vmem>>, vector<1x8x128xf32>
    %268 = vector.shape_cast %267 : vector<1x8x128xf32> to vector<8x128xf32>
    %269 = vector.shape_cast %265 : vector<8x128xf32> to vector<1x8x128xf32>
    tpu.vector_store %arg10[%266, %c0_80, %c0_81], %269 {strides = array<i32>} : memref<8x8x128xf32, #tpu.memory_space<vmem>>, vector<1x8x128xf32>,
    %c4_i32 = arith.constant 4 : i32
    %270 = arith.index_cast %c4_i32 : i32 to index
    %c0_82 = arith.constant 0 : index
    %c0_83 = arith.constant 0 : index
    %271 = vector.load %arg9[%270, %c0_82, %c0_83] : memref<8x8x512xf32, #tpu.memory_space<vmem>>, vector<1x8x512xf32>
    %272 = vector.shape_cast %271 : vector<1x8x512xf32> to vector<8x512xf32>
    %c0_84 = arith.constant 0 : index
    %c0_85 = arith.constant 0 : index
    %273 = vector.load %arg3[%c0_84, %c0_85] : memref<128x512xf32, #tpu.memory_space<vmem>>, vector<128x512xf32>
    %cst_86 = arith.constant dense<0.000000e+00> : vector<8x512xf32>
    %274 = tpu.matmul %235, %273, %cst_86 {dimension_numbers = #tpu.dot_dimension_numbers<[1], [0], [0], [1], [0, 0, 1, 1], [], []>} : vector<8x128xf32>, vector<128x512xf32>, vector<8x512xf32> -> vector<8x512xf32>
    %275 = arith.addf %272, %274 : vector<8x512xf32>
    %276 = vector.extract_strided_slice %275 {offsets = [0, 0], sizes = [8, 128], strides = [1, 1]} : vector<8x512xf32> to vector<8x128xf32>
    %277 = arith.negf %276 : vector<8x128xf32>
    %278 = math.exp %277 : vector<8x128xf32>
    %cst_87 = arith.constant 1.000000e+00 : f32
    %279 = vector.broadcast %cst_87 : f32 to vector<8x128xf32>
    %280 = arith.addf %279, %278 : vector<8x128xf32>
    %281 = arith.divf %279, %280 : vector<8x128xf32>
    %282 = vector.extract_strided_slice %275 {offsets = [0, 128], sizes = [8, 128], strides = [1, 1]} : vector<8x512xf32> to vector<8x128xf32>
    %283 = arith.negf %282 : vector<8x128xf32>
    %284 = math.exp %283 : vector<8x128xf32>
    %cst_88 = arith.constant 1.000000e+00 : f32
    %285 = vector.broadcast %cst_88 : f32 to vector<8x128xf32>
    %286 = arith.addf %285, %284 : vector<8x128xf32>
    %287 = arith.divf %285, %286 : vector<8x128xf32>
    %288 = vector.extract_strided_slice %275 {offsets = [0, 256], sizes = [8, 128], strides = [1, 1]} : vector<8x512xf32> to vector<8x128xf32>
    %289 = math.tanh %288 : vector<8x128xf32>
    %290 = vector.extract_strided_slice %275 {offsets = [0, 384], sizes = [8, 128], strides = [1, 1]} : vector<8x512xf32> to vector<8x128xf32>
    %291 = arith.negf %290 : vector<8x128xf32>
    %292 = math.exp %291 : vector<8x128xf32>
    %cst_89 = arith.constant 1.000000e+00 : f32
    %293 = vector.broadcast %cst_89 : f32 to vector<8x128xf32>
    %294 = arith.addf %293, %292 : vector<8x128xf32>
    %295 = arith.divf %293, %294 : vector<8x128xf32>
    %296 = arith.mulf %287, %233 : vector<8x128xf32>
    %297 = arith.mulf %281, %289 : vector<8x128xf32>
    %298 = arith.addf %296, %297 : vector<8x128xf32>
    %299 = math.tanh %298 : vector<8x128xf32>
    %300 = arith.mulf %295, %299 : vector<8x128xf32>
    %301 = tpu.concatenate %300, %265 in 1 : vector<8x128xf32>, vector<8x128xf32> -> vector<8x256xf32>
    %c0_90 = arith.constant 0 : index
    %c0_91 = arith.constant 0 : index
    %302 = vector.load %arg4[%c0_90, %c0_91] : memref<256x512xf32, #tpu.memory_space<vmem>>, vector<256x512xf32>
    %cst_92 = arith.constant dense<0.000000e+00> : vector<8x512xf32>
    %303 = tpu.matmul %301, %302, %cst_92 {dimension_numbers = #tpu.dot_dimension_numbers<[1], [0], [0], [1], [0, 0, 1, 1], [], []>} : vector<8x256xf32>, vector<256x512xf32>, vector<8x512xf32> -> vector<8x512xf32>
    %c0_93 = arith.constant 0 : index
    %c0_94 = arith.constant 0 : index
    %304 = vector.load %arg5[%c0_93, %c0_94] : memref<8x512xf32, #tpu.memory_space<vmem>>, vector<8x512xf32>
    %305 = arith.addf %303, %304 : vector<8x512xf32>
    %306 = vector.extract_strided_slice %305 {offsets = [0, 0], sizes = [8, 128], strides = [1, 1]} : vector<8x512xf32> to vector<8x128xf32>
    %307 = arith.negf %306 : vector<8x128xf32>
    %308 = math.exp %307 : vector<8x128xf32>
    %cst_95 = arith.constant 1.000000e+00 : f32
    %309 = vector.broadcast %cst_95 : f32 to vector<8x128xf32>
    %310 = arith.addf %309, %308 : vector<8x128xf32>
    %311 = arith.divf %309, %310 : vector<8x128xf32>
    %312 = vector.extract_strided_slice %305 {offsets = [0, 128], sizes = [8, 128], strides = [1, 1]} : vector<8x512xf32> to vector<8x128xf32>
    %313 = arith.negf %312 : vector<8x128xf32>
    %314 = math.exp %313 : vector<8x128xf32>
    %cst_96 = arith.constant 1.000000e+00 : f32
    %315 = vector.broadcast %cst_96 : f32 to vector<8x128xf32>
    %316 = arith.addf %315, %314 : vector<8x128xf32>
    %317 = arith.divf %315, %316 : vector<8x128xf32>
    %318 = vector.extract_strided_slice %305 {offsets = [0, 256], sizes = [8, 128], strides = [1, 1]} : vector<8x512xf32> to vector<8x128xf32>
    %319 = math.tanh %318 : vector<8x128xf32>
    %320 = vector.extract_strided_slice %305 {offsets = [0, 384], sizes = [8, 128], strides = [1, 1]} : vector<8x512xf32> to vector<8x128xf32>
    %321 = arith.negf %320 : vector<8x128xf32>
    %322 = math.exp %321 : vector<8x128xf32>
    %cst_97 = arith.constant 1.000000e+00 : f32
    %323 = vector.broadcast %cst_97 : f32 to vector<8x128xf32>
    %324 = arith.addf %323, %322 : vector<8x128xf32>
    %325 = arith.divf %323, %324 : vector<8x128xf32>
    %326 = arith.mulf %317, %263 : vector<8x128xf32>
    %327 = arith.mulf %311, %319 : vector<8x128xf32>
    %328 = arith.addf %326, %327 : vector<8x128xf32>
    %329 = math.tanh %328 : vector<8x128xf32>
    %330 = arith.mulf %325, %329 : vector<8x128xf32>
    %331 = arith.index_cast %c4_i32 : i32 to index
    %c0_98 = arith.constant 0 : index
    %c0_99 = arith.constant 0 : index
    %332 = vector.load %arg10[%331, %c0_98, %c0_99] : memref<8x8x128xf32, #tpu.memory_space<vmem>>, vector<1x8x128xf32>
    %333 = vector.shape_cast %332 : vector<1x8x128xf32> to vector<8x128xf32>
    %334 = vector.shape_cast %330 : vector<8x128xf32> to vector<1x8x128xf32>
    tpu.vector_store %arg10[%331, %c0_98, %c0_99], %334 {strides = array<i32>} : memref<8x8x128xf32, #tpu.memory_space<vmem>>, vector<1x8x128xf32>,
    %c5_i32 = arith.constant 5 : i32
    %335 = arith.index_cast %c5_i32 : i32 to index
    %c0_100 = arith.constant 0 : index
    %c0_101 = arith.constant 0 : index
    %336 = vector.load %arg9[%335, %c0_100, %c0_101] : memref<8x8x512xf32, #tpu.memory_space<vmem>>, vector<1x8x512xf32>
    %337 = vector.shape_cast %336 : vector<1x8x512xf32> to vector<8x512xf32>
    %c0_102 = arith.constant 0 : index
    %c0_103 = arith.constant 0 : index
    %338 = vector.load %arg3[%c0_102, %c0_103] : memref<128x512xf32, #tpu.memory_space<vmem>>, vector<128x512xf32>
    %cst_104 = arith.constant dense<0.000000e+00> : vector<8x512xf32>
    %339 = tpu.matmul %300, %338, %cst_104 {dimension_numbers = #tpu.dot_dimension_numbers<[1], [0], [0], [1], [0, 0, 1, 1], [], []>} : vector<8x128xf32>, vector<128x512xf32>, vector<8x512xf32> -> vector<8x512xf32>
    %340 = arith.addf %337, %339 : vector<8x512xf32>
    %341 = vector.extract_strided_slice %340 {offsets = [0, 0], sizes = [8, 128], strides = [1, 1]} : vector<8x512xf32> to vector<8x128xf32>
    %342 = arith.negf %341 : vector<8x128xf32>
    %343 = math.exp %342 : vector<8x128xf32>
    %cst_105 = arith.constant 1.000000e+00 : f32
    %344 = vector.broadcast %cst_105 : f32 to vector<8x128xf32>
    %345 = arith.addf %344, %343 : vector<8x128xf32>
    %346 = arith.divf %344, %345 : vector<8x128xf32>
    %347 = vector.extract_strided_slice %340 {offsets = [0, 128], sizes = [8, 128], strides = [1, 1]} : vector<8x512xf32> to vector<8x128xf32>
    %348 = arith.negf %347 : vector<8x128xf32>
    %349 = math.exp %348 : vector<8x128xf32>
    %cst_106 = arith.constant 1.000000e+00 : f32
    %350 = vector.broadcast %cst_106 : f32 to vector<8x128xf32>
    %351 = arith.addf %350, %349 : vector<8x128xf32>
    %352 = arith.divf %350, %351 : vector<8x128xf32>
    %353 = vector.extract_strided_slice %340 {offsets = [0, 256], sizes = [8, 128], strides = [1, 1]} : vector<8x512xf32> to vector<8x128xf32>
    %354 = math.tanh %353 : vector<8x128xf32>
    %355 = vector.extract_strided_slice %340 {offsets = [0, 384], sizes = [8, 128], strides = [1, 1]} : vector<8x512xf32> to vector<8x128xf32>
    %356 = arith.negf %355 : vector<8x128xf32>
    %357 = math.exp %356 : vector<8x128xf32>
    %cst_107 = arith.constant 1.000000e+00 : f32
    %358 = vector.broadcast %cst_107 : f32 to vector<8x128xf32>
    %359 = arith.addf %358, %357 : vector<8x128xf32>
    %360 = arith.divf %358, %359 : vector<8x128xf32>
    %361 = arith.mulf %352, %298 : vector<8x128xf32>
    %362 = arith.mulf %346, %354 : vector<8x128xf32>
    %363 = arith.addf %361, %362 : vector<8x128xf32>
    %364 = math.tanh %363 : vector<8x128xf32>
    %365 = arith.mulf %360, %364 : vector<8x128xf32>
    %366 = tpu.concatenate %365, %330 in 1 : vector<8x128xf32>, vector<8x128xf32> -> vector<8x256xf32>
    %c0_108 = arith.constant 0 : index
    %c0_109 = arith.constant 0 : index
    %367 = vector.load %arg4[%c0_108, %c0_109] : memref<256x512xf32, #tpu.memory_space<vmem>>, vector<256x512xf32>
    %cst_110 = arith.constant dense<0.000000e+00> : vector<8x512xf32>
    %368 = tpu.matmul %366, %367, %cst_110 {dimension_numbers = #tpu.dot_dimension_numbers<[1], [0], [0], [1], [0, 0, 1, 1], [], []>} : vector<8x256xf32>, vector<256x512xf32>, vector<8x512xf32> -> vector<8x512xf32>
    %c0_111 = arith.constant 0 : index
    %c0_112 = arith.constant 0 : index
    %369 = vector.load %arg5[%c0_111, %c0_112] : memref<8x512xf32, #tpu.memory_space<vmem>>, vector<8x512xf32>
    %370 = arith.addf %368, %369 : vector<8x512xf32>
    %371 = vector.extract_strided_slice %370 {offsets = [0, 0], sizes = [8, 128], strides = [1, 1]} : vector<8x512xf32> to vector<8x128xf32>
    %372 = arith.negf %371 : vector<8x128xf32>
    %373 = math.exp %372 : vector<8x128xf32>
    %cst_113 = arith.constant 1.000000e+00 : f32
    %374 = vector.broadcast %cst_113 : f32 to vector<8x128xf32>
    %375 = arith.addf %374, %373 : vector<8x128xf32>
    %376 = arith.divf %374, %375 : vector<8x128xf32>
    %377 = vector.extract_strided_slice %370 {offsets = [0, 128], sizes = [8, 128], strides = [1, 1]} : vector<8x512xf32> to vector<8x128xf32>
    %378 = arith.negf %377 : vector<8x128xf32>
    %379 = math.exp %378 : vector<8x128xf32>
    %cst_114 = arith.constant 1.000000e+00 : f32
    %380 = vector.broadcast %cst_114 : f32 to vector<8x128xf32>
    %381 = arith.addf %380, %379 : vector<8x128xf32>
    %382 = arith.divf %380, %381 : vector<8x128xf32>
    %383 = vector.extract_strided_slice %370 {offsets = [0, 256], sizes = [8, 128], strides = [1, 1]} : vector<8x512xf32> to vector<8x128xf32>
    %384 = math.tanh %383 : vector<8x128xf32>
    %385 = vector.extract_strided_slice %370 {offsets = [0, 384], sizes = [8, 128], strides = [1, 1]} : vector<8x512xf32> to vector<8x128xf32>
    %386 = arith.negf %385 : vector<8x128xf32>
    %387 = math.exp %386 : vector<8x128xf32>
    %cst_115 = arith.constant 1.000000e+00 : f32
    %388 = vector.broadcast %cst_115 : f32 to vector<8x128xf32>
    %389 = arith.addf %388, %387 : vector<8x128xf32>
    %390 = arith.divf %388, %389 : vector<8x128xf32>
    %391 = arith.mulf %382, %328 : vector<8x128xf32>
    %392 = arith.mulf %376, %384 : vector<8x128xf32>
    %393 = arith.addf %391, %392 : vector<8x128xf32>
    %394 = math.tanh %393 : vector<8x128xf32>
    %395 = arith.mulf %390, %394 : vector<8x128xf32>
    %396 = arith.index_cast %c5_i32 : i32 to index
    %c0_116 = arith.constant 0 : index
    %c0_117 = arith.constant 0 : index
    %397 = vector.load %arg10[%396, %c0_116, %c0_117] : memref<8x8x128xf32, #tpu.memory_space<vmem>>, vector<1x8x128xf32>
    %398 = vector.shape_cast %397 : vector<1x8x128xf32> to vector<8x128xf32>
    %399 = vector.shape_cast %395 : vector<8x128xf32> to vector<1x8x128xf32>
    tpu.vector_store %arg10[%396, %c0_116, %c0_117], %399 {strides = array<i32>} : memref<8x8x128xf32, #tpu.memory_space<vmem>>, vector<1x8x128xf32>,
    %c6_i32 = arith.constant 6 : i32
    %400 = arith.index_cast %c6_i32 : i32 to index
    %c0_118 = arith.constant 0 : index
    %c0_119 = arith.constant 0 : index
    %401 = vector.load %arg9[%400, %c0_118, %c0_119] : memref<8x8x512xf32, #tpu.memory_space<vmem>>, vector<1x8x512xf32>
    %402 = vector.shape_cast %401 : vector<1x8x512xf32> to vector<8x512xf32>
    %c0_120 = arith.constant 0 : index
    %c0_121 = arith.constant 0 : index
    %403 = vector.load %arg3[%c0_120, %c0_121] : memref<128x512xf32, #tpu.memory_space<vmem>>, vector<128x512xf32>
    %cst_122 = arith.constant dense<0.000000e+00> : vector<8x512xf32>
    %404 = tpu.matmul %365, %403, %cst_122 {dimension_numbers = #tpu.dot_dimension_numbers<[1], [0], [0], [1], [0, 0, 1, 1], [], []>} : vector<8x128xf32>, vector<128x512xf32>, vector<8x512xf32> -> vector<8x512xf32>
    %405 = arith.addf %402, %404 : vector<8x512xf32>
    %406 = vector.extract_strided_slice %405 {offsets = [0, 0], sizes = [8, 128], strides = [1, 1]} : vector<8x512xf32> to vector<8x128xf32>
    %407 = arith.negf %406 : vector<8x128xf32>
    %408 = math.exp %407 : vector<8x128xf32>
    %cst_123 = arith.constant 1.000000e+00 : f32
    %409 = vector.broadcast %cst_123 : f32 to vector<8x128xf32>
    %410 = arith.addf %409, %408 : vector<8x128xf32>
    %411 = arith.divf %409, %410 : vector<8x128xf32>
    %412 = vector.extract_strided_slice %405 {offsets = [0, 128], sizes = [8, 128], strides = [1, 1]} : vector<8x512xf32> to vector<8x128xf32>
    %413 = arith.negf %412 : vector<8x128xf32>
    %414 = math.exp %413 : vector<8x128xf32>
    %cst_124 = arith.constant 1.000000e+00 : f32
    %415 = vector.broadcast %cst_124 : f32 to vector<8x128xf32>
    %416 = arith.addf %415, %414 : vector<8x128xf32>
    %417 = arith.divf %415, %416 : vector<8x128xf32>
    %418 = vector.extract_strided_slice %405 {offsets = [0, 256], sizes = [8, 128], strides = [1, 1]} : vector<8x512xf32> to vector<8x128xf32>
    %419 = math.tanh %418 : vector<8x128xf32>
    %420 = vector.extract_strided_slice %405 {offsets = [0, 384], sizes = [8, 128], strides = [1, 1]} : vector<8x512xf32> to vector<8x128xf32>
    %421 = arith.negf %420 : vector<8x128xf32>
    %422 = math.exp %421 : vector<8x128xf32>
    %cst_125 = arith.constant 1.000000e+00 : f32
    %423 = vector.broadcast %cst_125 : f32 to vector<8x128xf32>
    %424 = arith.addf %423, %422 : vector<8x128xf32>
    %425 = arith.divf %423, %424 : vector<8x128xf32>
    %426 = arith.mulf %417, %363 : vector<8x128xf32>
    %427 = arith.mulf %411, %419 : vector<8x128xf32>
    %428 = arith.addf %426, %427 : vector<8x128xf32>
    %429 = math.tanh %428 : vector<8x128xf32>
    %430 = arith.mulf %425, %429 : vector<8x128xf32>
    %431 = tpu.concatenate %430, %395 in 1 : vector<8x128xf32>, vector<8x128xf32> -> vector<8x256xf32>
    %c0_126 = arith.constant 0 : index
    %c0_127 = arith.constant 0 : index
    %432 = vector.load %arg4[%c0_126, %c0_127] : memref<256x512xf32, #tpu.memory_space<vmem>>, vector<256x512xf32>
    %cst_128 = arith.constant dense<0.000000e+00> : vector<8x512xf32>
    %433 = tpu.matmul %431, %432, %cst_128 {dimension_numbers = #tpu.dot_dimension_numbers<[1], [0], [0], [1], [0, 0, 1, 1], [], []>} : vector<8x256xf32>, vector<256x512xf32>, vector<8x512xf32> -> vector<8x512xf32>
    %c0_129 = arith.constant 0 : index
    %c0_130 = arith.constant 0 : index
    %434 = vector.load %arg5[%c0_129, %c0_130] : memref<8x512xf32, #tpu.memory_space<vmem>>, vector<8x512xf32>
    %435 = arith.addf %433, %434 : vector<8x512xf32>
    %436 = vector.extract_strided_slice %435 {offsets = [0, 0], sizes = [8, 128], strides = [1, 1]} : vector<8x512xf32> to vector<8x128xf32>
    %437 = arith.negf %436 : vector<8x128xf32>
    %438 = math.exp %437 : vector<8x128xf32>
    %cst_131 = arith.constant 1.000000e+00 : f32
    %439 = vector.broadcast %cst_131 : f32 to vector<8x128xf32>
    %440 = arith.addf %439, %438 : vector<8x128xf32>
    %441 = arith.divf %439, %440 : vector<8x128xf32>
    %442 = vector.extract_strided_slice %435 {offsets = [0, 128], sizes = [8, 128], strides = [1, 1]} : vector<8x512xf32> to vector<8x128xf32>
    %443 = arith.negf %442 : vector<8x128xf32>
    %444 = math.exp %443 : vector<8x128xf32>
    %cst_132 = arith.constant 1.000000e+00 : f32
    %445 = vector.broadcast %cst_132 : f32 to vector<8x128xf32>
    %446 = arith.addf %445, %444 : vector<8x128xf32>
    %447 = arith.divf %445, %446 : vector<8x128xf32>
    %448 = vector.extract_strided_slice %435 {offsets = [0, 256], sizes = [8, 128], strides = [1, 1]} : vector<8x512xf32> to vector<8x128xf32>
    %449 = math.tanh %448 : vector<8x128xf32>
    %450 = vector.extract_strided_slice %435 {offsets = [0, 384], sizes = [8, 128], strides = [1, 1]} : vector<8x512xf32> to vector<8x128xf32>
    %451 = arith.negf %450 : vector<8x128xf32>
    %452 = math.exp %451 : vector<8x128xf32>
    %cst_133 = arith.constant 1.000000e+00 : f32
    %453 = vector.broadcast %cst_133 : f32 to vector<8x128xf32>
    %454 = arith.addf %453, %452 : vector<8x128xf32>
    %455 = arith.divf %453, %454 : vector<8x128xf32>
    %456 = arith.mulf %447, %393 : vector<8x128xf32>
    %457 = arith.mulf %441, %449 : vector<8x128xf32>
    %458 = arith.addf %456, %457 : vector<8x128xf32>
    %459 = math.tanh %458 : vector<8x128xf32>
    %460 = arith.mulf %455, %459 : vector<8x128xf32>
    %461 = arith.index_cast %c6_i32 : i32 to index
    %c0_134 = arith.constant 0 : index
    %c0_135 = arith.constant 0 : index
    %462 = vector.load %arg10[%461, %c0_134, %c0_135] : memref<8x8x128xf32, #tpu.memory_space<vmem>>, vector<1x8x128xf32>
    %463 = vector.shape_cast %462 : vector<1x8x128xf32> to vector<8x128xf32>
    %464 = vector.shape_cast %460 : vector<8x128xf32> to vector<1x8x128xf32>
    tpu.vector_store %arg10[%461, %c0_134, %c0_135], %464 {strides = array<i32>} : memref<8x8x128xf32, #tpu.memory_space<vmem>>, vector<1x8x128xf32>,
    %c7_i32 = arith.constant 7 : i32
    %465 = arith.index_cast %c7_i32 : i32 to index
    %c0_136 = arith.constant 0 : index
    %c0_137 = arith.constant 0 : index
    %466 = vector.load %arg9[%465, %c0_136, %c0_137] : memref<8x8x512xf32, #tpu.memory_space<vmem>>, vector<1x8x512xf32>
    %467 = vector.shape_cast %466 : vector<1x8x512xf32> to vector<8x512xf32>
    %c0_138 = arith.constant 0 : index
    %c0_139 = arith.constant 0 : index
    %468 = vector.load %arg3[%c0_138, %c0_139] : memref<128x512xf32, #tpu.memory_space<vmem>>, vector<128x512xf32>
    %cst_140 = arith.constant dense<0.000000e+00> : vector<8x512xf32>
    %469 = tpu.matmul %430, %468, %cst_140 {dimension_numbers = #tpu.dot_dimension_numbers<[1], [0], [0], [1], [0, 0, 1, 1], [], []>} : vector<8x128xf32>, vector<128x512xf32>, vector<8x512xf32> -> vector<8x512xf32>
    %470 = arith.addf %467, %469 : vector<8x512xf32>
    %471 = vector.extract_strided_slice %470 {offsets = [0, 0], sizes = [8, 128], strides = [1, 1]} : vector<8x512xf32> to vector<8x128xf32>
    %472 = arith.negf %471 : vector<8x128xf32>
    %473 = math.exp %472 : vector<8x128xf32>
    %cst_141 = arith.constant 1.000000e+00 : f32
    %474 = vector.broadcast %cst_141 : f32 to vector<8x128xf32>
    %475 = arith.addf %474, %473 : vector<8x128xf32>
    %476 = arith.divf %474, %475 : vector<8x128xf32>
    %477 = vector.extract_strided_slice %470 {offsets = [0, 128], sizes = [8, 128], strides = [1, 1]} : vector<8x512xf32> to vector<8x128xf32>
    %478 = arith.negf %477 : vector<8x128xf32>
    %479 = math.exp %478 : vector<8x128xf32>
    %cst_142 = arith.constant 1.000000e+00 : f32
    %480 = vector.broadcast %cst_142 : f32 to vector<8x128xf32>
    %481 = arith.addf %480, %479 : vector<8x128xf32>
    %482 = arith.divf %480, %481 : vector<8x128xf32>
    %483 = vector.extract_strided_slice %470 {offsets = [0, 256], sizes = [8, 128], strides = [1, 1]} : vector<8x512xf32> to vector<8x128xf32>
    %484 = math.tanh %483 : vector<8x128xf32>
    %485 = vector.extract_strided_slice %470 {offsets = [0, 384], sizes = [8, 128], strides = [1, 1]} : vector<8x512xf32> to vector<8x128xf32>
    %486 = arith.negf %485 : vector<8x128xf32>
    %487 = math.exp %486 : vector<8x128xf32>
    %cst_143 = arith.constant 1.000000e+00 : f32
    %488 = vector.broadcast %cst_143 : f32 to vector<8x128xf32>
    %489 = arith.addf %488, %487 : vector<8x128xf32>
    %490 = arith.divf %488, %489 : vector<8x128xf32>
    %491 = arith.mulf %482, %428 : vector<8x128xf32>
    %492 = arith.mulf %476, %484 : vector<8x128xf32>
    %493 = arith.addf %491, %492 : vector<8x128xf32>
    %494 = math.tanh %493 : vector<8x128xf32>
    %495 = arith.mulf %490, %494 : vector<8x128xf32>
    %496 = tpu.concatenate %495, %460 in 1 : vector<8x128xf32>, vector<8x128xf32> -> vector<8x256xf32>
    %c0_144 = arith.constant 0 : index
    %c0_145 = arith.constant 0 : index
    %497 = vector.load %arg4[%c0_144, %c0_145] : memref<256x512xf32, #tpu.memory_space<vmem>>, vector<256x512xf32>
    %cst_146 = arith.constant dense<0.000000e+00> : vector<8x512xf32>
    %498 = tpu.matmul %496, %497, %cst_146 {dimension_numbers = #tpu.dot_dimension_numbers<[1], [0], [0], [1], [0, 0, 1, 1], [], []>} : vector<8x256xf32>, vector<256x512xf32>, vector<8x512xf32> -> vector<8x512xf32>
    %c0_147 = arith.constant 0 : index
    %c0_148 = arith.constant 0 : index
    %499 = vector.load %arg5[%c0_147, %c0_148] : memref<8x512xf32, #tpu.memory_space<vmem>>, vector<8x512xf32>
    %500 = arith.addf %498, %499 : vector<8x512xf32>
    %501 = vector.extract_strided_slice %500 {offsets = [0, 0], sizes = [8, 128], strides = [1, 1]} : vector<8x512xf32> to vector<8x128xf32>
    %502 = arith.negf %501 : vector<8x128xf32>
    %503 = math.exp %502 : vector<8x128xf32>
    %cst_149 = arith.constant 1.000000e+00 : f32
    %504 = vector.broadcast %cst_149 : f32 to vector<8x128xf32>
    %505 = arith.addf %504, %503 : vector<8x128xf32>
    %506 = arith.divf %504, %505 : vector<8x128xf32>
    %507 = vector.extract_strided_slice %500 {offsets = [0, 128], sizes = [8, 128], strides = [1, 1]} : vector<8x512xf32> to vector<8x128xf32>
    %508 = arith.negf %507 : vector<8x128xf32>
    %509 = math.exp %508 : vector<8x128xf32>
    %cst_150 = arith.constant 1.000000e+00 : f32
    %510 = vector.broadcast %cst_150 : f32 to vector<8x128xf32>
    %511 = arith.addf %510, %509 : vector<8x128xf32>
    %512 = arith.divf %510, %511 : vector<8x128xf32>
    %513 = vector.extract_strided_slice %500 {offsets = [0, 256], sizes = [8, 128], strides = [1, 1]} : vector<8x512xf32> to vector<8x128xf32>
    %514 = math.tanh %513 : vector<8x128xf32>
    %515 = vector.extract_strided_slice %500 {offsets = [0, 384], sizes = [8, 128], strides = [1, 1]} : vector<8x512xf32> to vector<8x128xf32>
    %516 = arith.negf %515 : vector<8x128xf32>
    %517 = math.exp %516 : vector<8x128xf32>
    %cst_151 = arith.constant 1.000000e+00 : f32
    %518 = vector.broadcast %cst_151 : f32 to vector<8x128xf32>
    %519 = arith.addf %518, %517 : vector<8x128xf32>
    %520 = arith.divf %518, %519 : vector<8x128xf32>
    %521 = arith.mulf %512, %458 : vector<8x128xf32>
    %522 = arith.mulf %506, %514 : vector<8x128xf32>
    %523 = arith.addf %521, %522 : vector<8x128xf32>
    %524 = math.tanh %523 : vector<8x128xf32>
    %525 = arith.mulf %520, %524 : vector<8x128xf32>
    %526 = arith.index_cast %c7_i32 : i32 to index
    %c0_152 = arith.constant 0 : index
    %c0_153 = arith.constant 0 : index
    %527 = vector.load %arg10[%526, %c0_152, %c0_153] : memref<8x8x128xf32, #tpu.memory_space<vmem>>, vector<1x8x128xf32>
    %528 = vector.shape_cast %527 : vector<1x8x128xf32> to vector<8x128xf32>
    %529 = vector.shape_cast %525 : vector<8x128xf32> to vector<1x8x128xf32>
    tpu.vector_store %arg10[%526, %c0_152, %c0_153], %529 {strides = array<i32>} : memref<8x8x128xf32, #tpu.memory_space<vmem>>, vector<1x8x128xf32>,
    %c8_i32 = arith.constant 8 : i32
    %c0_154 = arith.constant 0 : index
    %c0_155 = arith.constant 0 : index
    %c0_156 = arith.constant 0 : index
    %530 = vector.load %arg10[%c0_154, %c0_155, %c0_156] : memref<8x8x128xf32, #tpu.memory_space<vmem>>, vector<8x8x128xf32>
    %531 = vector.shape_cast %530 : vector<8x8x128xf32> to vector<64x128xf32>
    %c0_157 = arith.constant 0 : index
    %c0_158 = arith.constant 0 : index
    %532 = vector.load %arg6[%c0_157, %c0_158] : memref<128x128xf32, #tpu.memory_space<vmem>>, vector<128x128xf32>
    %cst_159 = arith.constant dense<0.000000e+00> : vector<64x128xf32>
    %533 = tpu.matmul %531, %532, %cst_159 {dimension_numbers = #tpu.dot_dimension_numbers<[1], [0], [0], [1], [0, 0, 1, 1], [], []>} : vector<64x128xf32>, vector<128x128xf32>, vector<64x128xf32> -> vector<64x128xf32>
    %c0_160 = arith.constant 0 : index
    %c0_161 = arith.constant 0 : index
    %534 = vector.load %arg7[%c0_160, %c0_161] : memref<1x128xf32, #tpu.memory_space<vmem>>, vector<1x128xf32>
    %535 = vector.broadcast %534 : vector<1x128xf32> to vector<64x128xf32>
    %536 = arith.addf %533, %535 : vector<64x128xf32>
    %537 = vector.shape_cast %536 : vector<64x128xf32> to vector<8x8x128xf32>
    %c0_162 = arith.constant 0 : index
    %c0_163 = arith.constant 0 : index
    %c0_164 = arith.constant 0 : index
    %538 = vector.load %arg8[%c0_162, %c0_163, %c0_164] : memref<8x8x128xf32, #tpu.memory_space<vmem>>, vector<8x8x128xf32>
    tpu.vector_store %arg8[%c0_162, %c0_163, %c0_164], %537 {strides = array<i32>} : memref<8x8x128xf32, #tpu.memory_space<vmem>>, vector<8x8x128xf32>,
    return
  }
}

</mosaic_0001>

<bundles_post_ra>
// kernel: lstm_forward.1
= control target key start
LH: loop header
LB: loop body
LE: loop exit
PB: predicated region body
PF: predicated region fallthrough
CT: control target
= control target key end

     0   :  { %v11509_v3 = vmov 0.0   ;;  %s11500_s1 = inlined_call_operand.vmem [shape: f32[128,512], index: 1, kind: input, shape index: {}]   ;;  %s11501_s3 = inlined_call_operand.vmem [shape: f32[128,512], index: 3, kind: input, shape index: {}]   ;;  %s11502_s0 = inlined_call_operand.vmem [shape: f32[8,8,128], index: 0, kind: input, shape index: {}]   ;;  %s11503_s4 = inlined_call_operand.vmem [shape: f32[256,512], index: 4, kind: input, shape index: {}]   ;;  %s11504_s2 = inlined_call_operand.vmem [shape: f32[1,512], index: 2, kind: input, shape index: {}]   ;;  %s11505_s5 = inlined_call_operand.vmem [shape: f32[8,512], index: 5, kind: input, shape index: {}]   ;;  %s11506_s6 = inlined_call_operand.vmem [shape: f32[128,128], index: 6, kind: input, shape index: {}]   ;;  %s11507_s7 = inlined_call_operand.vmem [shape: f32[1,128], index: 7, kind: input, shape index: {}]   ;;  %s11508_s8 = inlined_call_operand.vmem [shape: f32[8,8,128], index: 8, kind: output, shape index: {}]  }
   0x1   :  { %v38_v0 = vld [vmem:[%s11500_s1 + $0x8] sm:$0xff]  ;;  %v37_v2 = vld [vmem:[%s11500_s1] sm:$0xff]  ;;  %187 = vmatprep.mubr.f32.mxu1 %v11509_v3  ;;  %513 = vmatprep.mubr.f32.mxu0 %v11509_v3 }
   0x2   :  { %v42_v1 = vld [vmem:[%s11500_s1 + $0x28] sm:$0xff]  ;;  %v41_v5 = vld [vmem:[%s11500_s1 + $0x20] sm:$0xff] }
   0x3   :  { %v4956_v4 = vpack.c.bf16 %v42_v1, %v38_v0  ;;  %v386_v6 = vld [vmem:[%s11501_s3 + $0x8] sm:$0xff]  ;;  %v4958_v8 = vpack.c.bf16 %v41_v5, %v37_v2  ;;  %v385_v10 = vld [vmem:[%s11501_s3] sm:$0xff] }
   0x4   :  { %v390_v7 = vld [vmem:[%s11501_s3 + $0x28] sm:$0xff]  ;;  %v389_v11 = vld [vmem:[%s11501_s3 + $0x20] sm:$0xff] }
   0x5   :  { %v5020_v9 = vpack.c.bf16 %v390_v7, %v386_v6  ;;  %v46_v12 = vld [vmem:[%s11500_s1 + $0x48] sm:$0xff]  ;;  %4957 = vmatprep.subr.bf16.mxu1 %v4956_v4  ;;  %v5022_v13 = vpack.c.bf16 %v389_v11, %v385_v10  ;;  %v45_v15 = vld [vmem:[%s11500_s1 + $0x40] sm:$0xff] }
   0x6   :  { %v50_v14 = vld [vmem:[%s11500_s1 + $0x68] sm:$0xff]  ;;  %v49_v16 = vld [vmem:[%s11500_s1 + $0x60] sm:$0xff]  ;;  %4959 = vmatpush1.bf16.msra.mxu1 %v4958_v8 }
   0x7   :  { %5021 = vmatprep.subr.bf16.mxu0 %v5020_v9  ;;  %v4960_v17 = vpack.c.bf16 %v50_v14, %v46_v12  ;;  %v4962_v18 = vpack.c.bf16 %v49_v16, %v45_v15  ;;  %v394_v19 = vld [vmem:[%s11501_s3 + $0x48] sm:$0xff]  ;;  %v393_v21 = vld [vmem:[%s11501_s3 + $0x40] sm:$0xff] }
   0x8   :  { %v398_v20 = vld [vmem:[%s11501_s3 + $0x68] sm:$0xff]  ;;  %5023 = vmatpush1.bf16.msra.mxu0 %v5022_v13  ;;  %v397_v23 = vld [vmem:[%s11501_s3 + $0x60] sm:$0xff] }
   0x9   :  { %v5024_v22 = vpack.c.bf16 %v398_v20, %v394_v19  ;;  %v54_v24 = vld [vmem:[%s11500_s1 + $0x88] sm:$0xff]  ;;  %4961 = vmatprep.subr.bf16.mxu1 %v4960_v17  ;;  %v5026_v26 = vpack.c.bf16 %v397_v23, %v393_v21  ;;  %v53_v28 = vld [vmem:[%s11500_s1 + $0x80] sm:$0xff] }
   0xa   :  { %v58_v25 = vld [vmem:[%s11500_s1 + $0xa8] sm:$0xff]  ;;  %v57_v29 = vld [vmem:[%s11500_s1 + $0xa0] sm:$0xff]  ;;  %4963 = vmatpush1.bf16.msra.mxu1 %v4962_v18 }
   0xb   :  { %v4964_v27 = vpack.c.bf16 %v58_v25, %v54_v24  ;;  %v402_v30 = vld [vmem:[%s11501_s3 + $0x88] sm:$0xff]  ;;  %5025 = vmatprep.subr.bf16.mxu0 %v5024_v22  ;;  %v401_v32 = vld [vmem:[%s11501_s3 + $0x80] sm:$0xff]  ;;  %v4966_v34 = vpack.c.bf16 %v57_v29, %v53_v28 }
   0xc   :  { %v406_v31 = vld [vmem:[%s11501_s3 + $0xa8] sm:$0xff]  ;;  %v405_v33 = vld [vmem:[%s11501_s3 + $0xa0] sm:$0xff]  ;;  %5027 = vmatpush1.bf16.msra.mxu0 %v5026_v26 }
   0xd   :  { %v5028_v35 = vpack.c.bf16 %v406_v31, %v402_v30  ;;  %v62_v36 = vld [vmem:[%s11500_s1 + $0xc8] sm:$0xff]  ;;  %v61_v38 = vld [vmem:[%s11500_s1 + $0xc0] sm:$0xff]  ;;  %4965 = vmatprep.subr.bf16.mxu1 %v4964_v27  ;;  %v5030_v39 = vpack.c.bf16 %v405_v33, %v401_v32  ;;  %v40_v32 = vld [vmem:[%s11500_s1 + $0x18] sm:$0xff] }
   0xe   :  { %v66_v37 = vld [vmem:[%s11500_s1 + $0xe8] sm:$0xff]  ;;  %v65_v41 = vld [vmem:[%s11500_s1 + $0xe0] sm:$0xff]  ;;  %4967 = vmatpush1.bf16.msra.mxu1 %v4966_v34  ;;  %v44_v33 = vld [vmem:[%s11500_s1 + $0x38] sm:$0xff] }
   0xf   :  { %v4968_v40 = vpack.c.bf16 %v66_v37, %v62_v36  ;;  %v410_v42 = vld [vmem:[%s11501_s3 + $0xc8] sm:$0xff]  ;;  %5029 = vmatprep.subr.bf16.mxu0 %v5028_v35  ;;  %v409_v45 = vld [vmem:[%s11501_s3 + $0xc0] sm:$0xff]  ;;  %v4970_v49 = vpack.c.bf16 %v65_v41, %v61_v38  ;;  %v4988_v36 = vpack.c.bf16 %v44_v33, %v40_v32  ;;  %v39_v37 = vld [vmem:[%s11500_s1 + $0x10] sm:$0xff] }
  0x10   :  { %v414_v43 = vld [vmem:[%s11501_s3 + $0xe8] sm:$0xff]  ;;  %v413_v46 = vld [vmem:[%s11501_s3 + $0xe0] sm:$0xff]  ;;  %5031 = vmatpush1.bf16.msra.mxu0 %v5030_v39  ;;  %v43_v38 = vld [vmem:[%s11500_s1 + $0x30] sm:$0xff] }
  0x11   :  { %v5032_v44 = vpack.c.bf16 %v414_v43, %v410_v42  ;;  %v70_v47 = vld [vmem:[%s11500_s1 + $0x108] sm:$0xff]  ;;  %4969 = vmatprep.subr.bf16.mxu1 %v4968_v40  ;;  %v5034_v52 = vpack.c.bf16 %v413_v46, %v409_v45  ;;  %v69_v54 = vld [vmem:[%s11500_s1 + $0x100] sm:$0xff]  ;;  %v48_v39 = vld [vmem:[%s11500_s1 + $0x58] sm:$0xff]  ;;  %v4990_v42 = vpack.c.bf16 %v43_v38, %v39_v37 }
  0x12   :  { %v74_v48 = vld [vmem:[%s11500_s1 + $0x128] sm:$0xff]  ;;  %v73_v55 = vld [vmem:[%s11500_s1 + $0x120] sm:$0xff]  ;;  %4971 = vmatpush1.bf16.msra.mxu1 %v4970_v49  ;;  %v52_v40 = vld [vmem:[%s11500_s1 + $0x78] sm:$0xff] }
  0x13   :  { %v418_v50 = vld [vmem:[%s11501_s3 + $0x108] sm:$0xff]  ;;  %v4972_v53 = vpack.c.bf16 %v74_v48, %v70_v47  ;;  %v417_v56 = vld [vmem:[%s11501_s3 + $0x100] sm:$0xff]  ;;  %5033 = vmatprep.subr.bf16.mxu0 %v5032_v44  ;;  %v4974_v63 = vpack.c.bf16 %v73_v55, %v69_v54  ;;  %v4992_v43 = vpack.c.bf16 %v52_v40, %v48_v39  ;;  %v47_v44 = vld [vmem:[%s11500_s1 + $0x50] sm:$0xff] }
  0x14   :  { %v422_v51 = vld [vmem:[%s11501_s3 + $0x128] sm:$0xff]  ;;  %v421_v58 = vld [vmem:[%s11501_s3 + $0x120] sm:$0xff]  ;;  %5035 = vmatpush1.bf16.msra.mxu0 %v5034_v52  ;;  %v51_v45 = vld [vmem:[%s11500_s1 + $0x70] sm:$0xff] }
  0x15   :  { %v5036_v57 = vpack.c.bf16 %v422_v51, %v418_v50  ;;  %v78_v59 = vld [vmem:[%s11500_s1 + $0x148] sm:$0xff]  ;;  %4973 = vmatprep.subr.bf16.mxu1 %v4972_v53  ;;  %v5038_v0 = vpack.c.bf16 %v421_v58, %v417_v56  ;;  %v77_v2 = vld [vmem:[%s11500_s1 + $0x140] sm:$0xff]  ;;  %v56_v46 = vld [vmem:[%s11500_s1 + $0x98] sm:$0xff]  ;;  %v4994_v49 = vpack.c.bf16 %v51_v45, %v47_v44 }
  0x16   :  { %v82_v60 = vld [vmem:[%s11500_s1 + $0x168] sm:$0xff]  ;;  %v81_v4 = vld [vmem:[%s11500_s1 + $0x160] sm:$0xff]  ;;  %4975 = vmatpush1.bf16.msra.mxu1 %v4974_v63  ;;  %v60_v47 = vld [vmem:[%s11500_s1 + $0xb8] sm:$0xff] }
  0x17   :  { %v426_v61 = vld [vmem:[%s11501_s3 + $0x148] sm:$0xff]  ;;  %v4976_v1 = vpack.c.bf16 %v82_v60, %v78_v59  ;;  %v425_v5 = vld [vmem:[%s11501_s3 + $0x140] sm:$0xff]  ;;  %5037 = vmatprep.subr.bf16.mxu0 %v5036_v57  ;;  %v4978_v12 = vpack.c.bf16 %v81_v4, %v77_v2  ;;  %v4996_v50 = vpack.c.bf16 %v60_v47, %v56_v46  ;;  %v55_v51 = vld [vmem:[%s11500_s1 + $0x90] sm:$0xff] }
  0x18   :  { %v430_v62 = vld [vmem:[%s11501_s3 + $0x168] sm:$0xff]  ;;  %v429_v7 = vld [vmem:[%s11501_s3 + $0x160] sm:$0xff]  ;;  %5039 = vmatpush1.bf16.msra.mxu0 %v5038_v0  ;;  %v59_v52 = vld [vmem:[%s11500_s1 + $0xb0] sm:$0xff] }
  0x19   :  { %v5040_v6 = vpack.c.bf16 %v430_v62, %v426_v61  ;;  %v86_v8 = vld [vmem:[%s11500_s1 + $0x188] sm:$0xff]  ;;  %4977 = vmatprep.subr.bf16.mxu1 %v4976_v1  ;;  %v5042_v13 = vpack.c.bf16 %v429_v7, %v425_v5  ;;  %v85_v15 = vld [vmem:[%s11500_s1 + $0x180] sm:$0xff]  ;;  %v64_v53 = vld [vmem:[%s11500_s1 + $0xd8] sm:$0xff]  ;;  %v4998_v56 = vpack.c.bf16 %v59_v52, %v55_v51 }
  0x1a   :  { %v90_v9 = vld [vmem:[%s11500_s1 + $0x1a8] sm:$0xff]  ;;  %v89_v16 = vld [vmem:[%s11500_s1 + $0x1a0] sm:$0xff]  ;;  %4979 = vmatpush1.bf16.msra.mxu1 %v4978_v12  ;;  %v68_v54 = vld [vmem:[%s11500_s1 + $0xf8] sm:$0xff] }
  0x1b   :  { %v434_v10 = vld [vmem:[%s11501_s3 + $0x188] sm:$0xff]  ;;  %v4980_v14 = vpack.c.bf16 %v90_v9, %v86_v8  ;;  %v433_v17 = vld [vmem:[%s11501_s3 + $0x180] sm:$0xff]  ;;  %5041 = vmatprep.subr.bf16.mxu0 %v5040_v6  ;;  %v4982_v24 = vpack.c.bf16 %v89_v16, %v85_v15  ;;  %v7210_v55 = vld [vmem:[%s11502_s0 + $0x10] sm:$0xff]  ;;  %v5000_v57 = vpack.c.bf16 %v68_v54, %v64_v53 }
  0x1c   :  { %v438_v11 = vld [vmem:[%s11501_s3 + $0x1a8] sm:$0xff]  ;;  %v437_v19 = vld [vmem:[%s11501_s3 + $0x1a0] sm:$0xff]  ;;  %5043 = vmatpush1.bf16.msra.mxu0 %v5042_v13  ;;  %v63_v58 = vld [vmem:[%s11500_s1 + $0xd0] sm:$0xff] }
  0x1d   :  { %v5044_v18 = vpack.c.bf16 %v438_v11, %v434_v10  ;;  %v94_v20 = vld [vmem:[%s11500_s1 + $0x1c8] sm:$0xff]  ;;  %4981 = vmatprep.subr.bf16.mxu1 %v4980_v14  ;;  %v5046_v25 = vpack.c.bf16 %v437_v19, %v433_v17  ;;  %v93_v27 = vld [vmem:[%s11500_s1 + $0x1c0] sm:$0xff]  ;;  %v67_v59 = vld [vmem:[%s11500_s1 + $0xf0] sm:$0xff] }
  0x1e   :  { %v98_v21 = vld [vmem:[%s11500_s1 + $0x1e8] sm:$0xff]  ;;  %v97_v28 = vld [vmem:[%s11500_s1 + $0x1e0] sm:$0xff]  ;;  %4983 = vmatpush1.bf16.msra.mxu1 %v4982_v24  ;;  %v72_v60 = vld [vmem:[%s11500_s1 + $0x118] sm:$0xff]  ;;  %v5002_v63 = vpack.c.bf16 %v67_v59, %v63_v58 }
  0x1f   :  { %v442_v22 = vld [vmem:[%s11501_s3 + $0x1c8] sm:$0xff]  ;;  %v4984_v26 = vpack.c.bf16 %v98_v21, %v94_v20  ;;  %v441_v29 = vld [vmem:[%s11501_s3 + $0x1c0] sm:$0xff]  ;;  %5045 = vmatprep.subr.bf16.mxu0 %v5044_v18  ;;  %v4986_v34 = vpack.c.bf16 %v97_v28, %v93_v27  ;;  %v76_v61 = vld [vmem:[%s11500_s1 + $0x138] sm:$0xff] }
  0x20   :  { %v446_v23 = vld [vmem:[%s11501_s3 + $0x1e8] sm:$0xff]  ;;  %v445_v31 = vld [vmem:[%s11501_s3 + $0x1e0] sm:$0xff]  ;;  %5047 = vmatpush1.bf16.msra.mxu0 %v5046_v25  ;;  %v7229_v62 = vld [vmem:[%s11502_s0 + $0x18] sm:$0xff]  ;;  %v5004_v0 = vpack.c.bf16 %v76_v61, %v72_v60 }
  0x21   :  { %v5048_v30 = vpack.c.bf16 %v446_v23, %v442_v22  ;;  %4985 = vmatprep.subr.bf16.mxu1 %v4984_v26  ;;  %v5050_v35 = vpack.c.bf16 %v445_v31, %v441_v29  ;;  %v7170_v41 = vld [vmem:[%s11502_s0] sm:$0xff]  ;;  %v7189_v48 = vld [vmem:[%s11502_s0 + $0x8] sm:$0xff]  ;;  %v71_v1 = vld [vmem:[%s11500_s1 + $0x110] sm:$0xff] }
  0x22   :  { %4987 = vmatpush1.bf16.msra.mxu1 %v4986_v34  ;;  %v75_v2 = vld [vmem:[%s11500_s1 + $0x130] sm:$0xff]  ;;  %v80_v4 = vld [vmem:[%s11500_s1 + $0x158] sm:$0xff]  ;;  %v7248_v6 = vld [vmem:[%s11502_s0 + $0x20] sm:$0xff] }
  0x23   :  { %5049 = vmatprep.subr.bf16.mxu0 %v5048_v30  ;;  %4989 = vmatprep.subr.bf16.mxu1 %v4988_v36  ;;  %v84_v5 = vld [vmem:[%s11500_s1 + $0x178] sm:$0xff]  ;;  %v5006_v7 = vpack.c.bf16 %v75_v2, %v71_v1  ;;  %v79_v9 = vld [vmem:[%s11500_s1 + $0x150] sm:$0xff]  ;;  %v7267_v13 = vld [vmem:[%s11502_s0 + $0x28] sm:$0xff] }
  0x24   :  { %5051 = vmatpush1.bf16.msra.mxu0 %v5050_v35  ;;  %v5008_v8 = vpack.c.bf16 %v84_v5, %v80_v4  ;;  %v83_v10 = vld [vmem:[%s11500_s1 + $0x170] sm:$0xff]  ;;  %v88_v11 = vld [vmem:[%s11500_s1 + $0x198] sm:$0xff] }
  0x25   :  { %188 = vmatmul.mubr.f32.vlgmr.msra.gmra.mrb[0].mxu1 %v7170_v41  ;;  %v92_v12 = vld [vmem:[%s11500_s1 + $0x1b8] sm:$0xff]  ;;  %v5010_v14 = vpack.c.bf16 %v83_v10, %v79_v9  ;;  %v87_v16 = vld [vmem:[%s11500_s1 + $0x190] sm:$0xff] }
  0x26   :  { %4991 = vmatpush1.bf16.msra.mxu1 %v4990_v42  ;;  %193 = vmatprep.mubr.f32.mxu1 %v11509_v3  ;;  %v5012_v15 = vpack.c.bf16 %v92_v12, %v88_v11  ;;  %v91_v17 = vld [vmem:[%s11500_s1 + $0x1b0] sm:$0xff]  ;;  %v96_v18 = vld [vmem:[%s11500_s1 + $0x1d8] sm:$0xff]  ;;  %v620_v12 = vld [vmem:[%s11503_s4 + $0x8] sm:$0xff] }
  0x27   :  { %514 = vmatmul.mubr.f32.vlgmr.msra.gmra.mrb[0].mxu0 %v11509_v3  ;;  %4993 = vmatprep.subr.bf16.mxu1 %v4992_v43  ;;  %v100_v19 = vld [vmem:[%s11500_s1 + $0x1f8] sm:$0xff]  ;;  %v7286_v20 = vld [vmem:[%s11502_s0 + $0x30] sm:$0xff]  ;;  %v5014_v21 = vpack.c.bf16 %v91_v17, %v87_v16  ;;  %v619_v17 = vld [vmem:[%s11503_s4] sm:$0xff] }
  0x28   :  { %815 = vmatprep.mubr.f32.mxu0 %v11509_v3  ;;  %v5016_v22 = vpack.c.bf16 %v100_v19, %v96_v18  ;;  %v95_v23 = vld [vmem:[%s11500_s1 + $0x1d0] sm:$0xff]  ;;  %v388_v25 = vld [vmem:[%s11501_s3 + $0x18] sm:$0xff]  ;;  %v623_v18 = vld [vmem:[%s11503_s4 + $0x20] sm:$0xff] }
  0x29   :  { %194 = vmatmul.mubr.f32.gmra.mrb[2].mxu1 %v7189_v48  ;;  %v99_v24 = vld [vmem:[%s11500_s1 + $0x1f0] sm:$0xff]  ;;  %v392_v26 = vld [vmem:[%s11501_s3 + $0x38] sm:$0xff] }
  0x2a   :  { %4995 = vmatpush1.bf16.msra.mxu1 %v4994_v49  ;;  %199 = vmatprep.mubr.f32.mxu1 %v11509_v3  ;;  %v7305_v27 = vld [vmem:[%s11502_s0 + $0x38] sm:$0xff]  ;;  %v5018_v28 = vpack.c.bf16 %v99_v24, %v95_v23  ;;  %v7307_v29 = vpack.c.bf16 %v392_v26, %v388_v25  ;;  %v387_v30 = vld [vmem:[%s11501_s3 + $0x10] sm:$0xff]  ;;  %v628_v24 = vld [vmem:[%s11503_s4 + $0x48] sm:$0xff] }
  0x2b   :  { %4997 = vmatprep.subr.bf16.mxu1 %v4996_v50  ;;  %v391_v31 = vld [vmem:[%s11501_s3 + $0x30] sm:$0xff]  ;;  %v396_v32 = vld [vmem:[%s11501_s3 + $0x58] sm:$0xff]  ;;  %v632_v25 = vld [vmem:[%s11503_s4 + $0x68] sm:$0xff] }
  0x2c   :  { %v400_v33 = vld [vmem:[%s11501_s3 + $0x78] sm:$0xff]  ;;  %v7323_v34 = vpack.c.bf16 %v391_v31, %v387_v30  ;;  %v395_v36 = vld [vmem:[%s11501_s3 + $0x50] sm:$0xff]  ;;  %v627_v30 = vld [vmem:[%s11503_s4 + $0x40] sm:$0xff] }
  0x2d   :  { %200 = vmatmul.mubr.f32.gmra.mrb[4].mxu1 %v7210_v55  ;;  %v7326_v35 = vpack.c.bf16 %v400_v33, %v396_v32  ;;  %v399_v37 = vld [vmem:[%s11501_s3 + $0x70] sm:$0xff]  ;;  %v404_v38 = vld [vmem:[%s11501_s3 + $0x98] sm:$0xff]  ;;  %v631_v31 = vld [vmem:[%s11503_s4 + $0x60] sm:$0xff] }
  0x2e   :  { %4999 = vmatpush1.bf16.msra.mxu1 %v4998_v56  ;;  %205 = vmatprep.mubr.f32.mxu1 %v11509_v3  ;;  %v408_v39 = vld [vmem:[%s11501_s3 + $0xb8] sm:$0xff]  ;;  %v7343_v40 = vpack.c.bf16 %v399_v37, %v395_v36  ;;  %v403_v43 = vld [vmem:[%s11501_s3 + $0x90] sm:$0xff]  ;;  %v7523_v33 = vpack.c.bf16 %v631_v31, %v627_v30  ;;  %v664_v30 = vld [vmem:[%s11503_s4 + $0x168] sm:$0xff] }
  0x2f   :  { %5001 = vmatprep.subr.bf16.mxu1 %v5000_v57  ;;  %v7346_v42 = vpack.c.bf16 %v408_v39, %v404_v38  ;;  %v407_v44 = vld [vmem:[%s11501_s3 + $0xb0] sm:$0xff]  ;;  %v416_v45 = vld [vmem:[%s11501_s3 + $0xf8] sm:$0xff]  ;;  %v636_v38 = vld [vmem:[%s11503_s4 + $0x88] sm:$0xff] }
  0x30   :  { %v7363_v46 = vpack.c.bf16 %v407_v44, %v403_v43  ;;  %v411_v49 = vld [vmem:[%s11501_s3 + $0xd0] sm:$0xff]  ;;  %v424_v51 = vld [vmem:[%s11501_s3 + $0x138] sm:$0xff]  ;;  %v640_v43 = vld [vmem:[%s11503_s4 + $0xa8] sm:$0xff] }
  0x31   :  { %206 = vmatmul.mubr.f32.gmra.mrb[6].mxu1 %v7229_v62  ;;  %v415_v50 = vld [vmem:[%s11501_s3 + $0xf0] sm:$0xff]  ;;  %v432_v57 = vld [vmem:[%s11501_s3 + $0x178] sm:$0xff] }
  0x32   :  { %5003 = vmatpush1.bf16.msra.mxu1 %v5002_v63  ;;  %211 = vmatprep.mubr.f32.mxu1 %v11509_v3  ;;  %v7383_v52 = vpack.c.bf16 %v415_v50, %v411_v49  ;;  %v419_v54 = vld [vmem:[%s11501_s3 + $0x110] sm:$0xff]  ;;  %v440_v63 = vld [vmem:[%s11501_s3 + $0x1b8] sm:$0xff]  ;;  %v635_v50 = vld [vmem:[%s11503_s4 + $0x80] sm:$0xff] }
  0x33   :  { %5005 = vmatprep.subr.bf16.mxu1 %v5004_v0  ;;  %v423_v56 = vld [vmem:[%s11501_s3 + $0x130] sm:$0xff]  ;;  %v444_v5 = vld [vmem:[%s11501_s3 + $0x1d8] sm:$0xff] }
  0x34   :  { %v7403_v58 = vpack.c.bf16 %v423_v56, %v419_v54  ;;  %v427_v60 = vld [vmem:[%s11501_s3 + $0x150] sm:$0xff]  ;;  %v626_v16 = vld [vmem:[%s11503_s4 + $0x38] sm:$0xff] }
  0x35   :  { %212 = vmatmul.mubr.f32.gmra.mrb[8].mxu1 %v7248_v6  ;;  %v431_v61 = vld [vmem:[%s11501_s3 + $0x170] sm:$0xff]  ;;  %v630_v26 = vld [vmem:[%s11503_s4 + $0x58] sm:$0xff] }
  0x36   :  { %5007 = vmatpush1.bf16.msra.mxu1 %v5006_v7  ;;  %217 = vmatprep.mubr.f32.mxu1 %v11509_v3  ;;  %v7423_v0 = vpack.c.bf16 %v431_v61, %v427_v60  ;;  %v435_v2 = vld [vmem:[%s11501_s3 + $0x190] sm:$0xff]  ;;  %v638_v44 = vld [vmem:[%s11503_s4 + $0x98] sm:$0xff] }
  0x37   :  { %5009 = vmatprep.subr.bf16.mxu1 %v5008_v8  ;;  %v439_v4 = vld [vmem:[%s11501_s3 + $0x1b0] sm:$0xff]  ;;  %v662_v31 = vld [vmem:[%s11503_s4 + $0x158] sm:$0xff] }
  0x38   :  { %v7443_v7 = vpack.c.bf16 %v439_v4, %v435_v2  ;;  %v443_v9 = vld [vmem:[%s11501_s3 + $0x1d0] sm:$0xff]  ;;  %v643_v2 = vld [vmem:[%s11503_s4 + $0xc0] sm:$0xff] }
  0x39   :  { %218 = vmatmul.mubr.f32.gmra.mrb[10].mxu1 %v7267_v13  ;;  %v447_v10 = vld [vmem:[%s11501_s3 + $0x1f0] sm:$0xff] }
  0x3a   :  { %5011 = vmatpush1.bf16.msra.mxu1 %v5010_v14  ;;  %223 = vmatprep.mubr.f32.mxu1 %v11509_v3  ;;  %v7457_v11 = vpack.c.bf16 %v447_v10, %v443_v9  ;;  %v622_v14 = vld [vmem:[%s11503_s4 + $0x18] sm:$0xff]  ;;  %v629_v36 = vld [vmem:[%s11503_s4 + $0x50] sm:$0xff] }
  0x3b   :  { %5013 = vmatprep.subr.bf16.mxu1 %v5012_v15  ;;  %v7485_v19 = vpack.c.bf16 %v626_v16, %v622_v14  ;;  %v633_v37 = vld [vmem:[%s11503_s4 + $0x70] sm:$0xff]  ;;  %v654_v14 = vld [vmem:[%s11503_s4 + $0x118] sm:$0xff] }
  0x3c   :  { %v7535_v39 = vpack.c.bf16 %v633_v37, %v629_v36  ;;  %v641_v56 = vld [vmem:[%s11503_s4 + $0xb0] sm:$0xff]  ;;  %v666_v36 = vld [vmem:[%s11503_s4 + $0x178] sm:$0xff] }
  0x3d   :  { %224 = vmatmul.mubr.f32.gmra.mrb[12].mxu1 %v7286_v20  ;;  %v649_v9 = vld [vmem:[%s11503_s4 + $0xf0] sm:$0xff] }
  0x3e   :  { %5015 = vmatpush1.bf16.msra.mxu1 %v5014_v21  ;;  %229 = vmatprep.mubr.f32.mxu1 %v11509_v3  ;;  %v621_v21 = vld [vmem:[%s11503_s4 + $0x10] sm:$0xff] }
  0x3f   :  { %5017 = vmatprep.subr.bf16.mxu1 %v5016_v22  ;;  %v625_v22 = vld [vmem:[%s11503_s4 + $0x30] sm:$0xff] }
  0x40   :  { %v7496_v23 = vpack.c.bf16 %v625_v22, %v621_v21  ;;  %v651_v21 = vld [vmem:[%s11503_s4 + $0x100] sm:$0xff] }
  0x41   :  { %230 = vmatmul.mubr.f32.gmra.mrb[14].mxu1 %v7305_v27  ;;  %v655_v22 = vld [vmem:[%s11503_s4 + $0x120] sm:$0xff] }
  0x42   :  { %5019 = vmatpush1.bf16.msra.mxu1 %v5018_v28  ;;  %300 = vmatprep.mubr.f32.mxu1 %v11509_v3  ;;  %v634_v28 = vld [vmem:[%s11503_s4 + $0x78] sm:$0xff]  ;;  %v7648_v37 = vpack.c.bf16 %v655_v22, %v651_v21  ;;  %v680_v21 = vld [vmem:[%s11503_s4 + $0x1e8] sm:$0xff] }
  0x43   :  { %5053 = vmatprep.subr.bf16.mxu1 %v7307_v29  ;;  %v7521_v32 = vpack.c.bf16 %v634_v28, %v630_v26  ;;  %v657_v26 = vld [vmem:[%s11503_s4 + $0x130] sm:$0xff]  ;;  %v660_v28 = vld [vmem:[%s11503_s4 + $0x148] sm:$0xff]  ;;  %v678_v22 = vld [vmem:[%s11503_s4 + $0x1d8] sm:$0xff] }
  0x45   :  { %301 = vmatmul.mubr.f32.vlgmr.msra.gmra.mrb[16].mxu1 %v7170_v41  ;;  %v412_v41 = vld [vmem:[%s11501_s3 + $0xd8] sm:$0xff] }
  0x46   :  { %5055 = vmatpush1.bf16.msra.mxu1 %v7323_v34  ;;  %306 = vmatprep.mubr.f32.mxu1 %v11509_v3  ;;  %v7366_v47 = vpack.c.bf16 %v416_v45, %v412_v41  ;;  %v642_v41 = vld [vmem:[%s11503_s4 + $0xb8] sm:$0xff]  ;;  %v7548_v45 = vpack.c.bf16 %v640_v43, %v636_v38  ;;  %v7654_v43 = vpack.c.bf16 %v664_v30, %v660_v28 }
  0x47   :  { %5057 = vmatprep.subr.bf16.mxu1 %v7326_v35  ;;  %v7550_v49 = vpack.c.bf16 %v642_v41, %v638_v44  ;;  %v659_v44 = vld [vmem:[%s11503_s4 + $0x140] sm:$0xff] }
  0x48   :  { %v663_v41 = vld [vmem:[%s11503_s4 + $0x160] sm:$0xff] }
  0x49   :  { %307 = vmatmul.mubr.f32.gmra.mrb[18].mxu1 %v7189_v48  ;;  %v420_v48 = vld [vmem:[%s11501_s3 + $0x118] sm:$0xff] }
  0x4a   :  { %5059 = vmatpush1.bf16.msra.mxu1 %v7343_v40  ;;  %312 = vmatprep.mubr.f32.mxu1 %v11509_v3  ;;  %v7386_v53 = vpack.c.bf16 %v424_v51, %v420_v48  ;;  %v639_v48 = vld [vmem:[%s11503_s4 + $0xa0] sm:$0xff]  ;;  %v637_v51 = vld [vmem:[%s11503_s4 + $0x90] sm:$0xff] }
  0x4b   :  { %5061 = vmatprep.subr.bf16.mxu1 %v7346_v42  ;;  %v7562_v54 = vpack.c.bf16 %v639_v48, %v635_v50  ;;  %v7575_v60 = vpack.c.bf16 %v641_v56, %v637_v51  ;;  %v661_v50 = vld [vmem:[%s11503_s4 + $0x150] sm:$0xff]  ;;  %v7666_v48 = vpack.c.bf16 %v666_v36, %v662_v31  ;;  %v668_v56 = vld [vmem:[%s11503_s4 + $0x188] sm:$0xff]  ;;  %v675_v31 = vld [vmem:[%s11503_s4 + $0x1c0] sm:$0xff] }
  0x4c   :  { %v665_v51 = vld [vmem:[%s11503_s4 + $0x170] sm:$0xff]  ;;  %v679_v36 = vld [vmem:[%s11503_s4 + $0x1e0] sm:$0xff] }
  0x4d   :  { %313 = vmatmul.mubr.f32.gmra.mrb[20].mxu1 %v7210_v55  ;;  %v428_v55 = vld [vmem:[%s11501_s3 + $0x158] sm:$0xff] }
  0x4e   :  { %5063 = vmatpush1.bf16.msra.mxu1 %v7363_v46  ;;  %318 = vmatprep.mubr.f32.mxu1 %v11509_v3  ;;  %v7406_v59 = vpack.c.bf16 %v432_v57, %v428_v55  ;;  %v644_v55 = vld [vmem:[%s11503_s4 + $0xc8] sm:$0xff] }
  0x4f   :  { %5065 = vmatprep.subr.bf16.mxu1 %v7366_v47  ;;  %v648_v57 = vld [vmem:[%s11503_s4 + $0xe8] sm:$0xff] }
  0x50   :  { %v7577_v61 = vpack.c.bf16 %v648_v57, %v644_v55  ;;  %v672_v55 = vld [vmem:[%s11503_s4 + $0x1a8] sm:$0xff]  ;;  %v670_v57 = vld [vmem:[%s11503_s4 + $0x198] sm:$0xff] }
  0x51   :  { %319 = vmatmul.mubr.f32.gmra.mrb[22].mxu1 %v7229_v62  ;;  %v436_v62 = vld [vmem:[%s11501_s3 + $0x198] sm:$0xff] }
  0x52   :  { %5067 = vmatpush1.bf16.msra.mxu1 %v7383_v52  ;;  %324 = vmatprep.mubr.f32.mxu1 %v11509_v3  ;;  %v7426_v1 = vpack.c.bf16 %v440_v63, %v436_v62  ;;  %v646_v62 = vld [vmem:[%s11503_s4 + $0xd8] sm:$0xff] }
  0x53   :  { %5069 = vmatprep.subr.bf16.mxu1 %v7386_v53  ;;  %v650_v63 = vld [vmem:[%s11503_s4 + $0xf8] sm:$0xff] }
  0x54   :  { %v7588_v4 = vpack.c.bf16 %v650_v63, %v646_v62  ;;  %v674_v62 = vld [vmem:[%s11503_s4 + $0x1b8] sm:$0xff]  ;;  %v7684_v63 = vpack.c.bf16 %v663_v41, %v659_v44  ;;  %v677_v44 = vld [vmem:[%s11503_s4 + $0x1d0] sm:$0xff] }
  0x55   :  { %325 = vmatmul.mubr.f32.gmra.mrb[24].mxu1 %v7248_v6  ;;  %v448_v6 = vld [vmem:[%s11501_s3 + $0x1f8] sm:$0xff] }
  0x56   :  { %5071 = vmatpush1.bf16.msra.mxu1 %v7403_v58  ;;  %330 = vmatprep.mubr.f32.mxu1 %v11509_v3  ;;  %v7446_v8 = vpack.c.bf16 %v448_v6, %v444_v5  ;;  %v647_v5 = vld [vmem:[%s11503_s4 + $0xe0] sm:$0xff]  ;;  %v645_v6 = vld [vmem:[%s11503_s4 + $0xd0] sm:$0xff] }
  0x57   :  { %5073 = vmatprep.subr.bf16.mxu1 %v7406_v59  ;;  %v7600_v10 = vpack.c.bf16 %v647_v5, %v643_v2  ;;  %v7613_v16 = vpack.c.bf16 %v649_v9, %v645_v6  ;;  %v7688_v2 = vpack.c.bf16 %v665_v51, %v661_v50  ;;  %v7690_v5 = vpack.c.bf16 %v672_v55, %v668_v56  ;;  %v667_v6 = vld [vmem:[%s11503_s4 + $0x180] sm:$0xff]  ;;  %v681_v50 = vld [vmem:[%s11503_s4 + $0x1f0] sm:$0xff]  ;;  %v684_v51 = vld [vmem:[%s11503_s4 + $0x208] sm:$0xff] }
  0x58   :  { %v671_v9 = vld [vmem:[%s11503_s4 + $0x1a0] sm:$0xff]  ;;  %v688_v56 = vld [vmem:[%s11503_s4 + $0x228] sm:$0xff]  ;;  %v686_v55 = vld [vmem:[%s11503_s4 + $0x218] sm:$0xff] }
  0x59   :  { %331 = vmatmul.mubr.f32.gmra.mrb[26].mxu1 %v7267_v13  ;;  %v624_v13 = vld [vmem:[%s11503_s4 + $0x28] sm:$0xff] }
  0x5a   :  { %5075 = vmatpush1.bf16.msra.mxu1 %v7423_v0  ;;  %336 = vmatprep.mubr.f32.mxu1 %v11509_v3  ;;  %v7474_v15 = vpack.c.bf16 %v624_v13, %v620_v12  ;;  %v652_v12 = vld [vmem:[%s11503_s4 + $0x108] sm:$0xff] }
  0x5b   :  { %5077 = vmatprep.subr.bf16.mxu1 %v7426_v1  ;;  %v656_v13 = vld [vmem:[%s11503_s4 + $0x128] sm:$0xff] }
  0x5c   :  { %5085 = vmatprep.subr.bf16.mxu0 %v7474_v15 }
  0x5d   :  { %337 = vmatmul.mubr.f32.gmra.mrb[28].mxu1 %v7286_v20  ;;  %v7487_v20 = vpack.c.bf16 %v623_v18, %v619_v17  ;;  %v7615_v17 = vpack.c.bf16 %v656_v13, %v652_v12  ;;  %v658_v18 = vld [vmem:[%s11503_s4 + $0x138] sm:$0xff]  ;;  %v669_v12 = vld [vmem:[%s11503_s4 + $0x190] sm:$0xff]  ;;  %v7702_v13 = vpack.c.bf16 %v674_v62, %v670_v57  ;;  %v7756_v62 = vpack.c.bf16 %v679_v36, %v675_v31  ;;  %v692_v36 = vld [vmem:[%s11503_s4 + $0x248] sm:$0xff] }
  0x5e   :  { %5079 = vmatpush1.bf16.msra.mxu1 %v7443_v7  ;;  %342 = vmatprep.mubr.f32.mxu1 %v11509_v3  ;;  %v690_v57 = vld [vmem:[%s11503_s4 + $0x238] sm:$0xff] }
  0x5f   :  { %5081 = vmatprep.subr.bf16.mxu1 %v7446_v8  ;;  %5087 = vmatpush1.bf16.msra.mxu0 %v7487_v20  ;;  %11676 = vst [vmem:[#allocation7_spill] sm:$0xff] %v7756_v62 }
  0x61   :  { %343 = vmatmul.mubr.f32.gmra.mrb[30].mxu1 %v7305_v27  ;;  %v7510_v27 = vpack.c.bf16 %v632_v25, %v628_v24  ;;  %v7627_v24 = vpack.c.bf16 %v658_v18, %v654_v14  ;;  %v653_v25 = vld [vmem:[%s11503_s4 + $0x110] sm:$0xff]  ;;  %v676_v18 = vld [vmem:[%s11503_s4 + $0x1c8] sm:$0xff] }
  0x62   :  { %5083 = vmatpush1.bf16.msra.mxu1 %v7457_v11  ;;  %584 = vmatprep.mubr.f32.mxu1 %v11509_v3  ;;  %v7652_v38 = vpack.c.bf16 %v657_v26, %v653_v25  ;;  %v673_v14 = vld [vmem:[%s11503_s4 + $0x1b0] sm:$0xff]  ;;  %v682_v25 = vld [vmem:[%s11503_s4 + $0x1f8] sm:$0xff]  ;;  %v7720_v26 = vpack.c.bf16 %v671_v9, %v667_v6  ;;  %v7726_v30 = vpack.c.bf16 %v680_v21, %v676_v18  ;;  %v687_v18 = vld [vmem:[%s11503_s4 + $0x220] sm:$0xff] }
  0x63   :  { %5149 = vmatprep.subr.bf16.mxu1 %v7485_v19  ;;  %5089 = vmatprep.subr.bf16.mxu0 %v7510_v27  ;;  %v7724_v28 = vpack.c.bf16 %v673_v14, %v669_v12  ;;  %v7738_v41 = vpack.c.bf16 %v682_v25, %v678_v22  ;;  %v7760_v6 = vpack.c.bf16 %v681_v50, %v677_v44  ;;  %v683_v14 = vld [vmem:[%s11503_s4 + $0x200] sm:$0xff]  ;;  %v685_v21 = vld [vmem:[%s11503_s4 + $0x210] sm:$0xff]  ;;  %v696_v44 = vld [vmem:[%s11503_s4 + $0x268] sm:$0xff] }
  0x64   :  { %5091 = vmatpush1.bf16.msra.mxu0 %v7523_v33  ;;  %11674 = vst [vmem:[#allocation5_spill] sm:$0xff] %v7726_v30  ;;  %v7762_v9 = vpack.c.bf16 %v688_v56, %v684_v51  ;;  %v7765_v12 = vpack.c.bf16 %v690_v57, %v686_v55  ;;  %v7780_v22 = vpack.c.bf16 %v687_v18, %v683_v14  ;;  %v689_v25 = vld [vmem:[%s11503_s4 + $0x230] sm:$0xff]  ;;  %v694_v50 = vld [vmem:[%s11503_s4 + $0x258] sm:$0xff]  ;;  %v691_v55 = vld [vmem:[%s11503_s4 + $0x240] sm:$0xff] }
  0x65   :  { %585 = vmatmul.mubr.f32.vlgmr.msra.gmra.mrb[16].mxu1 %v11509_v3  ;;  %5093 = vmatprep.subr.bf16.mxu0 %v7548_v45  ;;  %11673 = vst [vmem:[#allocation4_spill] sm:$0xff] %v7724_v28  ;;  %11675 = vst [vmem:[#allocation6_spill] sm:$0xff] %v7738_v41  ;;  %v7785_v31 = vpack.c.bf16 %v689_v25, %v685_v21  ;;  %v7798_v51 = vpack.c.bf16 %v696_v44, %v692_v36  ;;  %v698_v56 = vld [vmem:[%s11503_s4 + $0x278] sm:$0xff]  ;;  %v695_v57 = vld [vmem:[%s11503_s4 + $0x260] sm:$0xff] }
  0x66   :  { %886 = vmatprep.mubr.f32.mxu1 %v11509_v3  ;;  %5151 = vmatpush1.bf16.msra.mxu1 %v7496_v23  ;;  %11677 = vst [vmem:[#allocation8_spill] sm:$0xff] %v7760_v6  ;;  %11678 = vst [vmem:[#allocation9_spill] sm:$0xff] %v7762_v9  ;;  %v7809_v14 = vpack.c.bf16 %v698_v56, %v694_v50  ;;  %v7811_v18 = vpack.c.bf16 %v695_v57, %v691_v55  ;;  %v693_v21 = vld [vmem:[%s11503_s4 + $0x250] sm:$0xff]  ;;  %v700_v44 = vld [vmem:[%s11503_s4 + $0x288] sm:$0xff] }
  0x67   :  { %5153 = vmatprep.subr.bf16.mxu1 %v7521_v32  ;;  %11679 = vst [vmem:[#allocation10_spill] sm:$0xff] %v7765_v12  ;;  %11680 = vst [vmem:[#allocation11_spill] sm:$0xff] %v7780_v22  ;;  %v697_v25 = vld [vmem:[%s11503_s4 + $0x270] sm:$0xff]  ;;  %v704_v50 = vld [vmem:[%s11503_s4 + $0x2a8] sm:$0xff] }
  0x68   :  { %5095 = vmatpush1.bf16.msra.mxu0 %v7562_v54  ;;  %11681 = vst [vmem:[#allocation12_spill] sm:$0xff] %v7785_v31  ;;  %11682 = vst [vmem:[#allocation13_spill] sm:$0xff] %v7798_v51  ;;  %v7820_v36 = vpack.c.bf16 %v697_v25, %v693_v21  ;;  %v702_v56 = vld [vmem:[%s11503_s4 + $0x298] sm:$0xff]  ;;  %v7834_v55 = vpack.c.bf16 %v704_v50, %v700_v44  ;;  %v699_v21 = vld [vmem:[%s11503_s4 + $0x280] sm:$0xff] }
  0x69   :  { %5097 = vmatprep.subr.bf16.mxu0 %v7577_v61  ;;  %11683 = vst [vmem:[#allocation14_spill] sm:$0xff] %v7809_v14  ;;  %11684 = vst [vmem:[#allocation15_spill] sm:$0xff] %v7811_v18  ;;  %v706_v57 = vld [vmem:[%s11503_s4 + $0x2b8] sm:$0xff]  ;;  %v703_v25 = vld [vmem:[%s11503_s4 + $0x2a0] sm:$0xff] }
  0x6a   :  { %5155 = vmatpush1.bf16.msra.mxu1 %v7535_v39  ;;  %11685 = vst [vmem:[#allocation16_spill] sm:$0xff] %v7820_v36  ;;  %11686 = vst [vmem:[#allocation17_spill] sm:$0xff] %v7834_v55  ;;  %v7845_v3 = vpack.c.bf16 %v706_v57, %v702_v56  ;;  %v701_v44 = vld [vmem:[%s11503_s4 + $0x290] sm:$0xff]  ;;  %v708_v56 = vld [vmem:[%s11503_s4 + $0x2c8] sm:$0xff] }
  0x6b   :  { %5157 = vmatprep.subr.bf16.mxu1 %v7550_v49  ;;  %v705_v50 = vld [vmem:[%s11503_s4 + $0x2b0] sm:$0xff]  ;;  %v712_v57 = vld [vmem:[%s11503_s4 + $0x2e8] sm:$0xff] }
  0x6c   :  { %5099 = vmatpush1.bf16.msra.mxu0 %v7600_v10  ;;  %11687 = vst [vmem:[#allocation18_spill] sm:$0xff] %v7845_v3 }
  0x6d   :  { %5101 = vmatprep.subr.bf16.mxu0 %v7615_v17 }
  0x6e   :  { %5159 = vmatpush1.bf16.msra.mxu1 %v7575_v60 }
  0x6f   :  { %5161 = vmatprep.subr.bf16.mxu1 %v7588_v4 }
  0x70   :  { %5103 = vmatpush1.bf16.msra.mxu0 %v7648_v37 }
  0x71   :  { %5105 = vmatprep.subr.bf16.mxu0 %v7654_v43 }
  0x72   :  { %5163 = vmatpush1.bf16.msra.mxu1 %v7613_v16 }
  0x73   :  { %5165 = vmatprep.subr.bf16.mxu1 %v7627_v24 }
  0x74   :  { %5107 = vmatpush1.bf16.msra.mxu0 %v7684_v63 }
  0x75   :  { %5109 = vmatprep.subr.bf16.mxu0 %v7690_v5 }
  0x76   :  { %5167 = vmatpush1.bf16.msra.mxu1 %v7652_v38 }
  0x77   :  { %5169 = vmatprep.subr.bf16.mxu1 %v7666_v48 }
  0x78   :  { %5111 = vmatpush1.bf16.msra.mxu0 %v7720_v26 }
  0x79   :  { %5113 = vmatprep.subr.bf16.mxu0 %v7726_v30 }
  0x7a   :  { %5171 = vmatpush1.bf16.msra.mxu1 %v7688_v2 }
  0x7b   :  { %5173 = vmatprep.subr.bf16.mxu1 %v7702_v13 }
  0x7c   :  { %5115 = vmatpush1.bf16.msra.mxu0 %v7756_v62 }
  0x7d   :  { %5117 = vmatprep.subr.bf16.mxu0 %v7762_v9 }
  0x7e   :  { %5175 = vmatpush1.bf16.msra.mxu1 %v7724_v28 }
  0x7f   :  { %5177 = vmatprep.subr.bf16.mxu1 %v7738_v41 }
  0x80   :  { %5119 = vmatpush1.bf16.msra.mxu0 %v7780_v22 }
  0x81   :  { %5121 = vmatprep.subr.bf16.mxu0 %v7798_v51 }
  0x82   :  { %5179 = vmatpush1.bf16.msra.mxu1 %v7760_v6 }
  0x83   :  { %5181 = vmatprep.subr.bf16.mxu1 %v7765_v12 }
  0x84   :  { %5123 = vmatpush1.bf16.msra.mxu0 %v7811_v18  ;;  %v7847_v18 = vpack.c.bf16 %v703_v25, %v699_v21  ;;  %v710_v21 = vld [vmem:[%s11503_s4 + $0x2d8] sm:$0xff]  ;;  %v7870_v25 = vpack.c.bf16 %v712_v57, %v708_v56  ;;  %v709_v56 = vld [vmem:[%s11503_s4 + $0x2d0] sm:$0xff] }
  0x85   :  { %5125 = vmatprep.subr.bf16.mxu0 %v7834_v55  ;;  %v713_v57 = vld [vmem:[%s11503_s4 + $0x2f0] sm:$0xff] }
  0x86   :  { %5183 = vmatpush1.bf16.msra.mxu1 %v7785_v31  ;;  %11688 = vst [vmem:[#allocation19_spill] sm:$0xff] %v7847_v18  ;;  %11690 = vst [vmem:[#allocation21_spill] sm:$0xff] %v7870_v25 }
  0x87   :  { %5185 = vmatprep.subr.bf16.mxu1 %v7809_v14  ;;  %v732_v14 = vld [vmem:[%s11503_s4 + $0x388] sm:$0xff] }
  0x88   :  { %5127 = vmatpush1.bf16.msra.mxu0 %v7847_v18  ;;  %v711_v18 = vld [vmem:[%s11503_s4 + $0x2e0] sm:$0xff] }
  0x89   :  { %5129 = vmatprep.subr.bf16.mxu0 %v7870_v25 }
  0x8a   :  { %5187 = vmatpush1.bf16.msra.mxu1 %v7820_v36  ;;  %v7856_v36 = vpack.c.bf16 %v705_v50, %v701_v44  ;;  %v714_v44 = vld [vmem:[%s11503_s4 + $0x2f8] sm:$0xff]  ;;  %v707_v50 = vld [vmem:[%s11503_s4 + $0x2c0] sm:$0xff] }
  0x8b   :  { %5189 = vmatprep.subr.bf16.mxu1 %v7845_v3  ;;  %v7881_v3 = vpack.c.bf16 %v714_v44, %v710_v21  ;;  %v7883_v55 = vpack.c.bf16 %v711_v18, %v707_v50  ;;  %v716_v18 = vld [vmem:[%s11503_s4 + $0x308] sm:$0xff]  ;;  %v718_v44 = vld [vmem:[%s11503_s4 + $0x318] sm:$0xff] }
  0x8c   :  { %11689 = vst [vmem:[#allocation20_spill] sm:$0xff] %v7856_v36  ;;  %v720_v21 = vld [vmem:[%s11503_s4 + $0x328] sm:$0xff] }
  0x8d   :  { %11691 = vst [vmem:[#allocation22_spill] sm:$0xff] %v7881_v3  ;;  %11692 = vst [vmem:[#allocation23_spill] sm:$0xff] %v7883_v55  ;;  %5131 = vmatpush1.bf16.msra.mxu0 %v7883_v55  ;;  %v7906_v50 = vpack.c.bf16 %v720_v21, %v716_v18  ;;  %v719_v55 = vld [vmem:[%s11503_s4 + $0x320] sm:$0xff]  ;;  %v717_v18 = vld [vmem:[%s11503_s4 + $0x310] sm:$0xff] }
  0x8e   :  { %5191 = vmatpush1.bf16.msra.mxu1 %v7856_v36  ;;  %v7892_v36 = vpack.c.bf16 %v713_v57, %v709_v56  ;;  %v722_v56 = vld [vmem:[%s11503_s4 + $0x338] sm:$0xff]  ;;  %v715_v57 = vld [vmem:[%s11503_s4 + $0x300] sm:$0xff]  ;;  %v721_v21 = vld [vmem:[%s11503_s4 + $0x330] sm:$0xff] }
  0x8f   :  { %5193 = vmatprep.subr.bf16.mxu1 %v7881_v3  ;;  %11694 = vst [vmem:[#allocation25_spill] sm:$0xff] %v7906_v50  ;;  %v7917_v3 = vpack.c.bf16 %v722_v56, %v718_v44  ;;  %v7919_v25 = vpack.c.bf16 %v719_v55, %v715_v57  ;;  %5133 = vmatprep.subr.bf16.mxu0 %v7906_v50  ;;  %v724_v55 = vld [vmem:[%s11503_s4 + $0x348] sm:$0xff]  ;;  %v726_v56 = vld [vmem:[%s11503_s4 + $0x358] sm:$0xff] }
  0x90   :  { %11693 = vst [vmem:[#allocation24_spill] sm:$0xff] %v7892_v36  ;;  %v728_v44 = vld [vmem:[%s11503_s4 + $0x368] sm:$0xff] }
  0x91   :  { %11695 = vst [vmem:[#allocation26_spill] sm:$0xff] %v7917_v3  ;;  %11696 = vst [vmem:[#allocation27_spill] sm:$0xff] %v7919_v25  ;;  %5135 = vmatpush1.bf16.msra.mxu0 %v7919_v25  ;;  %v7942_v57 = vpack.c.bf16 %v728_v44, %v724_v55  ;;  %v727_v25 = vld [vmem:[%s11503_s4 + $0x360] sm:$0xff]  ;;  %v725_v55 = vld [vmem:[%s11503_s4 + $0x350] sm:$0xff] }
  0x92   :  { %5195 = vmatpush1.bf16.msra.mxu1 %v7892_v36  ;;  %v7928_v36 = vpack.c.bf16 %v721_v21, %v717_v18  ;;  %v730_v18 = vld [vmem:[%s11503_s4 + $0x378] sm:$0xff]  ;;  %v723_v21 = vld [vmem:[%s11503_s4 + $0x340] sm:$0xff]  ;;  %v729_v44 = vld [vmem:[%s11503_s4 + $0x370] sm:$0xff] }
  0x93   :  { %5197 = vmatprep.subr.bf16.mxu1 %v7917_v3  ;;  %11698 = vst [vmem:[#allocation29_spill] sm:$0xff] %v7942_v57  ;;  %v7953_v3 = vpack.c.bf16 %v730_v18, %v726_v56  ;;  %v7955_v50 = vpack.c.bf16 %v727_v25, %v723_v21  ;;  %5137 = vmatprep.subr.bf16.mxu0 %v7942_v57  ;;  %v736_v25 = vld [vmem:[%s11503_s4 + $0x3a8] sm:$0xff]  ;;  %v734_v56 = vld [vmem:[%s11503_s4 + $0x398] sm:$0xff] }
  0x94   :  { %11697 = vst [vmem:[#allocation28_spill] sm:$0xff] %v7928_v36  ;;  %v7977_v18 = vpack.c.bf16 %v736_v25, %v732_v14  ;;  %v738_v21 = vld [vmem:[%s11503_s4 + $0x3b8] sm:$0xff]  ;;  %v733_v14 = vld [vmem:[%s11503_s4 + $0x390] sm:$0xff] }
  0x95   :  { %11699 = vst [vmem:[#allocation30_spill] sm:$0xff] %v7953_v3  ;;  %11700 = vst [vmem:[#allocation31_spill] sm:$0xff] %v7955_v50  ;;  %5139 = vmatpush1.bf16.msra.mxu0 %v7955_v50  ;;  %v7989_v57 = vpack.c.bf16 %v738_v21, %v734_v56  ;;  %v737_v25 = vld [vmem:[%s11503_s4 + $0x3b0] sm:$0xff]  ;;  %v740_v50 = vld [vmem:[%s11503_s4 + $0x3c8] sm:$0xff] }
  0x96   :  { %5199 = vmatpush1.bf16.msra.mxu1 %v7928_v36  ;;  %v7964_v36 = vpack.c.bf16 %v729_v44, %v725_v55  ;;  %11702 = vst [vmem:[#allocation33_spill] sm:$0xff] %v7977_v18  ;;  %v731_v55 = vld [vmem:[%s11503_s4 + $0x380] sm:$0xff]  ;;  %5141 = vmatprep.subr.bf16.mxu0 %v7977_v18  ;;  %v8003_v51 = vpack.c.bf16 %v737_v25, %v733_v14  ;;  %v744_v56 = vld [vmem:[%s11503_s4 + $0x3e8] sm:$0xff]  ;;  %v742_v21 = vld [vmem:[%s11503_s4 + $0x3d8] sm:$0xff] }
  0x97   :  { %5201 = vmatprep.subr.bf16.mxu1 %v7953_v3  ;;  %v735_v44 = vld [vmem:[%s11503_s4 + $0x3a0] sm:$0xff]  ;;  %11703 = vst [vmem:[#allocation34_spill] sm:$0xff] %v7989_v57  ;;  %v741_v18 = vld [vmem:[%s11503_s4 + $0x3d0] sm:$0xff] }
  0x98   :  { %11701 = vst [vmem:[#allocation32_spill] sm:$0xff] %v7964_v36  ;;  %v7991_v3 = vpack.c.bf16 %v735_v44, %v731_v55  ;;  %11705 = vst [vmem:[#allocation36_spill] sm:$0xff] %v8003_v51  ;;  %v746_v55 = vld [vmem:[%s11503_s4 + $0x3f8] sm:$0xff]  ;;  %v8015_v44 = vpack.c.bf16 %v744_v56, %v740_v50  ;;  %v739_v14 = vld [vmem:[%s11503_s4 + $0x3c0] sm:$0xff] }
  0x99   :  { %v743_v25 = vld [vmem:[%s11503_s4 + $0x3e0] sm:$0xff]  ;;  %v745_v50 = vld [vmem:[%s11503_s4 + $0x3f0] sm:$0xff]  ;;  %v924_v56 = vld [vmem:[%s11501_s3 + $0x8] sm:$0xff] }
  0x9a   :  { %5203 = vmatpush1.bf16.msra.mxu1 %v7964_v36  ;;  %11704 = vst [vmem:[#allocation35_spill] sm:$0xff] %v7991_v3  ;;  %11706 = vst [vmem:[#allocation37_spill] sm:$0xff] %v8015_v44  ;;  %v8017_v36 = vpack.c.bf16 %v746_v55, %v742_v21  ;;  %5143 = vmatpush1.bf16.msra.mxu0 %v7991_v3  ;;  %v8029_v31 = vpack.c.bf16 %v743_v25, %v739_v14  ;;  %v928_v21 = vld [vmem:[%s11501_s3 + $0x28] sm:$0xff]  ;;  %v103_v25 = vlaneseq }
  0x9b   :  { %5205 = vmatprep.subr.bf16.mxu1 %v7989_v57  ;;  %5145 = vmatprep.subr.bf16.mxu0 %v8015_v44  ;;  %v8042_v55 = vpack.c.bf16 %v745_v50, %v741_v18  ;;  %v8044_v14 = vpack.c.bf16 %v928_v21, %v924_v56  ;;  %v101_v18 = vld [vmem:[%s11504_s2] sm:$0xf] }
  0x9c   :  { %11707 = vst [vmem:[#allocation38_spill] sm:$0xff] %v8017_v36  ;;  %11708 = vst [vmem:[#allocation39_spill] sm:$0xff] %v8029_v31  ;;  %v104_v3 = vshrl.u32 %v103_v25, 7 }
  0x9d   :  { %11709 = vst [vmem:[#allocation40_spill] sm:$0xff] %v8042_v55  ;;  %11710 = vst [vmem:[#allocation41_spill] sm:$0xff] %v8044_v14 }
  0x9e   :  { %5207 = vmatpush1.bf16.msra.mxu1 %v8003_v51  ;;  %5147 = vmatpush1.bf16.msra.mxu0 %v8029_v31  ;;  %v105_v57 = vsub.s32 0, %v104_v3  ;;  %v109_v50 = vsub.s32 1, %v104_v3 }
  0x9f   :  { %5209 = vmatprep.subr.bf16.mxu1 %v8017_v36  ;;  %5213 = vmatprep.subr.bf16.mxu0 %v8044_v14 }
  0xa0   :  { %v106_v56 = vrot.slane %v101_v18, %v105_v57  ;;  %v110_v21 = vrot.slane %v101_v18, %v109_v50 }
  0xa2   :  { %5211 = vmatpush1.bf16.msra.mxu1 %v8042_v55 }
  0xa3   :  { %5245 = vmatprep.subr.bf16.mxu1 %v7307_v29 }
  0xf8   :  { %v189_v44 = vpop.f32.mrb[0].mxu1 }
  0xf9   :  { %v190_v36 = vadd.f32 %v189_v44, %v106_v56  ;;  %v191_v51 = vpop.f32.mrb[1].mxu1 }
  0xfa   :  { %v515_v31 = vpop.f32.mrb[0].mxu0  ;;  %v192_v22 = vadd.f32 %v191_v51, %v110_v21 }
  0xfb   :  { %v517_v55 = vpop.f32.mrb[1].mxu0  ;;  %v591_v12 = vadd.f32 %v515_v31, %v190_v36 }
  0xfc   :  { %v592_v14 = vadd.f32 %v517_v55, %v192_v22  ;;  %v195_v9 = vpop.f32.mrb[2].mxu1 }
  0xfd   :  { %v8054_v29 = vadd.f32 %v195_v9, %v106_v56  ;;  %v197_v25 = vpop.f32.mrb[3].mxu1 }
  0xfe   :  { %v8056_v6 = vadd.f32 %v197_v25, %v110_v21 }
 0x100   :  { %11711 = vst [vmem:[#allocation42_spill] sm:$0xff] %v8056_v6  ;;  %v201_v62 = vpop.f32.mrb[4].mxu1 }
 0x101   :  { %v8058_v41 = vadd.f32 %v201_v62, %v106_v56  ;;  %v203_v30 = vpop.f32.mrb[5].mxu1 }
 0x102   :  { %v8060_v57 = vadd.f32 %v203_v30, %v110_v21 }
 0x103   :  { %11712 = vst [vmem:[#allocation43_spill] sm:$0xff] %v8058_v41 }
 0x104   :  { %11713 = vst [vmem:[#allocation44_spill] sm:$0xff] %v8060_v57  ;;  %v207_v50 = vpop.f32.mrb[6].mxu1 }
 0x105   :  { %v8062_v44 = vadd.f32 %v207_v50, %v106_v56  ;;  %v209_v28 = vpop.f32.mrb[7].mxu1 }
 0x106   :  { %v8064_v51 = vadd.f32 %v209_v28, %v110_v21 }
 0x107   :  { %11714 = vst [vmem:[#allocation45_spill] sm:$0xff] %v8062_v44 }
 0x108   :  { %11715 = vst [vmem:[#allocation46_spill] sm:$0xff] %v8064_v51  ;;  %v213_v31 = vpop.f32.mrb[8].mxu1 }
 0x109   :  { %v8066_v22 = vadd.f32 %v213_v31, %v106_v56  ;;  %v215_v9 = vpop.f32.mrb[9].mxu1 }
 0x10a   :  { %v8068_v36 = vadd.f32 %v215_v9, %v110_v21  ;;  %v4840_v9 = vmul.f32 -1.442695, %v592_v14 }
 0x10b   :  { %11716 = vst [vmem:[#allocation47_spill] sm:$0xff] %v8066_v22 }
 0x10c   :  { %11717 = vst [vmem:[#allocation48_spill] sm:$0xff] %v8068_v36  ;;  %v219_v55 = vpop.f32.mrb[10].mxu1  ;;  %v4839_v36 = vmul.f32 -1.442695, %v591_v12  ;;  %6653 = vpow2.f32 %v4840_v9 }
 0x10d   :  { %v8070_v25 = vadd.f32 %v219_v55, %v106_v56  ;;  %v221_v62 = vpop.f32.mrb[11].mxu1  ;;  %v113_v55 = vsub.s32 2, %v104_v3 }
 0x10e   :  { %v8072_v41 = vadd.f32 %v221_v62, %v110_v21  ;;  %6655 = vpow2.f32 %v4839_v36  ;;  %v117_v62 = vsub.s32 3, %v104_v3 }
 0x10f   :  { %11718 = vst [vmem:[#allocation49_spill] sm:$0xff] %v8070_v25 }
 0x110   :  { %11719 = vst [vmem:[#allocation50_spill] sm:$0xff] %v8072_v41  ;;  %v225_v30 = vpop.f32.mrb[12].mxu1 }
 0x111   :  { %v8074_v57 = vadd.f32 %v225_v30, %v106_v56  ;;  %v227_v50 = vpop.f32.mrb[13].mxu1  ;;  %v8082_v30 = vrot.slane %v101_v18, %v113_v55  ;;  %v936_v55 = vld [vmem:[%s11501_s3 + $0x68] sm:$0xff] }
 0x112   :  { %v8076_v44 = vadd.f32 %v227_v50, %v110_v21  ;;  %v8084_v50 = vrot.slane %v101_v18, %v117_v62 }
 0x113   :  { %11720 = vst [vmem:[#allocation51_spill] sm:$0xff] %v8074_v57 }
 0x114   :  { %11721 = vst [vmem:[#allocation52_spill] sm:$0xff] %v8076_v44  ;;  %v231_v28 = vpop.f32.mrb[14].mxu1 }
 0x115   :  { %v8078_v51 = vadd.f32 %v231_v28, %v106_v56  ;;  %v233_v31 = vpop.f32.mrb[15].mxu1 }
 0x116   :  { %v8080_v22 = vadd.f32 %v233_v31, %v110_v21  ;;  %v6654_v25 = vpop.eup %6653 }
 0x117   :  { %11722 = vst [vmem:[#allocation53_spill] sm:$0xff] %v8078_v51  ;;  %v604_v6 = vadd.f32 1.0, %v6654_v25  ;;  %v1764_v51 = vld [vmem:[%s11503_s4 + $0x220] sm:$0xff] }
 0x118   :  { %11723 = vst [vmem:[#allocation54_spill] sm:$0xff] %v8080_v22  ;;  %v6656_v41 = vpop.eup %6655 }
 0x119   :  { %v598_v57 = vadd.f32 1.0, %v6656_v41  ;;  %6657 = vrcp.f32 %v604_v6  ;;  %v923_v6 = vld [vmem:[%s11501_s3] sm:$0xff] }
 0x11b   :  { %6659 = vrcp.f32 %v598_v57  ;;  %v927_v57 = vld [vmem:[%s11501_s3 + $0x20] sm:$0xff] }
 0x123   :  { %v6658_v36 = vpop.eup %6657 }
 0x124   :  { %v614_v25 = vmul.f32 0.0, %v6658_v36  ;;  %v931_v36 = vld [vmem:[%s11501_s3 + $0x40] sm:$0xff] }
 0x125   :  { %v6660_v3 = vpop.eup %6659 }
 0x138   :  { %v586_v44 = vpop.f32.mrb[16].mxu1 }
 0x139   :  { %v6620_v56 = vadd.f32 %v586_v44, %v8082_v30  ;;  %v588_v21 = vpop.f32.mrb[17].mxu1  ;;  %v932_v44 = vld [vmem:[%s11501_s3 + $0x48] sm:$0xff] }
 0x13a   :  { %v6621_v12 = vadd.f32 %v588_v21, %v8084_v50  ;;  %v8103_v21 = vpack.c.bf16 %v927_v57, %v923_v6  ;;  %v943_v6 = vld [vmem:[%s11501_s3 + $0xa0] sm:$0xff]  ;;  %v952_v57 = vld [vmem:[%s11501_s3 + $0xe8] sm:$0xff] }
 0x13b   :  { %6661 = vtanh.f32 %v6620_v56 }
 0x13c   :  { %v4841_v14 = vmul.f32 -1.442695, %v6621_v12 }
 0x13e   :  { %6663 = vpow2.f32 %v4841_v14  ;;  %v8107_v14 = vpack.c.bf16 %v936_v55, %v932_v44  ;;  %v11724_v44 = vmov 0.0  }
 0x145   :  { %v6662_v28 = vpop.eup %6661 }
 0x146   :  { %v615_v31 = vmul.f32 %v6662_v28, %v6660_v3  ;;  %v935_v3 = vld [vmem:[%s11501_s3 + $0x60] sm:$0xff]  ;;  %v940_v28 = vld [vmem:[%s11501_s3 + $0x88] sm:$0xff] }
 0x148   :  { %v6664_v9 = vpop.eup %6663  ;;  %v8088_v41 = vadd.f32 %v615_v31, %v614_v25  ;;  %v944_v25 = vld [vmem:[%s11501_s3 + $0xa8] sm:$0xff]  ;;  %v8125_v31 = vpack.c.bf16 %v935_v3, %v931_v36 }
 0x149   :  { %v611_v18 = vadd.f32 1.0, %v6664_v9  ;;  %v8129_v9 = vpack.c.bf16 %v944_v25, %v940_v28  ;;  %v960_v36 = vld [vmem:[%s11501_s3 + $0x128] sm:$0xff]  ;;  %v955_v28 = vld [vmem:[%s11501_s3 + $0x100] sm:$0xff] }
 0x14a   :  { %6665 = vtanh.f32 %v8088_v41  ;;  %v959_v25 = vld [vmem:[%s11501_s3 + $0x120] sm:$0xff] }
 0x14b   :  { %6667 = vrcp.f32 %v611_v18  ;;  %v939_v18 = vld [vmem:[%s11501_s3 + $0x80] sm:$0xff] }
 0x154   :  { %v6666_v62 = vpop.eup %6665 }
 0x155   :  { %v6668_v56 = vpop.eup %6667 }
 0x156   :  { %v8105_v12 = vmul.f32 %v6668_v56, %v6666_v62  ;;  %v947_v62 = vld [vmem:[%s11501_s3 + $0xc0] sm:$0xff] }
 0x157   :  { %v951_v56 = vld [vmem:[%s11501_s3 + $0xe0] sm:$0xff] }
 0x158   :  { %816 = vmatmul.mubr.f32.vlgmr.msra.gmra.mrb[2].mxu0 %v8105_v12  ;;  %887 = vmatmul.mubr.f32.vlgmr.msra.gmra.mrb[32].mxu1 %v8105_v12 }
 0x159   :  { %5215 = vmatpush1.bf16.msra.mxu0 %v8103_v21  ;;  %5247 = vmatpush1.bf16.msra.mxu1 %v7323_v34  ;;  %v948_v34 = vld [vmem:[%s11501_s3 + $0xc8] sm:$0xff] }
 0x15a   :  { %5217 = vmatprep.subr.bf16.mxu0 %v8107_v14  ;;  %5249 = vmatprep.subr.bf16.mxu1 %v7326_v35  ;;  %v8147_v35 = vpack.c.bf16 %v943_v6, %v939_v18  ;;  %v8151_v55 = vpack.c.bf16 %v952_v57, %v948_v34  ;;  %v968_v18 = vld [vmem:[%s11501_s3 + $0x168] sm:$0xff]  ;;  %v963_v34 = vld [vmem:[%s11501_s3 + $0x140] sm:$0xff] }
 0x15b   :  { %1051 = vmatprep.mubr.f32.mxu0 %v11724_v44  ;;  %1122 = vmatprep.mubr.f32.mxu1 %v11724_v44  ;;  %v967_v57 = vld [vmem:[%s11501_s3 + $0x160] sm:$0xff] }
 0x15d   :  { %5219 = vmatpush1.bf16.msra.mxu0 %v8125_v31  ;;  %5251 = vmatpush1.bf16.msra.mxu1 %v7343_v40  ;;  %v956_v40 = vld [vmem:[%s11501_s3 + $0x108] sm:$0xff] }
 0x15e   :  { %5221 = vmatprep.subr.bf16.mxu0 %v8129_v9  ;;  %5253 = vmatprep.subr.bf16.mxu1 %v7346_v42  ;;  %v8167_v42 = vpack.c.bf16 %v951_v56, %v947_v62  ;;  %v8171_v3 = vpack.c.bf16 %v960_v36, %v956_v40  ;;  %v976_v62 = vld [vmem:[%s11501_s3 + $0x1a8] sm:$0xff]  ;;  %v971_v40 = vld [vmem:[%s11501_s3 + $0x180] sm:$0xff] }
 0x15f   :  { %v975_v36 = vld [vmem:[%s11501_s3 + $0x1a0] sm:$0xff] }
 0x161   :  { %5223 = vmatpush1.bf16.msra.mxu0 %v8147_v35  ;;  %5255 = vmatpush1.bf16.msra.mxu1 %v7363_v46  ;;  %v964_v46 = vld [vmem:[%s11501_s3 + $0x148] sm:$0xff] }
 0x162   :  { %5225 = vmatprep.subr.bf16.mxu0 %v8151_v55  ;;  %5257 = vmatprep.subr.bf16.mxu1 %v7366_v47  ;;  %v8187_v47 = vpack.c.bf16 %v959_v25, %v955_v28  ;;  %v8191_v6 = vpack.c.bf16 %v968_v18, %v964_v46  ;;  %v984_v28 = vld [vmem:[%s11501_s3 + $0x1e8] sm:$0xff]  ;;  %v979_v46 = vld [vmem:[%s11501_s3 + $0x1c0] sm:$0xff] }
 0x163   :  { %v983_v18 = vld [vmem:[%s11501_s3 + $0x1e0] sm:$0xff] }
 0x165   :  { %5227 = vmatpush1.bf16.msra.mxu0 %v8167_v42  ;;  %5259 = vmatpush1.bf16.msra.mxu1 %v7383_v52  ;;  %v972_v52 = vld [vmem:[%s11501_s3 + $0x188] sm:$0xff] }
 0x166   :  { %5229 = vmatprep.subr.bf16.mxu0 %v8171_v3  ;;  %5261 = vmatprep.subr.bf16.mxu1 %v7386_v53  ;;  %v8207_v53 = vpack.c.bf16 %v967_v57, %v963_v34  ;;  %v8211_v56 = vpack.c.bf16 %v976_v62, %v972_v52  ;;  %v11757_v34 = vld [vmem:[#allocation36_spill] sm:$0xff]  ;;  %v11758_v57 = vld [vmem:[#allocation37_spill] sm:$0xff]  ;;  %v11759_v52 = vld [vmem:[#allocation38_spill] sm:$0xff] }
 0x167   :  { %v11760_v62 = vld [vmem:[#allocation39_spill] sm:$0xff] }
 0x169   :  { %5231 = vmatpush1.bf16.msra.mxu0 %v8187_v47  ;;  %5263 = vmatpush1.bf16.msra.mxu1 %v7403_v58  ;;  %v980_v58 = vld [vmem:[%s11501_s3 + $0x1c8] sm:$0xff] }
 0x16a   :  { %5233 = vmatprep.subr.bf16.mxu0 %v8191_v6  ;;  %5265 = vmatprep.subr.bf16.mxu1 %v7406_v59  ;;  %v8227_v59 = vpack.c.bf16 %v975_v36, %v971_v40  ;;  %v8231_v25 = vpack.c.bf16 %v984_v28, %v980_v58  ;;  %v11761_v40 = vld [vmem:[#allocation40_spill] sm:$0xff]  ;;  %v11762_v36 = vld [vmem:[#allocation41_spill] sm:$0xff]  ;;  %v1465_v58 = vld [vmem:[%s11501_s3 + $0x18] sm:$0xff] }
 0x16b   :  { %v1469_v28 = vld [vmem:[%s11501_s3 + $0x38] sm:$0xff] }
 0x16d   :  { %5235 = vmatpush1.bf16.msra.mxu0 %v8207_v53  ;;  %5267 = vmatpush1.bf16.msra.mxu1 %v7423_v0  ;;  %v8241_v0 = vpack.c.bf16 %v983_v18, %v979_v46  ;;  %v8320_v46 = vpack.c.bf16 %v1469_v28, %v1465_v58  ;;  %v8326_v18 = vld [vmem:[%s11505_s5] sm:$0xff] }
 0x16e   :  { %5237 = vmatprep.subr.bf16.mxu0 %v8211_v56  ;;  %5269 = vmatprep.subr.bf16.mxu1 %v7426_v1  ;;  %v11725_v1 = vld [vmem:[#allocation4_spill] sm:$0xff] }
 0x171   :  { %5239 = vmatpush1.bf16.msra.mxu0 %v8227_v59  ;;  %5271 = vmatpush1.bf16.msra.mxu1 %v7443_v7  ;;  %v11726_v7 = vld [vmem:[#allocation5_spill] sm:$0xff] }
 0x172   :  { %5241 = vmatprep.subr.bf16.mxu0 %v8231_v25  ;;  %5273 = vmatprep.subr.bf16.mxu1 %v7446_v8  ;;  %v11727_v8 = vld [vmem:[#allocation6_spill] sm:$0xff] }
 0x175   :  { %5243 = vmatpush1.bf16.msra.mxu0 %v8241_v0  ;;  %5275 = vmatpush1.bf16.msra.mxu1 %v7457_v11  ;;  %v11728_v11 = vld [vmem:[#allocation7_spill] sm:$0xff] }
 0x176   :  { %5277 = vmatprep.subr.bf16.mxu0 %v7474_v15  ;;  %5341 = vmatprep.subr.bf16.mxu1 %v7485_v19  ;;  %v11729_v15 = vld [vmem:[#allocation8_spill] sm:$0xff]  ;;  %v11730_v19 = vld [vmem:[#allocation9_spill] sm:$0xff] }
 0x178   :  { %1052 = vmatmul.mubr.f32.vlgmr.msra.gmra.mrb[4].mxu0 %v8105_v12  ;;  %1123 = vmatmul.mubr.f32.vlgmr.msra.gmra.mrb[18].mxu1 %v8105_v12  ;;  %v11756_v12 = vld [vmem:[#allocation35_spill] sm:$0xff] }
 0x179   :  { %5279 = vmatpush1.bf16.msra.mxu0 %v7487_v20  ;;  %5343 = vmatpush1.bf16.msra.mxu1 %v7496_v23  ;;  %v11731_v20 = vld [vmem:[#allocation10_spill] sm:$0xff]  ;;  %v11732_v23 = vld [vmem:[#allocation11_spill] sm:$0xff] }
 0x17a   :  { %5281 = vmatprep.subr.bf16.mxu0 %v7510_v27  ;;  %5345 = vmatprep.subr.bf16.mxu1 %v7521_v32  ;;  %v11733_v27 = vld [vmem:[#allocation12_spill] sm:$0xff]  ;;  %v11734_v32 = vld [vmem:[#allocation13_spill] sm:$0xff] }
 0x17d   :  { %5283 = vmatpush1.bf16.msra.mxu0 %v7523_v33  ;;  %5347 = vmatpush1.bf16.msra.mxu1 %v7535_v39  ;;  %v11735_v33 = vld [vmem:[#allocation14_spill] sm:$0xff]  ;;  %v11736_v39 = vld [vmem:[#allocation15_spill] sm:$0xff] }
 0x17e   :  { %5285 = vmatprep.subr.bf16.mxu0 %v7548_v45  ;;  %5349 = vmatprep.subr.bf16.mxu1 %v7550_v49  ;;  %v11737_v45 = vld [vmem:[#allocation16_spill] sm:$0xff]  ;;  %v11738_v49 = vld [vmem:[#allocation17_spill] sm:$0xff] }
 0x181   :  { %5287 = vmatpush1.bf16.msra.mxu0 %v7562_v54  ;;  %5351 = vmatpush1.bf16.msra.mxu1 %v7575_v60  ;;  %v11739_v54 = vld [vmem:[#allocation18_spill] sm:$0xff]  ;;  %v11740_v60 = vld [vmem:[#allocation19_spill] sm:$0xff] }
 0x182   :  { %5289 = vmatprep.subr.bf16.mxu0 %v7577_v61  ;;  %5353 = vmatprep.subr.bf16.mxu1 %v7588_v4  ;;  %v11741_v61 = vld [vmem:[#allocation20_spill] sm:$0xff]  ;;  %v11742_v4 = vld [vmem:[#allocation21_spill] sm:$0xff] }
 0x185   :  { %5291 = vmatpush1.bf16.msra.mxu0 %v7600_v10  ;;  %5355 = vmatpush1.bf16.msra.mxu1 %v7613_v16  ;;  %v11743_v10 = vld [vmem:[#allocation22_spill] sm:$0xff]  ;;  %v11744_v16 = vld [vmem:[#allocation23_spill] sm:$0xff] }
 0x186   :  { %5293 = vmatprep.subr.bf16.mxu0 %v7615_v17  ;;  %5357 = vmatprep.subr.bf16.mxu1 %v7627_v24  ;;  %v11745_v17 = vld [vmem:[#allocation24_spill] sm:$0xff]  ;;  %v11746_v24 = vld [vmem:[#allocation25_spill] sm:$0xff] }
 0x189   :  { %5295 = vmatpush1.bf16.msra.mxu0 %v7648_v37  ;;  %5359 = vmatpush1.bf16.msra.mxu1 %v7652_v38  ;;  %v11747_v37 = vld [vmem:[#allocation26_spill] sm:$0xff]  ;;  %v11748_v38 = vld [vmem:[#allocation27_spill] sm:$0xff] }
 0x18a   :  { %5297 = vmatprep.subr.bf16.mxu0 %v7654_v43  ;;  %5361 = vmatprep.subr.bf16.mxu1 %v7666_v48  ;;  %v11749_v43 = vld [vmem:[#allocation28_spill] sm:$0xff]  ;;  %v11750_v48 = vld [vmem:[#allocation29_spill] sm:$0xff] }
 0x18d   :  { %5299 = vmatpush1.bf16.msra.mxu0 %v7684_v63  ;;  %5363 = vmatpush1.bf16.msra.mxu1 %v7688_v2  ;;  %v11751_v63 = vld [vmem:[#allocation30_spill] sm:$0xff]  ;;  %v11752_v2 = vld [vmem:[#allocation31_spill] sm:$0xff] }
 0x18e   :  { %5301 = vmatprep.subr.bf16.mxu0 %v7690_v5  ;;  %5365 = vmatprep.subr.bf16.mxu1 %v7702_v13  ;;  %v11753_v5 = vld [vmem:[#allocation32_spill] sm:$0xff]  ;;  %v11754_v13 = vld [vmem:[#allocation33_spill] sm:$0xff] }
 0x191   :  { %5303 = vmatpush1.bf16.msra.mxu0 %v7720_v26  ;;  %5367 = vmatpush1.bf16.msra.mxu1 %v11725_v1  ;;  %v11755_v26 = vld [vmem:[#allocation34_spill] sm:$0xff]  ;;  %v8331_v1 = vld [vmem:[%s11505_s5 + $0x8] sm:$0xff] }
 0x192   :  { %5305 = vmatprep.subr.bf16.mxu0 %v11726_v7  ;;  %5369 = vmatprep.subr.bf16.mxu1 %v11727_v8 }
 0x195   :  { %5307 = vmatpush1.bf16.msra.mxu0 %v11728_v11  ;;  %5371 = vmatpush1.bf16.msra.mxu1 %v11729_v15 }
 0x196   :  { %5309 = vmatprep.subr.bf16.mxu0 %v11730_v19  ;;  %5373 = vmatprep.subr.bf16.mxu1 %v11731_v20 }
 0x199   :  { %5311 = vmatpush1.bf16.msra.mxu0 %v11732_v23  ;;  %5375 = vmatpush1.bf16.msra.mxu1 %v11733_v27 }
 0x19a   :  { %5313 = vmatprep.subr.bf16.mxu0 %v11734_v32  ;;  %5377 = vmatprep.subr.bf16.mxu1 %v11735_v33  ;;  %v8338_v32 = vld [vmem:[%s11505_s5 + $0x18] sm:$0xff] }
 0x19d   :  { %5315 = vmatpush1.bf16.msra.mxu0 %v11736_v39  ;;  %5379 = vmatpush1.bf16.msra.mxu1 %v11737_v45  ;;  %v8344_v39 = vld [vmem:[%s11505_s5 + $0x10] sm:$0xff] }
 0x19e   :  { %5317 = vmatprep.subr.bf16.mxu0 %v11738_v49  ;;  %5381 = vmatprep.subr.bf16.mxu1 %v11739_v54 }
 0x1a1   :  { %5319 = vmatpush1.bf16.msra.mxu0 %v11740_v60  ;;  %5383 = vmatpush1.bf16.msra.mxu1 %v11741_v61 }
 0x1a2   :  { %5321 = vmatprep.subr.bf16.mxu0 %v11742_v4  ;;  %5385 = vmatprep.subr.bf16.mxu1 %v11743_v10 }
 0x1a5   :  { %5323 = vmatpush1.bf16.msra.mxu0 %v11744_v16  ;;  %5387 = vmatpush1.bf16.msra.mxu1 %v11745_v17 }
 0x1a6   :  { %5325 = vmatprep.subr.bf16.mxu0 %v11746_v24  ;;  %5389 = vmatprep.subr.bf16.mxu1 %v11747_v37 }
 0x1a9   :  { %5327 = vmatpush1.bf16.msra.mxu0 %v11748_v38  ;;  %5391 = vmatpush1.bf16.msra.mxu1 %v11749_v43 }
 0x1aa   :  { %5329 = vmatprep.subr.bf16.mxu0 %v11750_v48  ;;  %5393 = vmatprep.subr.bf16.mxu1 %v11751_v63 }
 0x1ad   :  { %5331 = vmatpush1.bf16.msra.mxu0 %v11752_v2  ;;  %5395 = vmatpush1.bf16.msra.mxu1 %v11753_v5 }
 0x1ae   :  { %5333 = vmatprep.subr.bf16.mxu0 %v11754_v13  ;;  %5397 = vmatprep.subr.bf16.mxu1 %v11755_v26 }
 0x1b1   :  { %5335 = vmatpush1.bf16.msra.mxu0 %v11756_v12  ;;  %5399 = vmatpush1.bf16.msra.mxu1 %v11757_v34  ;;  %v11763_v12 = vld [vmem:[#allocation42_spill] sm:$0xff] }
 0x1b2   :  { %5337 = vmatprep.subr.bf16.mxu0 %v11758_v57  ;;  %5401 = vmatprep.subr.bf16.mxu1 %v11759_v52 }
 0x1b5   :  { %5339 = vmatpush1.bf16.msra.mxu0 %v11760_v62  ;;  %5403 = vmatpush1.bf16.msra.mxu1 %v11761_v40 }
 0x1b6   :  { %5405 = vmatprep.subr.bf16.mxu0 %v11762_v36  ;;  %5437 = vmatprep.subr.bf16.mxu1 %v8320_v46 }
 0x22b   :  { %v817_v7 = vpop.f32.mrb[2].mxu0  ;;  %v888_v8 = vpop.f32.mrb[32].mxu1 }
 0x22c   :  { %v818_v11 = vadd.f32 %v817_v7, %v8326_v18  ;;  %v819_v15 = vpop.f32.mrb[3].mxu0  ;;  %v890_v19 = vpop.f32.mrb[33].mxu1  ;;  %v889_v49 = vadd.f32 %v888_v8, %v8344_v39 }
 0x22d   :  { %v820_v20 = vadd.f32 %v819_v15, %v8331_v1  ;;  %v891_v33 = vadd.f32 %v890_v19, %v8338_v32 }
 0x22e   :  { %v4842_v23 = vmul.f32 -1.442695, %v818_v11 }
 0x22f   :  { %v4843_v27 = vmul.f32 -1.442695, %v820_v20  ;;  %v4844_v45 = vmul.f32 -1.442695, %v891_v33 }
 0x230   :  { %6669 = vpow2.f32 %v4842_v23 }
 0x231   :  { %6671 = vpow2.f32 %v4843_v27 }
 0x232   :  { %6673 = vpow2.f32 %v4844_v45 }
 0x233   :  { %6675 = vtanh.f32 %v889_v49 }
 0x23a   :  { %v6670_v54 = vpop.eup %6669 }
 0x23b   :  { %v6672_v60 = vpop.eup %6671  ;;  %v896_v61 = vadd.f32 1.0, %v6670_v54 }
 0x23c   :  { %v902_v4 = vadd.f32 1.0, %v6672_v60  ;;  %v6674_v10 = vpop.eup %6673  ;;  %v1464_v60 = vld [vmem:[%s11501_s3 + $0x10] sm:$0xff] }
 0x23d   :  { %6677 = vrcp.f32 %v896_v61  ;;  %v6676_v16 = vpop.eup %6675  ;;  %v909_v38 = vadd.f32 1.0, %v6674_v10  ;;  %v1468_v61 = vld [vmem:[%s11501_s3 + $0x30] sm:$0xff] }
 0x23e   :  { %6679 = vrcp.f32 %v902_v4  ;;  %v1473_v4 = vld [vmem:[%s11501_s3 + $0x58] sm:$0xff] }
 0x23f   :  { %6681 = vrcp.f32 %v909_v38  ;;  %v1472_v38 = vld [vmem:[%s11501_s3 + $0x50] sm:$0xff] }
 0x247   :  { %v6678_v17 = vpop.eup %6677 }
 0x248   :  { %v6680_v24 = vpop.eup %6679  ;;  %v913_v37 = vmul.f32 %v6678_v17, %v6676_v16  ;;  %v8374_v17 = vpack.c.bf16 %v1468_v61, %v1464_v60  ;;  %v1524_v60 = vld [vmem:[%s11501_s3 + $0x1f0] sm:$0xff] }
 0x249   :  { %v912_v43 = vmul.f32 0.0, %v6680_v24  ;;  %v6682_v40 = vpop.eup %6681 }
 0x24b   :  { %v8347_v48 = vadd.f32 %v913_v37, %v912_v43  ;;  %v1053_v63 = vpop.f32.mrb[4].mxu0  ;;  %v1124_v2 = vpop.f32.mrb[18].mxu1  ;;  %v1476_v43 = vld [vmem:[%s11501_s3 + $0x70] sm:$0xff] }
 0x24c   :  { %v1129_v5 = vadd.f32 %v1053_v63, %v8054_v29  ;;  %v1055_v13 = vpop.f32.mrb[5].mxu0  ;;  %v1126_v26 = vpop.f32.mrb[19].mxu1  ;;  %v6622_v28 = vadd.f32 %v1124_v2, %v8082_v30  ;;  %v1481_v63 = vld [vmem:[%s11501_s3 + $0x98] sm:$0xff] }
 0x24d   :  { %6683 = vtanh.f32 %v8347_v48  ;;  %v1130_v34 = vadd.f32 %v1055_v13, %v11763_v12  ;;  %v6623_v62 = vadd.f32 %v1126_v26, %v8084_v50  ;;  %v1485_v2 = vld [vmem:[%s11501_s3 + $0xb8] sm:$0xff]  ;;  %v1480_v26 = vld [vmem:[%s11501_s3 + $0x90] sm:$0xff] }
 0x24e   :  { %v4845_v57 = vmul.f32 -1.442695, %v1129_v5  ;;  %v8396_v5 = vpack.c.bf16 %v1476_v43, %v1472_v38  ;;  %v8400_v13 = vpack.c.bf16 %v1485_v2, %v1481_v63  ;;  %v1484_v12 = vld [vmem:[%s11501_s3 + $0xb0] sm:$0xff]  ;;  %v1705_v63 = vld [vmem:[%s11503_s4 + $0x48] sm:$0xff] }
 0x24f   :  { %v4846_v52 = vmul.f32 -1.442695, %v1130_v34  ;;  %v4847_v58 = vmul.f32 -1.442695, %v6623_v62  ;;  %v8418_v34 = vpack.c.bf16 %v1484_v12, %v1480_v26  ;;  %v1492_v62 = vld [vmem:[%s11501_s3 + $0xf0] sm:$0xff]  ;;  %v1709_v2 = vld [vmem:[%s11503_s4 + $0x68] sm:$0xff] }
 0x250   :  { %6685 = vpow2.f32 %v4845_v57  ;;  %v1702_v38 = vld [vmem:[%s11503_s4 + $0x30] sm:$0xff]  ;;  %v1707_v26 = vld [vmem:[%s11503_s4 + $0x58] sm:$0xff]  ;;  %v8565_v12 = vpack.c.bf16 %v1709_v2, %v1705_v63 }
 0x251   :  { %6687 = vpow2.f32 %v4846_v52  ;;  %v1488_v52 = vld [vmem:[%s11501_s3 + $0xd0] sm:$0xff] }
 0x252   :  { %6689 = vpow2.f32 %v4847_v58  ;;  %v1496_v58 = vld [vmem:[%s11501_s3 + $0x110] sm:$0xff] }
 0x253   :  { %6691 = vtanh.f32 %v6622_v28  ;;  %v1500_v28 = vld [vmem:[%s11501_s3 + $0x130] sm:$0xff] }
 0x254   :  { %v1722_v2 = vld [vmem:[%s11503_s4 + $0xd0] sm:$0xff] }
 0x257   :  { %v6684_v36 = vpop.eup %6683 }
 0x258   :  { %v8354_v7 = vmul.f32 %v6684_v36, %v6682_v40  ;;  %v8438_v40 = vpack.c.bf16 %v1492_v62, %v1488_v52  ;;  %v1708_v52 = vld [vmem:[%s11503_s4 + $0x60] sm:$0xff] }
 0x25a   :  { %11764 = vst [vmem:[#allocation4_spill] sm:$0xff] %v8354_v7  ;;  %v6686_v29 = vpop.eup %6685  ;;  %1353 = vmatprep.mubr.f32.mxu0 %v8354_v7  ;;  %1424 = vmatprep.mubr.f32.mxu1 %v8354_v7 }
 0x25b   :  { %v6688_v8 = vpop.eup %6687  ;;  %v1136_v11 = vadd.f32 1.0, %v6686_v29  ;;  %v8458_v29 = vpack.c.bf16 %v1500_v28, %v1496_v58  ;;  %v1710_v58 = vld [vmem:[%s11503_s4 + $0x70] sm:$0xff] }
 0x25c   :  { %v1142_v15 = vadd.f32 1.0, %v6688_v8  ;;  %v6690_v19 = vpop.eup %6689 }
 0x25d   :  { %6693 = vrcp.f32 %v1136_v11  ;;  %v6692_v20 = vpop.eup %6691  ;;  %v1149_v45 = vadd.f32 1.0, %v6690_v19  ;;  %v1504_v11 = vld [vmem:[%s11501_s3 + $0x150] sm:$0xff] }
 0x25e   :  { %6695 = vrcp.f32 %v1142_v15  ;;  %v1508_v15 = vld [vmem:[%s11501_s3 + $0x170] sm:$0xff] }
 0x25f   :  { %6697 = vrcp.f32 %v1149_v45  ;;  %v8478_v19 = vpack.c.bf16 %v1508_v15, %v1504_v11  ;;  %v1715_v11 = vld [vmem:[%s11503_s4 + $0x98] sm:$0xff] }
 0x267   :  { %v6694_v23 = vpop.eup %6693 }
 0x268   :  { %v6696_v27 = vpop.eup %6695  ;;  %v1153_v33 = vmul.f32 %v6694_v23, %v6692_v20  ;;  %v1512_v23 = vld [vmem:[%s11501_s3 + $0x190] sm:$0xff] }
 0x269   :  { %v1152_v49 = vmul.f32 %v6696_v27, %v8088_v41  ;;  %v1477_v41 = vld [vmem:[%s11501_s3 + $0x78] sm:$0xff]  ;;  %v6698_v10 = vpop.eup %6697  ;;  %v1516_v27 = vld [vmem:[%s11501_s3 + $0x1b0] sm:$0xff] }
 0x26a   :  { %v8378_v37 = vpack.c.bf16 %v1477_v41, %v1473_v4  ;;  %v1696_v4 = vld [vmem:[%s11503_s4] sm:$0xff] }
 0x26b   :  { %v8359_v54 = vadd.f32 %v1153_v33, %v1152_v49  ;;  %v8498_v33 = vpack.c.bf16 %v1516_v27, %v1512_v23  ;;  %v1520_v49 = vld [vmem:[%s11501_s3 + $0x1d0] sm:$0xff]  ;;  %v1700_v41 = vld [vmem:[%s11503_s4 + $0x20] sm:$0xff] }
 0x26c   :  { %v1716_v23 = vld [vmem:[%s11503_s4 + $0xa0] sm:$0xff] }
 0x26d   :  { %6699 = vtanh.f32 %v8359_v54 }
 0x277   :  { %v6700_v16 = vpop.eup %6699 }
 0x278   :  { %v8376_v24 = vmul.f32 %v6700_v16, %v6698_v10  ;;  %v8542_v16 = vpack.c.bf16 %v1700_v41, %v1696_v4  ;;  %v1727_v4 = vld [vmem:[%s11503_s4 + $0xf8] sm:$0xff]  ;;  %v1720_v41 = vld [vmem:[%s11503_s4 + $0xc0] sm:$0xff] }
 0x27a   :  { %1354 = vmatmul.mubr.f32.vlgmr.msra.gmra.mrb[6].mxu0 %v8376_v24  ;;  %1425 = vmatmul.mubr.f32.vlgmr.msra.gmra.mrb[34].mxu1 %v8376_v24 }
 0x27b   :  { %5407 = vmatpush1.bf16.msra.mxu0 %v8103_v21  ;;  %5439 = vmatpush1.bf16.msra.mxu1 %v8374_v17  ;;  %v1489_v21 = vld [vmem:[%s11501_s3 + $0xd8] sm:$0xff] }
 0x27c   :  { %5409 = vmatprep.subr.bf16.mxu0 %v8107_v14  ;;  %5441 = vmatprep.subr.bf16.mxu1 %v8378_v37  ;;  %v1493_v14 = vld [vmem:[%s11501_s3 + $0xf8] sm:$0xff] }
 0x27d   :  { %1590 = vmatprep.mubr.f32.mxu0 %v11724_v44  ;;  %1661 = vmatprep.mubr.f32.mxu1 %v11724_v44  ;;  %v8422_v57 = vpack.c.bf16 %v1493_v14, %v1489_v21  ;;  %v1711_v21 = vld [vmem:[%s11503_s4 + $0x78] sm:$0xff]  ;;  %v1704_v14 = vld [vmem:[%s11503_s4 + $0x40] sm:$0xff] }
 0x27e   :  { %v8576_v62 = vpack.c.bf16 %v1711_v21, %v1707_v26  ;;  %v1726_v26 = vld [vmem:[%s11503_s4 + $0xf0] sm:$0xff] }
 0x27f   :  { %5411 = vmatpush1.bf16.msra.mxu0 %v8125_v31  ;;  %5443 = vmatpush1.bf16.msra.mxu1 %v8396_v5  ;;  %v1497_v31 = vld [vmem:[%s11501_s3 + $0x118] sm:$0xff]  ;;  %v8659_v21 = vpack.c.bf16 %v1726_v26, %v1722_v2  ;;  %v1740_v2 = vld [vmem:[%s11503_s4 + $0x160] sm:$0xff] }
 0x280   :  { %5413 = vmatprep.subr.bf16.mxu0 %v8129_v9  ;;  %5445 = vmatprep.subr.bf16.mxu1 %v8400_v13  ;;  %v1501_v9 = vld [vmem:[%s11501_s3 + $0x138] sm:$0xff] }
 0x281   :  { %v8442_v36 = vpack.c.bf16 %v1501_v9, %v1497_v31  ;;  %v8578_v31 = vpack.c.bf16 %v1708_v52, %v1704_v14  ;;  %v1706_v9 = vld [vmem:[%s11503_s4 + $0x50] sm:$0xff]  ;;  %v1729_v14 = vld [vmem:[%s11503_s4 + $0x108] sm:$0xff] }
 0x282   :  { %v8587_v28 = vpack.c.bf16 %v1710_v58, %v1706_v9  ;;  %v1733_v52 = vld [vmem:[%s11503_s4 + $0x128] sm:$0xff]  ;;  %v1731_v9 = vld [vmem:[%s11503_s4 + $0x118] sm:$0xff] }
 0x283   :  { %5415 = vmatpush1.bf16.msra.mxu0 %v8147_v35  ;;  %5447 = vmatpush1.bf16.msra.mxu1 %v8418_v34  ;;  %v1505_v35 = vld [vmem:[%s11501_s3 + $0x158] sm:$0xff]  ;;  %v8673_v58 = vpack.c.bf16 %v1733_v52, %v1729_v14  ;;  %v1738_v52 = vld [vmem:[%s11503_s4 + $0x150] sm:$0xff] }
 0x284   :  { %5417 = vmatprep.subr.bf16.mxu0 %v8151_v55  ;;  %5449 = vmatprep.subr.bf16.mxu1 %v8422_v57  ;;  %v1509_v55 = vld [vmem:[%s11501_s3 + $0x178] sm:$0xff] }
 0x285   :  { %v8462_v8 = vpack.c.bf16 %v1509_v55, %v1505_v35  ;;  %v1713_v35 = vld [vmem:[%s11503_s4 + $0x88] sm:$0xff] }
 0x286   :  { %v1717_v55 = vld [vmem:[%s11503_s4 + $0xa8] sm:$0xff] }
 0x287   :  { %5419 = vmatpush1.bf16.msra.mxu0 %v8167_v42  ;;  %5451 = vmatpush1.bf16.msra.mxu1 %v8438_v40  ;;  %v1513_v42 = vld [vmem:[%s11501_s3 + $0x198] sm:$0xff]  ;;  %v8601_v15 = vpack.c.bf16 %v1717_v55, %v1713_v35  ;;  %v1728_v55 = vld [vmem:[%s11503_s4 + $0x100] sm:$0xff] }
 0x288   :  { %5421 = vmatprep.subr.bf16.mxu0 %v8171_v3  ;;  %5453 = vmatprep.subr.bf16.mxu1 %v8442_v36  ;;  %v1517_v3 = vld [vmem:[%s11501_s3 + $0x1b8] sm:$0xff] }
 0x289   :  { %v8482_v20 = vpack.c.bf16 %v1517_v3, %v1513_v42  ;;  %v1719_v42 = vld [vmem:[%s11503_s4 + $0xb8] sm:$0xff]  ;;  %v1712_v3 = vld [vmem:[%s11503_s4 + $0x80] sm:$0xff] }
 0x28a   :  { %v8612_v27 = vpack.c.bf16 %v1719_v42, %v1715_v11  ;;  %v1735_v35 = vld [vmem:[%s11503_s4 + $0x138] sm:$0xff]  ;;  %v1732_v11 = vld [vmem:[%s11503_s4 + $0x120] sm:$0xff] }
 0x28b   :  { %5423 = vmatpush1.bf16.msra.mxu0 %v8187_v47  ;;  %5455 = vmatpush1.bf16.msra.mxu1 %v8458_v29  ;;  %v1521_v47 = vld [vmem:[%s11501_s3 + $0x1d8] sm:$0xff]  ;;  %v8684_v42 = vpack.c.bf16 %v1735_v35, %v1731_v9  ;;  %v1742_v9 = vld [vmem:[%s11503_s4 + $0x170] sm:$0xff] }
 0x28c   :  { %5425 = vmatprep.subr.bf16.mxu0 %v8191_v6  ;;  %5457 = vmatprep.subr.bf16.mxu1 %v8462_v8  ;;  %v1525_v6 = vld [vmem:[%s11501_s3 + $0x1f8] sm:$0xff]  ;;  %v8731_v35 = vpack.c.bf16 %v1742_v9, %v1738_v52  ;;  %v1750_v52 = vld [vmem:[%s11503_s4 + $0x1b0] sm:$0xff] }
 0x28d   :  { %v8502_v45 = vpack.c.bf16 %v1525_v6, %v1521_v47  ;;  %v8614_v47 = vpack.c.bf16 %v1716_v23, %v1712_v3  ;;  %v1714_v6 = vld [vmem:[%s11503_s4 + $0x90] sm:$0xff]  ;;  %v8686_v3 = vpack.c.bf16 %v1732_v11, %v1728_v55  ;;  %v1745_v55 = vld [vmem:[%s11503_s4 + $0x188] sm:$0xff] }
 0x28e   :  { %v1730_v23 = vld [vmem:[%s11503_s4 + $0x110] sm:$0xff]  ;;  %v1749_v11 = vld [vmem:[%s11503_s4 + $0x1a8] sm:$0xff] }
 0x28f   :  { %5427 = vmatpush1.bf16.msra.mxu0 %v8207_v53  ;;  %5459 = vmatpush1.bf16.msra.mxu1 %v8478_v19  ;;  %v8512_v53 = vpack.c.bf16 %v1524_v60, %v1520_v49  ;;  %v1718_v49 = vld [vmem:[%s11503_s4 + $0xb0] sm:$0xff] }
 0x290   :  { %5429 = vmatprep.subr.bf16.mxu0 %v8211_v56  ;;  %5461 = vmatprep.subr.bf16.mxu1 %v8482_v20  ;;  %v1697_v56 = vld [vmem:[%s11503_s4 + $0x8] sm:$0xff]  ;;  %v8623_v60 = vpack.c.bf16 %v1718_v49, %v1714_v6  ;;  %v1734_v6 = vld [vmem:[%s11503_s4 + $0x130] sm:$0xff] }
 0x291   :  { %v8695_v49 = vpack.c.bf16 %v1734_v6, %v1730_v23  ;;  %v1747_v23 = vld [vmem:[%s11503_s4 + $0x198] sm:$0xff]  ;;  %v8745_v6 = vpack.c.bf16 %v1749_v11, %v1745_v55  ;;  %v1753_v55 = vld [vmem:[%s11503_s4 + $0x1c8] sm:$0xff] }
 0x292   :  { %v1757_v11 = vld [vmem:[%s11503_s4 + $0x1e8] sm:$0xff] }
 0x293   :  { %5431 = vmatpush1.bf16.msra.mxu0 %v8227_v59  ;;  %5463 = vmatpush1.bf16.msra.mxu1 %v8498_v33  ;;  %v1701_v59 = vld [vmem:[%s11503_s4 + $0x28] sm:$0xff] }
 0x294   :  { %5433 = vmatprep.subr.bf16.mxu0 %v8231_v25  ;;  %5465 = vmatprep.subr.bf16.mxu1 %v8502_v45  ;;  %v1699_v25 = vld [vmem:[%s11503_s4 + $0x18] sm:$0xff]  ;;  %v8529_v61 = vpack.c.bf16 %v1701_v59, %v1697_v56  ;;  %v1721_v56 = vld [vmem:[%s11503_s4 + $0xc8] sm:$0xff] }
 0x295   :  { %v1725_v59 = vld [vmem:[%s11503_s4 + $0xe8] sm:$0xff] }
 0x297   :  { %5435 = vmatpush1.bf16.msra.mxu0 %v8241_v0  ;;  %5467 = vmatpush1.bf16.msra.mxu1 %v8512_v53  ;;  %v1703_v0 = vld [vmem:[%s11503_s4 + $0x38] sm:$0xff] }
 0x298   :  { %v8540_v10 = vpack.c.bf16 %v1703_v0, %v1699_v25  ;;  %5469 = vmatprep.subr.bf16.mxu0 %v8529_v61  ;;  %v1723_v25 = vld [vmem:[%s11503_s4 + $0xd8] sm:$0xff]  ;;  %v8637_v0 = vpack.c.bf16 %v1725_v59, %v1721_v56  ;;  %v1737_v56 = vld [vmem:[%s11503_s4 + $0x148] sm:$0xff] }
 0x299   :  { %v1741_v59 = vld [vmem:[%s11503_s4 + $0x168] sm:$0xff] }
 0x29a   :  { %1591 = vmatmul.mubr.f32.vlgmr.msra.gmra.mrb[8].mxu0 %v8376_v24  ;;  %1662 = vmatmul.mubr.f32.vlgmr.msra.gmra.mrb[20].mxu1 %v8376_v24  ;;  %v1698_v24 = vld [vmem:[%s11503_s4 + $0x10] sm:$0xff] }
 0x29b   :  { %v8551_v43 = vpack.c.bf16 %v1702_v38, %v1698_v24  ;;  %5533 = vmatprep.subr.bf16.mxu1 %v8540_v10  ;;  %5471 = vmatpush1.bf16.msra.mxu0 %v8542_v16  ;;  %v1724_v24 = vld [vmem:[%s11503_s4 + $0xe0] sm:$0xff]  ;;  %v8648_v38 = vpack.c.bf16 %v1727_v4, %v1723_v25  ;;  %v1739_v25 = vld [vmem:[%s11503_s4 + $0x158] sm:$0xff]  ;;  %v8709_v4 = vpack.c.bf16 %v1741_v59, %v1737_v56 }
 0x29c   :  { %5473 = vmatprep.subr.bf16.mxu0 %v8565_v12  ;;  %v8650_v63 = vpack.c.bf16 %v1724_v24, %v1720_v41  ;;  %v1743_v41 = vld [vmem:[%s11503_s4 + $0x178] sm:$0xff]  ;;  %v1736_v24 = vld [vmem:[%s11503_s4 + $0x140] sm:$0xff] }
 0x29d   :  { %5535 = vmatpush1.bf16.msra.mxu1 %v8551_v43  ;;  %v8720_v26 = vpack.c.bf16 %v1743_v41, %v1739_v25  ;;  %v8722_v14 = vpack.c.bf16 %v1740_v2, %v1736_v24  ;;  %v1751_v56 = vld [vmem:[%s11503_s4 + $0x1b8] sm:$0xff]  ;;  %v1744_v59 = vld [vmem:[%s11503_s4 + $0x180] sm:$0xff]  ;;  %v1746_v2 = vld [vmem:[%s11503_s4 + $0x190] sm:$0xff] }
 0x29e   :  { %5537 = vmatprep.subr.bf16.mxu1 %v8576_v62  ;;  %v1748_v25 = vld [vmem:[%s11503_s4 + $0x1a0] sm:$0xff]  ;;  %v8756_v41 = vpack.c.bf16 %v1751_v56, %v1747_v23  ;;  %v8767_v9 = vpack.c.bf16 %v1750_v52, %v1746_v2  ;;  %v1755_v23 = vld [vmem:[%s11503_s4 + $0x1d8] sm:$0xff]  ;;  %v8781_v56 = vpack.c.bf16 %v1757_v11, %v1753_v55  ;;  %v1754_v55 = vld [vmem:[%s11503_s4 + $0x1d0] sm:$0xff] }
 0x29f   :  { %5475 = vmatpush1.bf16.msra.mxu0 %v8578_v31  ;;  %v8758_v24 = vpack.c.bf16 %v1748_v25, %v1744_v59  ;;  %v1759_v59 = vld [vmem:[%s11503_s4 + $0x1f8] sm:$0xff]  ;;  %v1752_v25 = vld [vmem:[%s11503_s4 + $0x1c0] sm:$0xff]  ;;  %v1758_v11 = vld [vmem:[%s11503_s4 + $0x1f0] sm:$0xff] }
 0x2a0   :  { %5477 = vmatprep.subr.bf16.mxu0 %v8601_v15  ;;  %11765 = vst [vmem:[#allocation5_spill] sm:$0xff] %v8756_v41  ;;  %11767 = vst [vmem:[#allocation7_spill] sm:$0xff] %v8767_v9  ;;  %v1756_v2 = vld [vmem:[%s11503_s4 + $0x1e0] sm:$0xff]  ;;  %v8792_v52 = vpack.c.bf16 %v1759_v59, %v1755_v23  ;;  %v8803_v22 = vpack.c.bf16 %v1758_v11, %v1754_v55  ;;  %v1761_v23 = vld [vmem:[%s11503_s4 + $0x208] sm:$0xff] }
 0x2a1   :  { %5539 = vmatpush1.bf16.msra.mxu1 %v8587_v28  ;;  %11766 = vst [vmem:[#allocation6_spill] sm:$0xff] %v8758_v24  ;;  %11768 = vst [vmem:[#allocation8_spill] sm:$0xff] %v8781_v56  ;;  %v8794_v7 = vpack.c.bf16 %v1756_v2, %v1752_v25  ;;  %v1765_v59 = vld [vmem:[%s11503_s4 + $0x228] sm:$0xff]  ;;  %v1763_v25 = vld [vmem:[%s11503_s4 + $0x218] sm:$0xff] }
 0x2a2   :  { %5541 = vmatprep.subr.bf16.mxu1 %v8612_v27  ;;  %11769 = vst [vmem:[#allocation9_spill] sm:$0xff] %v8792_v52  ;;  %11771 = vst [vmem:[#allocation11_spill] sm:$0xff] %v8803_v22  ;;  %v8817_v2 = vpack.c.bf16 %v1765_v59, %v1761_v23  ;;  %v1767_v55 = vld [vmem:[%s11503_s4 + $0x238] sm:$0xff]  ;;  %v1760_v11 = vld [vmem:[%s11503_s4 + $0x200] sm:$0xff] }
 0x2a3   :  { %5479 = vmatpush1.bf16.msra.mxu0 %v8614_v47  ;;  %11770 = vst [vmem:[#allocation10_spill] sm:$0xff] %v8794_v7  ;;  %v1762_v23 = vld [vmem:[%s11503_s4 + $0x210] sm:$0xff] }
 0x2a4   :  { %5481 = vmatprep.subr.bf16.mxu0 %v8637_v0  ;;  %11772 = vst [vmem:[#allocation12_spill] sm:$0xff] %v8817_v2  ;;  %v1766_v59 = vld [vmem:[%s11503_s4 + $0x230] sm:$0xff] }
 0x2a5   :  { %5543 = vmatpush1.bf16.msra.mxu1 %v8623_v60 }
 0x2a6   :  { %5545 = vmatprep.subr.bf16.mxu1 %v8648_v38 }
 0x2a7   :  { %5483 = vmatpush1.bf16.msra.mxu0 %v8650_v63 }
 0x2a8   :  { %5485 = vmatprep.subr.bf16.mxu0 %v8673_v58 }
 0x2a9   :  { %5547 = vmatpush1.bf16.msra.mxu1 %v8659_v21 }
 0x2aa   :  { %5549 = vmatprep.subr.bf16.mxu1 %v8684_v42 }
 0x2ab   :  { %5487 = vmatpush1.bf16.msra.mxu0 %v8686_v3 }
 0x2ac   :  { %5489 = vmatprep.subr.bf16.mxu0 %v8709_v4 }
 0x2ad   :  { %5551 = vmatpush1.bf16.msra.mxu1 %v8695_v49 }
 0x2ae   :  { %5553 = vmatprep.subr.bf16.mxu1 %v8720_v26 }
 0x2af   :  { %5491 = vmatpush1.bf16.msra.mxu0 %v8722_v14 }
 0x2b0   :  { %5493 = vmatprep.subr.bf16.mxu0 %v8745_v6 }
 0x2b1   :  { %5555 = vmatpush1.bf16.msra.mxu1 %v8731_v35 }
 0x2b2   :  { %5557 = vmatprep.subr.bf16.mxu1 %v8756_v41 }
 0x2b3   :  { %5495 = vmatpush1.bf16.msra.mxu0 %v8758_v24 }
 0x2b4   :  { %5497 = vmatprep.subr.bf16.mxu0 %v8781_v56 }
 0x2b5   :  { %5559 = vmatpush1.bf16.msra.mxu1 %v8767_v9  ;;  %v1810_v9 = vld [vmem:[%s11503_s4 + $0x390] sm:$0xff] }
 0x2b6   :  { %5561 = vmatprep.subr.bf16.mxu1 %v8792_v52  ;;  %v8830_v52 = vpack.c.bf16 %v1764_v51, %v1760_v11  ;;  %v1769_v51 = vld [vmem:[%s11503_s4 + $0x248] sm:$0xff] }
 0x2b7   :  { %5499 = vmatpush1.bf16.msra.mxu0 %v8794_v7  ;;  %v8828_v7 = vpack.c.bf16 %v1767_v55, %v1763_v25  ;;  %v1773_v25 = vld [vmem:[%s11503_s4 + $0x268] sm:$0xff]  ;;  %v1771_v55 = vld [vmem:[%s11503_s4 + $0x258] sm:$0xff] }
 0x2b8   :  { %11774 = vst [vmem:[#allocation14_spill] sm:$0xff] %v8830_v52  ;;  %5501 = vmatprep.subr.bf16.mxu0 %v8817_v2  ;;  %v8853_v11 = vpack.c.bf16 %v1773_v25, %v1769_v51  ;;  %v1770_v51 = vld [vmem:[%s11503_s4 + $0x250] sm:$0xff] }
 0x2b9   :  { %5563 = vmatpush1.bf16.msra.mxu1 %v8803_v22  ;;  %11773 = vst [vmem:[#allocation13_spill] sm:$0xff] %v8828_v7  ;;  %v8839_v22 = vpack.c.bf16 %v1766_v59, %v1762_v23  ;;  %v1775_v23 = vld [vmem:[%s11503_s4 + $0x278] sm:$0xff]  ;;  %v1768_v59 = vld [vmem:[%s11503_s4 + $0x240] sm:$0xff]  ;;  %v1774_v25 = vld [vmem:[%s11503_s4 + $0x270] sm:$0xff] }
 0x2ba   :  { %5565 = vmatprep.subr.bf16.mxu1 %v8828_v7  ;;  %11776 = vst [vmem:[#allocation16_spill] sm:$0xff] %v8853_v11  ;;  %v8864_v7 = vpack.c.bf16 %v1775_v23, %v1771_v55  ;;  %v1781_v55 = vld [vmem:[%s11503_s4 + $0x2a8] sm:$0xff]  ;;  %v1779_v23 = vld [vmem:[%s11503_s4 + $0x298] sm:$0xff] }
 0x2bb   :  { %11775 = vst [vmem:[#allocation15_spill] sm:$0xff] %v8839_v22  ;;  %5503 = vmatpush1.bf16.msra.mxu0 %v8830_v52  ;;  %v1772_v52 = vld [vmem:[%s11503_s4 + $0x260] sm:$0xff] }
 0x2bc   :  { %11777 = vst [vmem:[#allocation17_spill] sm:$0xff] %v8864_v7  ;;  %v8866_v2 = vpack.c.bf16 %v1772_v52, %v1768_v59  ;;  %5505 = vmatprep.subr.bf16.mxu0 %v8853_v11  ;;  %v1777_v52 = vld [vmem:[%s11503_s4 + $0x288] sm:$0xff] }
 0x2bd   :  { %5567 = vmatpush1.bf16.msra.mxu1 %v8839_v22  ;;  %v8875_v22 = vpack.c.bf16 %v1774_v25, %v1770_v51  ;;  %v8889_v59 = vpack.c.bf16 %v1781_v55, %v1777_v52  ;;  %v1783_v51 = vld [vmem:[%s11503_s4 + $0x2b8] sm:$0xff]  ;;  %v1776_v25 = vld [vmem:[%s11503_s4 + $0x280] sm:$0xff]  ;;  %v1778_v52 = vld [vmem:[%s11503_s4 + $0x290] sm:$0xff] }
 0x2be   :  { %11778 = vst [vmem:[#allocation18_spill] sm:$0xff] %v8866_v2  ;;  %5569 = vmatprep.subr.bf16.mxu1 %v8864_v7  ;;  %v8900_v7 = vpack.c.bf16 %v1783_v51, %v1779_v23  ;;  %v1782_v55 = vld [vmem:[%s11503_s4 + $0x2b0] sm:$0xff]  ;;  %v1789_v23 = vld [vmem:[%s11503_s4 + $0x2e8] sm:$0xff]  ;;  %v1787_v51 = vld [vmem:[%s11503_s4 + $0x2d8] sm:$0xff] }
 0x2bf   :  { %11779 = vst [vmem:[#allocation19_spill] sm:$0xff] %v8875_v22  ;;  %5507 = vmatpush1.bf16.msra.mxu0 %v8866_v2  ;;  %11780 = vst [vmem:[#allocation20_spill] sm:$0xff] %v8889_v59  ;;  %v1780_v2 = vld [vmem:[%s11503_s4 + $0x2a0] sm:$0xff] }
 0x2c0   :  { %11781 = vst [vmem:[#allocation21_spill] sm:$0xff] %v8900_v7  ;;  %v8902_v11 = vpack.c.bf16 %v1780_v2, %v1776_v25  ;;  %5509 = vmatprep.subr.bf16.mxu0 %v8889_v59  ;;  %v1785_v2 = vld [vmem:[%s11503_s4 + $0x2c8] sm:$0xff] }
 0x2c1   :  { %5571 = vmatpush1.bf16.msra.mxu1 %v8875_v22  ;;  %v8911_v22 = vpack.c.bf16 %v1782_v55, %v1778_v52  ;;  %v8925_v25 = vpack.c.bf16 %v1789_v23, %v1785_v2  ;;  %v1791_v52 = vld [vmem:[%s11503_s4 + $0x2f8] sm:$0xff]  ;;  %v1784_v55 = vld [vmem:[%s11503_s4 + $0x2c0] sm:$0xff]  ;;  %v1786_v2 = vld [vmem:[%s11503_s4 + $0x2d0] sm:$0xff] }
 0x2c2   :  { %11782 = vst [vmem:[#allocation22_spill] sm:$0xff] %v8902_v11  ;;  %5573 = vmatprep.subr.bf16.mxu1 %v8900_v7  ;;  %v8936_v7 = vpack.c.bf16 %v1791_v52, %v1787_v51  ;;  %v1790_v23 = vld [vmem:[%s11503_s4 + $0x2f0] sm:$0xff]  ;;  %v1797_v51 = vld [vmem:[%s11503_s4 + $0x328] sm:$0xff]  ;;  %v1795_v52 = vld [vmem:[%s11503_s4 + $0x318] sm:$0xff] }
 0x2c3   :  { %11783 = vst [vmem:[#allocation23_spill] sm:$0xff] %v8911_v22  ;;  %5511 = vmatpush1.bf16.msra.mxu0 %v8902_v11  ;;  %11784 = vst [vmem:[#allocation24_spill] sm:$0xff] %v8925_v25  ;;  %v1788_v11 = vld [vmem:[%s11503_s4 + $0x2e0] sm:$0xff] }
 0x2c4   :  { %11785 = vst [vmem:[#allocation25_spill] sm:$0xff] %v8936_v7  ;;  %v8938_v59 = vpack.c.bf16 %v1788_v11, %v1784_v55  ;;  %5513 = vmatprep.subr.bf16.mxu0 %v8925_v25  ;;  %v1793_v11 = vld [vmem:[%s11503_s4 + $0x308] sm:$0xff] }
 0x2c5   :  { %5575 = vmatpush1.bf16.msra.mxu1 %v8911_v22  ;;  %v8947_v22 = vpack.c.bf16 %v1790_v23, %v1786_v2  ;;  %v8961_v55 = vpack.c.bf16 %v1797_v51, %v1793_v11  ;;  %v1799_v2 = vld [vmem:[%s11503_s4 + $0x338] sm:$0xff]  ;;  %v1792_v23 = vld [vmem:[%s11503_s4 + $0x300] sm:$0xff]  ;;  %v1794_v11 = vld [vmem:[%s11503_s4 + $0x310] sm:$0xff] }
 0x2c6   :  { %11786 = vst [vmem:[#allocation26_spill] sm:$0xff] %v8938_v59  ;;  %5577 = vmatprep.subr.bf16.mxu1 %v8936_v7  ;;  %v8972_v7 = vpack.c.bf16 %v1799_v2, %v1795_v52  ;;  %v1798_v51 = vld [vmem:[%s11503_s4 + $0x330] sm:$0xff]  ;;  %v1805_v52 = vld [vmem:[%s11503_s4 + $0x368] sm:$0xff]  ;;  %v1803_v2 = vld [vmem:[%s11503_s4 + $0x358] sm:$0xff] }
 0x2c7   :  { %11787 = vst [vmem:[#allocation27_spill] sm:$0xff] %v8947_v22  ;;  %5515 = vmatpush1.bf16.msra.mxu0 %v8938_v59  ;;  %11788 = vst [vmem:[#allocation28_spill] sm:$0xff] %v8961_v55  ;;  %v1796_v59 = vld [vmem:[%s11503_s4 + $0x320] sm:$0xff] }
 0x2c8   :  { %11789 = vst [vmem:[#allocation29_spill] sm:$0xff] %v8972_v7  ;;  %v8974_v25 = vpack.c.bf16 %v1796_v59, %v1792_v23  ;;  %5517 = vmatprep.subr.bf16.mxu0 %v8961_v55  ;;  %v1801_v59 = vld [vmem:[%s11503_s4 + $0x348] sm:$0xff] }
 0x2c9   :  { %5579 = vmatpush1.bf16.msra.mxu1 %v8947_v22  ;;  %v8983_v22 = vpack.c.bf16 %v1798_v51, %v1794_v11  ;;  %v8997_v23 = vpack.c.bf16 %v1805_v52, %v1801_v59  ;;  %v1807_v11 = vld [vmem:[%s11503_s4 + $0x378] sm:$0xff]  ;;  %v1800_v51 = vld [vmem:[%s11503_s4 + $0x340] sm:$0xff]  ;;  %v1802_v59 = vld [vmem:[%s11503_s4 + $0x350] sm:$0xff] }
 0x2ca   :  { %11790 = vst [vmem:[#allocation30_spill] sm:$0xff] %v8974_v25  ;;  %5581 = vmatprep.subr.bf16.mxu1 %v8972_v7  ;;  %v9008_v7 = vpack.c.bf16 %v1807_v11, %v1803_v2  ;;  %v1806_v52 = vld [vmem:[%s11503_s4 + $0x370] sm:$0xff]  ;;  %v1811_v2 = vld [vmem:[%s11503_s4 + $0x398] sm:$0xff] }
 0x2cb   :  { %11791 = vst [vmem:[#allocation31_spill] sm:$0xff] %v8983_v22  ;;  %5519 = vmatpush1.bf16.msra.mxu0 %v8974_v25  ;;  %11792 = vst [vmem:[#allocation32_spill] sm:$0xff] %v8997_v23  ;;  %v1804_v25 = vld [vmem:[%s11503_s4 + $0x360] sm:$0xff]  ;;  %v9022_v56 = vpack.c.bf16 %v1806_v52, %v1802_v59  ;;  %v1815_v11 = vld [vmem:[%s11503_s4 + $0x3b8] sm:$0xff] }
 0x2cc   :  { %11793 = vst [vmem:[#allocation33_spill] sm:$0xff] %v9008_v7  ;;  %v9010_v55 = vpack.c.bf16 %v1804_v25, %v1800_v51  ;;  %5521 = vmatprep.subr.bf16.mxu0 %v8997_v23  ;;  %v1813_v25 = vld [vmem:[%s11503_s4 + $0x3a8] sm:$0xff]  ;;  %v9037_v59 = vpack.c.bf16 %v1815_v11, %v1811_v2  ;;  %v1808_v52 = vld [vmem:[%s11503_s4 + $0x380] sm:$0xff] }
 0x2cd   :  { %5583 = vmatpush1.bf16.msra.mxu1 %v8983_v22  ;;  %v1809_v22 = vld [vmem:[%s11503_s4 + $0x388] sm:$0xff]  ;;  %11795 = vst [vmem:[#allocation35_spill] sm:$0xff] %v9022_v56  ;;  %v1812_v23 = vld [vmem:[%s11503_s4 + $0x3a0] sm:$0xff] }
 0x2ce   :  { %11794 = vst [vmem:[#allocation34_spill] sm:$0xff] %v9010_v55  ;;  %5585 = vmatprep.subr.bf16.mxu1 %v9008_v7  ;;  %v9035_v51 = vpack.c.bf16 %v1813_v25, %v1809_v22  ;;  %11797 = vst [vmem:[#allocation37_spill] sm:$0xff] %v9037_v59  ;;  %v9049_v7 = vpack.c.bf16 %v1812_v23, %v1808_v52  ;;  %v1814_v22 = vld [vmem:[%s11503_s4 + $0x3b0] sm:$0xff]  ;;  %v1817_v25 = vld [vmem:[%s11503_s4 + $0x3c8] sm:$0xff] }
 0x2cf   :  { %5523 = vmatpush1.bf16.msra.mxu0 %v9010_v55  ;;  %v1821_v2 = vld [vmem:[%s11503_s4 + $0x3e8] sm:$0xff]  ;;  %v9062_v11 = vpack.c.bf16 %v1814_v22, %v1810_v9  ;;  %v1819_v52 = vld [vmem:[%s11503_s4 + $0x3d8] sm:$0xff]  ;;  %v1816_v55 = vld [vmem:[%s11503_s4 + $0x3c0] sm:$0xff] }
 0x2d0   :  { %11796 = vst [vmem:[#allocation36_spill] sm:$0xff] %v9035_v51  ;;  %11798 = vst [vmem:[#allocation38_spill] sm:$0xff] %v9049_v7  ;;  %5525 = vmatprep.subr.bf16.mxu0 %v9035_v51  ;;  %v9064_v23 = vpack.c.bf16 %v1821_v2, %v1817_v25  ;;  %v1820_v9 = vld [vmem:[%s11503_s4 + $0x3e0] sm:$0xff]  ;;  %v1818_v22 = vld [vmem:[%s11503_s4 + $0x3d0] sm:$0xff] }
 0x2d1   :  { %5587 = vmatpush1.bf16.msra.mxu1 %v9022_v56  ;;  %11799 = vst [vmem:[#allocation39_spill] sm:$0xff] %v9062_v11  ;;  %v1823_v56 = vld [vmem:[%s11503_s4 + $0x3f8] sm:$0xff]  ;;  %v1822_v25 = vld [vmem:[%s11503_s4 + $0x3f0] sm:$0xff]  ;;  %v9087_v2 = vpack.c.bf16 %v1820_v9, %v1816_v55 }
 0x2d2   :  { %5589 = vmatprep.subr.bf16.mxu1 %v9037_v59  ;;  %11800 = vst [vmem:[#allocation40_spill] sm:$0xff] %v9064_v23  ;;  %v9075_v24 = vpack.c.bf16 %v1823_v56, %v1819_v52  ;;  %v2002_v56 = vld [vmem:[%s11501_s3 + $0x8] sm:$0xff]  ;;  %v9097_v59 = vpack.c.bf16 %v1822_v25, %v1818_v22 }
 0x2d3   :  { %5527 = vmatpush1.bf16.msra.mxu0 %v9049_v7  ;;  %11802 = vst [vmem:[#allocation42_spill] sm:$0xff] %v9087_v2  ;;  %v2006_v52 = vld [vmem:[%s11501_s3 + $0x28] sm:$0xff] }
 0x2d4   :  { %11801 = vst [vmem:[#allocation41_spill] sm:$0xff] %v9075_v24  ;;  %5529 = vmatprep.subr.bf16.mxu0 %v9064_v23  ;;  %11803 = vst [vmem:[#allocation55_spill] sm:$0xff] %v9097_v59  ;;  %v9099_v51 = vpack.c.bf16 %v2006_v52, %v2002_v56 }
 0x2d5   :  { %5591 = vmatpush1.bf16.msra.mxu1 %v9062_v11 }
 0x2d6   :  { %11804 = vst [vmem:[#allocation56_spill] sm:$0xff] %v9099_v51  ;;  %5593 = vmatprep.subr.bf16.mxu1 %v9075_v24 }
 0x2d7   :  { %5531 = vmatpush1.bf16.msra.mxu0 %v9087_v2 }
 0x2d8   :  { %5597 = vmatprep.subr.bf16.mxu0 %v9099_v51 }
 0x2d9   :  { %5595 = vmatpush1.bf16.msra.mxu1 %v9097_v59 }
 0x2da   :  { %5629 = vmatprep.subr.bf16.mxu1 %v8320_v46 }
 0x34d   :  { %v1355_v55 = vpop.f32.mrb[6].mxu0  ;;  %v1426_v9 = vpop.f32.mrb[34].mxu1 }
 0x34e   :  { %v1356_v11 = vadd.f32 %v1355_v55, %v8326_v18  ;;  %v1357_v7 = vpop.f32.mrb[7].mxu0  ;;  %v1428_v23 = vpop.f32.mrb[35].mxu1  ;;  %v1427_v59 = vadd.f32 %v1426_v9, %v8344_v39  ;;  %v11805_v39 = vld [vmem:[#allocation43_spill] sm:$0xff] }
 0x34f   :  { %v1358_v22 = vadd.f32 %v1357_v7, %v8331_v1  ;;  %v1429_v52 = vadd.f32 %v1428_v23, %v8338_v32 }
 0x350   :  { %v4848_v25 = vmul.f32 -1.442695, %v1356_v11 }
 0x351   :  { %v4849_v56 = vmul.f32 -1.442695, %v1358_v22  ;;  %v4850_v2 = vmul.f32 -1.442695, %v1429_v52 }
 0x352   :  { %6701 = vpow2.f32 %v4848_v25 }
 0x353   :  { %6703 = vpow2.f32 %v4849_v56 }
 0x354   :  { %6705 = vpow2.f32 %v4850_v2 }
 0x355   :  { %6707 = vtanh.f32 %v1427_v59 }
 0x35c   :  { %v6702_v51 = vpop.eup %6701 }
 0x35d   :  { %v6704_v24 = vpop.eup %6703  ;;  %v1434_v46 = vadd.f32 1.0, %v6702_v51 }
 0x35e   :  { %v1440_v41 = vadd.f32 1.0, %v6704_v24  ;;  %v6706_v18 = vpop.eup %6705  ;;  %v11806_v24 = vld [vmem:[#allocation44_spill] sm:$0xff] }
 0x35f   :  { %6709 = vrcp.f32 %v1434_v46  ;;  %v6708_v55 = vpop.eup %6707  ;;  %v1447_v22 = vadd.f32 1.0, %v6706_v18 }
 0x360   :  { %6711 = vrcp.f32 %v1440_v41 }
 0x361   :  { %6713 = vrcp.f32 %v1447_v22 }
 0x369   :  { %v6710_v1 = vpop.eup %6709 }
 0x36a   :  { %v6712_v7 = vpop.eup %6711  ;;  %v1451_v11 = vmul.f32 %v6710_v1, %v6708_v55 }
 0x36b   :  { %v1450_v25 = vmul.f32 %v6712_v7, %v8347_v48  ;;  %v6714_v48 = vpop.eup %6713 }
 0x36d   :  { %v1592_v32 = vpop.f32.mrb[8].mxu0  ;;  %v1663_v23 = vpop.f32.mrb[20].mxu1  ;;  %v9111_v56 = vadd.f32 %v1451_v11, %v1450_v25 }
 0x36e   :  { %v1668_v51 = vadd.f32 %v1592_v32, %v11805_v39  ;;  %v1594_v2 = vpop.f32.mrb[9].mxu0  ;;  %v1665_v59 = vpop.f32.mrb[21].mxu1  ;;  %v6624_v1 = vadd.f32 %v1663_v23, %v8082_v30 }
 0x36f   :  { %v1669_v9 = vadd.f32 %v1594_v2, %v11806_v24  ;;  %6715 = vtanh.f32 %v9111_v56  ;;  %v6625_v46 = vadd.f32 %v1665_v59, %v8084_v50 }
 0x370   :  { %v4851_v41 = vmul.f32 -1.442695, %v1668_v51 }
 0x371   :  { %v4852_v52 = vmul.f32 -1.442695, %v1669_v9  ;;  %v4853_v55 = vmul.f32 -1.442695, %v6625_v46  ;;  %v2005_v46 = vld [vmem:[%s11501_s3 + $0x20] sm:$0xff] }
 0x372   :  { %6717 = vpow2.f32 %v4851_v41 }
 0x373   :  { %6719 = vpow2.f32 %v4852_v52  ;;  %v2001_v52 = vld [vmem:[%s11501_s3] sm:$0xff] }
 0x374   :  { %6721 = vpow2.f32 %v4853_v55 }
 0x375   :  { %6723 = vtanh.f32 %v6624_v1  ;;  %v9138_v1 = vpack.c.bf16 %v2005_v46, %v2001_v52  ;;  %v2025_v46 = vld [vmem:[%s11501_s3 + $0xc0] sm:$0xff] }
 0x379   :  { %v6716_v18 = vpop.eup %6715 }
 0x37a   :  { %v9118_v7 = vmul.f32 %v6716_v18, %v6714_v48  ;;  %v2010_v48 = vld [vmem:[%s11501_s3 + $0x48] sm:$0xff] }
 0x37c   :  { %11807 = vst [vmem:[#allocation43_spill] sm:$0xff] %v9118_v7  ;;  %v6718_v11 = vpop.eup %6717  ;;  %1892 = vmatprep.mubr.f32.mxu0 %v9118_v7  ;;  %1963 = vmatprep.mubr.f32.mxu1 %v9118_v7  ;;  %v2842_v7 = vld [vmem:[%s11503_s4 + $0x220] sm:$0xff] }
 0x37d   :  { %v6720_v22 = vpop.eup %6719  ;;  %v1675_v25 = vadd.f32 1.0, %v6718_v11 }
 0x37e   :  { %v1681_v32 = vadd.f32 1.0, %v6720_v22  ;;  %v6722_v39 = vpop.eup %6721 }
 0x37f   :  { %6725 = vrcp.f32 %v1675_v25  ;;  %v6724_v51 = vpop.eup %6723  ;;  %v1688_v23 = vadd.f32 1.0, %v6722_v39  ;;  %v2009_v25 = vld [vmem:[%s11501_s3 + $0x40] sm:$0xff]  ;;  %v2018_v39 = vld [vmem:[%s11501_s3 + $0x88] sm:$0xff] }
 0x380   :  { %6727 = vrcp.f32 %v1681_v32  ;;  %v2013_v32 = vld [vmem:[%s11501_s3 + $0x60] sm:$0xff] }
 0x381   :  { %6729 = vrcp.f32 %v1688_v23  ;;  %v2021_v23 = vld [vmem:[%s11501_s3 + $0xa0] sm:$0xff] }
 0x389   :  { %v6726_v2 = vpop.eup %6725 }
 0x38a   :  { %v6728_v59 = vpop.eup %6727  ;;  %v1692_v24 = vmul.f32 %v6726_v2, %v6724_v51  ;;  %v2022_v51 = vld [vmem:[%s11501_s3 + $0xa8] sm:$0xff]  ;;  %v9160_v2 = vpack.c.bf16 %v2013_v32, %v2009_v25  ;;  %v2037_v25 = vld [vmem:[%s11501_s3 + $0x120] sm:$0xff] }
 0x38b   :  { %v1691_v9 = vmul.f32 %v6728_v59, %v8359_v54  ;;  %v2014_v54 = vld [vmem:[%s11501_s3 + $0x68] sm:$0xff]  ;;  %v6730_v18 = vpop.eup %6729  ;;  %v9164_v59 = vpack.c.bf16 %v2022_v51, %v2018_v39  ;;  %v2041_v51 = vld [vmem:[%s11501_s3 + $0x140] sm:$0xff] }
 0x38c   :  { %v9142_v22 = vpack.c.bf16 %v2014_v54, %v2010_v48  ;;  %v2029_v48 = vld [vmem:[%s11501_s3 + $0xe0] sm:$0xff]  ;;  %v2038_v54 = vld [vmem:[%s11501_s3 + $0x128] sm:$0xff] }
 0x38d   :  { %v9123_v41 = vadd.f32 %v1692_v24, %v1691_v9  ;;  %v2017_v24 = vld [vmem:[%s11501_s3 + $0x80] sm:$0xff]  ;;  %v2030_v9 = vld [vmem:[%s11501_s3 + $0xe8] sm:$0xff] }
 0x38e   :  { %v2046_v32 = vld [vmem:[%s11501_s3 + $0x168] sm:$0xff] }
 0x38f   :  { %6731 = vtanh.f32 %v9123_v41 }
 0x399   :  { %v6732_v55 = vpop.eup %6731 }
 0x39a   :  { %v9140_v11 = vmul.f32 %v6732_v55, %v6730_v18  ;;  %v2033_v55 = vld [vmem:[%s11501_s3 + $0x100] sm:$0xff] }
 0x39c   :  { %1893 = vmatmul.mubr.f32.vlgmr.msra.gmra.mrb[10].mxu0 %v9140_v11  ;;  %1964 = vmatmul.mubr.f32.vlgmr.msra.gmra.mrb[36].mxu1 %v9140_v11 }
 0x39d   :  { %5599 = vmatpush1.bf16.msra.mxu0 %v9138_v1  ;;  %5631 = vmatpush1.bf16.msra.mxu1 %v8374_v17  ;;  %v2026_v17 = vld [vmem:[%s11501_s3 + $0xc8] sm:$0xff] }
 0x39e   :  { %5601 = vmatprep.subr.bf16.mxu0 %v9142_v22  ;;  %5633 = vmatprep.subr.bf16.mxu1 %v8378_v37  ;;  %v9182_v37 = vpack.c.bf16 %v2021_v23, %v2017_v24  ;;  %v9186_v52 = vpack.c.bf16 %v2030_v9, %v2026_v17  ;;  %v2045_v24 = vld [vmem:[%s11501_s3 + $0x160] sm:$0xff]  ;;  %v2054_v23 = vld [vmem:[%s11501_s3 + $0x1a8] sm:$0xff] }
 0x39f   :  { %2129 = vmatprep.mubr.f32.mxu0 %v11724_v44  ;;  %2200 = vmatprep.mubr.f32.mxu1 %v11724_v44  ;;  %v2049_v9 = vld [vmem:[%s11501_s3 + $0x180] sm:$0xff] }
 0x3a1   :  { %5603 = vmatpush1.bf16.msra.mxu0 %v9160_v2  ;;  %5635 = vmatpush1.bf16.msra.mxu1 %v8396_v5  ;;  %v2034_v5 = vld [vmem:[%s11501_s3 + $0x108] sm:$0xff] }
 0x3a2   :  { %5605 = vmatprep.subr.bf16.mxu0 %v9164_v59  ;;  %5637 = vmatprep.subr.bf16.mxu1 %v8400_v13  ;;  %v9202_v13 = vpack.c.bf16 %v2029_v48, %v2025_v46  ;;  %v9206_v18 = vpack.c.bf16 %v2038_v54, %v2034_v5  ;;  %v2053_v46 = vld [vmem:[%s11501_s3 + $0x1a0] sm:$0xff]  ;;  %v2062_v48 = vld [vmem:[%s11501_s3 + $0x1e8] sm:$0xff] }
 0x3a3   :  { %v2057_v54 = vld [vmem:[%s11501_s3 + $0x1c0] sm:$0xff] }
 0x3a5   :  { %5607 = vmatpush1.bf16.msra.mxu0 %v9182_v37  ;;  %5639 = vmatpush1.bf16.msra.mxu1 %v8418_v34  ;;  %v2042_v34 = vld [vmem:[%s11501_s3 + $0x148] sm:$0xff] }
 0x3a6   :  { %5609 = vmatprep.subr.bf16.mxu0 %v9186_v52  ;;  %5641 = vmatprep.subr.bf16.mxu1 %v8422_v57  ;;  %v9222_v57 = vpack.c.bf16 %v2037_v25, %v2033_v55  ;;  %v9226_v39 = vpack.c.bf16 %v2046_v32, %v2042_v34  ;;  %v2061_v55 = vld [vmem:[%s11501_s3 + $0x1e0] sm:$0xff]  ;;  %v11838_v25 = vld [vmem:[#allocation35_spill] sm:$0xff]  ;;  %v11840_v32 = vld [vmem:[#allocation37_spill] sm:$0xff] }
 0x3a7   :  { %v11839_v34 = vld [vmem:[#allocation36_spill] sm:$0xff] }
 0x3a9   :  { %5611 = vmatpush1.bf16.msra.mxu0 %v9202_v13  ;;  %5643 = vmatpush1.bf16.msra.mxu1 %v8438_v40  ;;  %v2050_v40 = vld [vmem:[%s11501_s3 + $0x188] sm:$0xff] }
 0x3aa   :  { %5613 = vmatprep.subr.bf16.mxu0 %v9206_v18  ;;  %5645 = vmatprep.subr.bf16.mxu1 %v8442_v36  ;;  %v9242_v36 = vpack.c.bf16 %v2045_v24, %v2041_v51  ;;  %v9246_v17 = vpack.c.bf16 %v2054_v23, %v2050_v40  ;;  %v11841_v51 = vld [vmem:[#allocation38_spill] sm:$0xff]  ;;  %v11842_v24 = vld [vmem:[#allocation39_spill] sm:$0xff]  ;;  %v11843_v40 = vld [vmem:[#allocation40_spill] sm:$0xff] }
 0x3ab   :  { %v11844_v23 = vld [vmem:[#allocation41_spill] sm:$0xff] }
 0x3ad   :  { %5615 = vmatpush1.bf16.msra.mxu0 %v9222_v57  ;;  %5647 = vmatpush1.bf16.msra.mxu1 %v8458_v29  ;;  %v2058_v29 = vld [vmem:[%s11501_s3 + $0x1c8] sm:$0xff] }
 0x3ae   :  { %5617 = vmatprep.subr.bf16.mxu0 %v9226_v39  ;;  %5649 = vmatprep.subr.bf16.mxu1 %v8462_v8  ;;  %v9262_v8 = vpack.c.bf16 %v2053_v46, %v2049_v9  ;;  %v9266_v5 = vpack.c.bf16 %v2062_v48, %v2058_v29  ;;  %v11845_v9 = vld [vmem:[#allocation42_spill] sm:$0xff]  ;;  %v11846_v46 = vld [vmem:[#allocation55_spill] sm:$0xff]  ;;  %v11847_v29 = vld [vmem:[#allocation56_spill] sm:$0xff] }
 0x3af   :  { %v2543_v48 = vld [vmem:[%s11501_s3 + $0x18] sm:$0xff] }
 0x3b1   :  { %5619 = vmatpush1.bf16.msra.mxu0 %v9242_v36  ;;  %5651 = vmatpush1.bf16.msra.mxu1 %v8478_v19  ;;  %v9276_v19 = vpack.c.bf16 %v2061_v55, %v2057_v54  ;;  %v2547_v54 = vld [vmem:[%s11501_s3 + $0x38] sm:$0xff] }
 0x3b2   :  { %5621 = vmatprep.subr.bf16.mxu0 %v9246_v17  ;;  %5653 = vmatprep.subr.bf16.mxu1 %v8482_v20  ;;  %v11808_v20 = vld [vmem:[#allocation5_spill] sm:$0xff]  ;;  %v9355_v55 = vpack.c.bf16 %v2547_v54, %v2543_v48 }
 0x3b5   :  { %5623 = vmatpush1.bf16.msra.mxu0 %v9262_v8  ;;  %5655 = vmatpush1.bf16.msra.mxu1 %v8498_v33  ;;  %v11809_v33 = vld [vmem:[#allocation6_spill] sm:$0xff] }
 0x3b6   :  { %5625 = vmatprep.subr.bf16.mxu0 %v9266_v5  ;;  %5657 = vmatprep.subr.bf16.mxu1 %v8502_v45  ;;  %v11810_v45 = vld [vmem:[#allocation7_spill] sm:$0xff] }
 0x3b9   :  { %5627 = vmatpush1.bf16.msra.mxu0 %v9276_v19  ;;  %5659 = vmatpush1.bf16.msra.mxu1 %v8512_v53  ;;  %v11811_v53 = vld [vmem:[#allocation8_spill] sm:$0xff] }
 0x3ba   :  { %5661 = vmatprep.subr.bf16.mxu0 %v8529_v61  ;;  %5725 = vmatprep.subr.bf16.mxu1 %v8540_v10  ;;  %v11812_v61 = vld [vmem:[#allocation9_spill] sm:$0xff]  ;;  %v11813_v10 = vld [vmem:[#allocation10_spill] sm:$0xff] }
 0x3bc   :  { %2130 = vmatmul.mubr.f32.vlgmr.msra.gmra.mrb[12].mxu0 %v9140_v11  ;;  %2201 = vmatmul.mubr.f32.vlgmr.msra.gmra.mrb[22].mxu1 %v9140_v11  ;;  %v11837_v11 = vld [vmem:[#allocation34_spill] sm:$0xff] }
 0x3bd   :  { %5663 = vmatpush1.bf16.msra.mxu0 %v8542_v16  ;;  %5727 = vmatpush1.bf16.msra.mxu1 %v8551_v43  ;;  %v11814_v16 = vld [vmem:[#allocation11_spill] sm:$0xff]  ;;  %v11815_v43 = vld [vmem:[#allocation12_spill] sm:$0xff] }
 0x3be   :  { %5665 = vmatprep.subr.bf16.mxu0 %v8565_v12  ;;  %5729 = vmatprep.subr.bf16.mxu1 %v8576_v62  ;;  %v11816_v12 = vld [vmem:[#allocation13_spill] sm:$0xff]  ;;  %v11817_v62 = vld [vmem:[#allocation14_spill] sm:$0xff] }
 0x3c1   :  { %5667 = vmatpush1.bf16.msra.mxu0 %v8578_v31  ;;  %5731 = vmatpush1.bf16.msra.mxu1 %v8587_v28  ;;  %v11818_v31 = vld [vmem:[#allocation15_spill] sm:$0xff]  ;;  %v11819_v28 = vld [vmem:[#allocation16_spill] sm:$0xff] }
 0x3c2   :  { %5669 = vmatprep.subr.bf16.mxu0 %v8601_v15  ;;  %5733 = vmatprep.subr.bf16.mxu1 %v8612_v27  ;;  %v11820_v15 = vld [vmem:[#allocation17_spill] sm:$0xff]  ;;  %v11821_v27 = vld [vmem:[#allocation18_spill] sm:$0xff] }
 0x3c5   :  { %5671 = vmatpush1.bf16.msra.mxu0 %v8614_v47  ;;  %5735 = vmatpush1.bf16.msra.mxu1 %v8623_v60  ;;  %v11822_v47 = vld [vmem:[#allocation19_spill] sm:$0xff]  ;;  %v11823_v60 = vld [vmem:[#allocation20_spill] sm:$0xff] }
 0x3c6   :  { %5673 = vmatprep.subr.bf16.mxu0 %v8637_v0  ;;  %5737 = vmatprep.subr.bf16.mxu1 %v8648_v38  ;;  %v11824_v0 = vld [vmem:[#allocation21_spill] sm:$0xff]  ;;  %v11825_v38 = vld [vmem:[#allocation22_spill] sm:$0xff] }
 0x3c9   :  { %5675 = vmatpush1.bf16.msra.mxu0 %v8650_v63  ;;  %5739 = vmatpush1.bf16.msra.mxu1 %v8659_v21  ;;  %v11826_v63 = vld [vmem:[#allocation23_spill] sm:$0xff]  ;;  %v11827_v21 = vld [vmem:[#allocation24_spill] sm:$0xff] }
 0x3ca   :  { %5677 = vmatprep.subr.bf16.mxu0 %v8673_v58  ;;  %5741 = vmatprep.subr.bf16.mxu1 %v8684_v42  ;;  %v11828_v58 = vld [vmem:[#allocation25_spill] sm:$0xff]  ;;  %v11829_v42 = vld [vmem:[#allocation26_spill] sm:$0xff] }
 0x3cd   :  { %5679 = vmatpush1.bf16.msra.mxu0 %v8686_v3  ;;  %5743 = vmatpush1.bf16.msra.mxu1 %v8695_v49  ;;  %v11830_v3 = vld [vmem:[#allocation27_spill] sm:$0xff]  ;;  %v11831_v49 = vld [vmem:[#allocation28_spill] sm:$0xff] }
 0x3ce   :  { %5681 = vmatprep.subr.bf16.mxu0 %v8709_v4  ;;  %5745 = vmatprep.subr.bf16.mxu1 %v8720_v26  ;;  %v11832_v4 = vld [vmem:[#allocation29_spill] sm:$0xff]  ;;  %v11833_v26 = vld [vmem:[#allocation30_spill] sm:$0xff] }
 0x3d1   :  { %5683 = vmatpush1.bf16.msra.mxu0 %v8722_v14  ;;  %5747 = vmatpush1.bf16.msra.mxu1 %v8731_v35  ;;  %v11834_v14 = vld [vmem:[#allocation31_spill] sm:$0xff]  ;;  %v11835_v35 = vld [vmem:[#allocation32_spill] sm:$0xff] }
 0x3d2   :  { %5685 = vmatprep.subr.bf16.mxu0 %v8745_v6  ;;  %5749 = vmatprep.subr.bf16.mxu1 %v11808_v20  ;;  %v11836_v6 = vld [vmem:[#allocation33_spill] sm:$0xff]  ;;  %v9361_v20 = vld [vmem:[%s11505_s5] sm:$0xff] }
 0x3d5   :  { %5687 = vmatpush1.bf16.msra.mxu0 %v11809_v33  ;;  %5751 = vmatpush1.bf16.msra.mxu1 %v11810_v45  ;;  %v9366_v33 = vld [vmem:[%s11505_s5 + $0x8] sm:$0xff] }
 0x3d6   :  { %5689 = vmatprep.subr.bf16.mxu0 %v11811_v53  ;;  %5753 = vmatprep.subr.bf16.mxu1 %v11812_v61 }
 0x3d9   :  { %5691 = vmatpush1.bf16.msra.mxu0 %v11813_v10  ;;  %5755 = vmatpush1.bf16.msra.mxu1 %v11814_v16 }
 0x3da   :  { %5693 = vmatprep.subr.bf16.mxu0 %v11815_v43  ;;  %5757 = vmatprep.subr.bf16.mxu1 %v11816_v12 }
 0x3dd   :  { %5695 = vmatpush1.bf16.msra.mxu0 %v11817_v62  ;;  %5759 = vmatpush1.bf16.msra.mxu1 %v11818_v31  ;;  %v9373_v31 = vld [vmem:[%s11505_s5 + $0x18] sm:$0xff] }
 0x3de   :  { %5697 = vmatprep.subr.bf16.mxu0 %v11819_v28  ;;  %5761 = vmatprep.subr.bf16.mxu1 %v11820_v15  ;;  %v9379_v15 = vld [vmem:[%s11505_s5 + $0x10] sm:$0xff] }
 0x3e1   :  { %5699 = vmatpush1.bf16.msra.mxu0 %v11821_v27  ;;  %5763 = vmatpush1.bf16.msra.mxu1 %v11822_v47 }
 0x3e2   :  { %5701 = vmatprep.subr.bf16.mxu0 %v11823_v60  ;;  %5765 = vmatprep.subr.bf16.mxu1 %v11824_v0 }
 0x3e5   :  { %5703 = vmatpush1.bf16.msra.mxu0 %v11825_v38  ;;  %5767 = vmatpush1.bf16.msra.mxu1 %v11826_v63 }
 0x3e6   :  { %5705 = vmatprep.subr.bf16.mxu0 %v11827_v21  ;;  %5769 = vmatprep.subr.bf16.mxu1 %v11828_v58 }
 0x3e9   :  { %5707 = vmatpush1.bf16.msra.mxu0 %v11829_v42  ;;  %5771 = vmatpush1.bf16.msra.mxu1 %v11830_v3 }
 0x3ea   :  { %5709 = vmatprep.subr.bf16.mxu0 %v11831_v49  ;;  %5773 = vmatprep.subr.bf16.mxu1 %v11832_v4 }
 0x3ed   :  { %5711 = vmatpush1.bf16.msra.mxu0 %v11833_v26  ;;  %5775 = vmatpush1.bf16.msra.mxu1 %v11834_v14 }
 0x3ee   :  { %5713 = vmatprep.subr.bf16.mxu0 %v11835_v35  ;;  %5777 = vmatprep.subr.bf16.mxu1 %v11836_v6 }
 0x3f1   :  { %5715 = vmatpush1.bf16.msra.mxu0 %v11837_v11  ;;  %5779 = vmatpush1.bf16.msra.mxu1 %v11838_v25  ;;  %v11848_v11 = vld [vmem:[#allocation45_spill] sm:$0xff] }
 0x3f2   :  { %5717 = vmatprep.subr.bf16.mxu0 %v11839_v34  ;;  %5781 = vmatprep.subr.bf16.mxu1 %v11840_v32 }
 0x3f5   :  { %5719 = vmatpush1.bf16.msra.mxu0 %v11841_v51  ;;  %5783 = vmatpush1.bf16.msra.mxu1 %v11842_v24  ;;  %v11849_v51 = vld [vmem:[#allocation46_spill] sm:$0xff] }
 0x3f6   :  { %5721 = vmatprep.subr.bf16.mxu0 %v11843_v40  ;;  %5785 = vmatprep.subr.bf16.mxu1 %v11844_v23 }
 0x3f9   :  { %5723 = vmatpush1.bf16.msra.mxu0 %v11845_v9  ;;  %5787 = vmatpush1.bf16.msra.mxu1 %v11846_v46 }
 0x3fa   :  { %5789 = vmatprep.subr.bf16.mxu0 %v11847_v29  ;;  %5821 = vmatprep.subr.bf16.mxu1 %v9355_v55 }
 0x46f   :  { %v1894_v45 = vpop.f32.mrb[10].mxu0  ;;  %v1965_v53 = vpop.f32.mrb[36].mxu1 }
 0x470   :  { %v1895_v61 = vadd.f32 %v1894_v45, %v9361_v20  ;;  %v1896_v10 = vpop.f32.mrb[11].mxu0  ;;  %v1967_v16 = vpop.f32.mrb[37].mxu1  ;;  %v1966_v47 = vadd.f32 %v1965_v53, %v9379_v15 }
 0x471   :  { %v1897_v43 = vadd.f32 %v1896_v10, %v9366_v33  ;;  %v1968_v28 = vadd.f32 %v1967_v16, %v9373_v31 }
 0x472   :  { %v4854_v12 = vmul.f32 -1.442695, %v1895_v61 }
 0x473   :  { %v4855_v62 = vmul.f32 -1.442695, %v1897_v43  ;;  %v4856_v27 = vmul.f32 -1.442695, %v1968_v28 }
 0x474   :  { %6733 = vpow2.f32 %v4854_v12 }
 0x475   :  { %6735 = vpow2.f32 %v4855_v62 }
 0x476   :  { %6737 = vpow2.f32 %v4856_v27 }
 0x477   :  { %6739 = vtanh.f32 %v1966_v47 }
 0x47e   :  { %v6734_v60 = vpop.eup %6733 }
 0x47f   :  { %v6736_v0 = vpop.eup %6735  ;;  %v1973_v38 = vadd.f32 1.0, %v6734_v60 }
 0x480   :  { %v1979_v63 = vadd.f32 1.0, %v6736_v0  ;;  %v6738_v21 = vpop.eup %6737  ;;  %v2542_v0 = vld [vmem:[%s11501_s3 + $0x10] sm:$0xff] }
 0x481   :  { %6741 = vrcp.f32 %v1973_v38  ;;  %v6740_v58 = vpop.eup %6739  ;;  %v1986_v4 = vadd.f32 1.0, %v6738_v21  ;;  %v2546_v38 = vld [vmem:[%s11501_s3 + $0x30] sm:$0xff] }
 0x482   :  { %6743 = vrcp.f32 %v1979_v63  ;;  %v2551_v63 = vld [vmem:[%s11501_s3 + $0x58] sm:$0xff] }
 0x483   :  { %6745 = vrcp.f32 %v1986_v4  ;;  %v2550_v4 = vld [vmem:[%s11501_s3 + $0x50] sm:$0xff] }
 0x48b   :  { %v6742_v42 = vpop.eup %6741 }
 0x48c   :  { %v6744_v3 = vpop.eup %6743  ;;  %v1990_v49 = vmul.f32 %v6742_v42, %v6740_v58  ;;  %v9410_v42 = vpack.c.bf16 %v2546_v38, %v2542_v0  ;;  %v2774_v38 = vld [vmem:[%s11503_s4] sm:$0xff] }
 0x48d   :  { %v1989_v26 = vmul.f32 %v6744_v3, %v9111_v56  ;;  %v6746_v56 = vpop.eup %6745 }
 0x48f   :  { %v2131_v14 = vpop.f32.mrb[12].mxu0  ;;  %v2202_v35 = vpop.f32.mrb[22].mxu1  ;;  %v9383_v6 = vadd.f32 %v1990_v49, %v1989_v26  ;;  %v2554_v26 = vld [vmem:[%s11501_s3 + $0x70] sm:$0xff] }
 0x490   :  { %v2207_v25 = vadd.f32 %v2131_v14, %v11848_v11  ;;  %v2133_v34 = vpop.f32.mrb[13].mxu0  ;;  %v2204_v32 = vpop.f32.mrb[23].mxu1  ;;  %v6626_v48 = vadd.f32 %v2202_v35, %v8082_v30  ;;  %v2559_v14 = vld [vmem:[%s11501_s3 + $0x98] sm:$0xff]  ;;  %v9432_v11 = vpack.c.bf16 %v2554_v26, %v2550_v4  ;;  %v2783_v26 = vld [vmem:[%s11503_s4 + $0x48] sm:$0xff] }
 0x491   :  { %v2208_v24 = vadd.f32 %v2133_v34, %v11849_v51  ;;  %6747 = vtanh.f32 %v9383_v6  ;;  %v6627_v9 = vadd.f32 %v2204_v32, %v8084_v50  ;;  %v2563_v35 = vld [vmem:[%s11501_s3 + $0xb8] sm:$0xff]  ;;  %v2558_v34 = vld [vmem:[%s11501_s3 + $0x90] sm:$0xff] }
 0x492   :  { %v4857_v40 = vmul.f32 -1.442695, %v2207_v25  ;;  %v9436_v25 = vpack.c.bf16 %v2563_v35, %v2559_v14  ;;  %v2562_v32 = vld [vmem:[%s11501_s3 + $0xb0] sm:$0xff]  ;;  %v2787_v14 = vld [vmem:[%s11503_s4 + $0x68] sm:$0xff]  ;;  %v2785_v35 = vld [vmem:[%s11503_s4 + $0x58] sm:$0xff] }
 0x493   :  { %v4858_v23 = vmul.f32 -1.442695, %v2208_v24  ;;  %v4859_v29 = vmul.f32 -1.442695, %v6627_v9  ;;  %v9454_v51 = vpack.c.bf16 %v2562_v32, %v2558_v34  ;;  %v9601_v34 = vpack.c.bf16 %v2787_v14, %v2783_v26  ;;  %v2789_v32 = vld [vmem:[%s11503_s4 + $0x78] sm:$0xff]  ;;  %v2800_v26 = vld [vmem:[%s11503_s4 + $0xd0] sm:$0xff] }
 0x494   :  { %6749 = vpow2.f32 %v4857_v40  ;;  %v2566_v40 = vld [vmem:[%s11501_s3 + $0xd0] sm:$0xff] }
 0x495   :  { %6751 = vpow2.f32 %v4858_v23  ;;  %v2570_v23 = vld [vmem:[%s11501_s3 + $0xf0] sm:$0xff] }
 0x496   :  { %6753 = vpow2.f32 %v4859_v29  ;;  %v9474_v9 = vpack.c.bf16 %v2570_v23, %v2566_v40  ;;  %v2578_v29 = vld [vmem:[%s11501_s3 + $0x130] sm:$0xff]  ;;  %v9612_v40 = vpack.c.bf16 %v2789_v32, %v2785_v35  ;;  %v2807_v32 = vld [vmem:[%s11503_s4 + $0x108] sm:$0xff] }
 0x497   :  { %6755 = vtanh.f32 %v6626_v48  ;;  %v2804_v14 = vld [vmem:[%s11503_s4 + $0xf0] sm:$0xff] }
 0x498   :  { %v9695_v35 = vpack.c.bf16 %v2804_v14, %v2800_v26 }
 0x49b   :  { %v6748_v46 = vpop.eup %6747 }
 0x49c   :  { %v9390_v54 = vmul.f32 %v6748_v46, %v6746_v56  ;;  %v2574_v46 = vld [vmem:[%s11501_s3 + $0x110] sm:$0xff] }
 0x49d   :  { %v9494_v48 = vpack.c.bf16 %v2578_v29, %v2574_v46  ;;  %v2791_v29 = vld [vmem:[%s11503_s4 + $0x88] sm:$0xff] }
 0x49e   :  { %11850 = vst [vmem:[#allocation44_spill] sm:$0xff] %v9390_v54  ;;  %v6750_v45 = vpop.eup %6749  ;;  %2431 = vmatprep.mubr.f32.mxu0 %v9390_v54  ;;  %2502 = vmatprep.mubr.f32.mxu1 %v9390_v54 }
 0x49f   :  { %v6752_v53 = vpop.eup %6751  ;;  %v2214_v61 = vadd.f32 1.0, %v6750_v45 }
 0x4a0   :  { %v2220_v10 = vadd.f32 1.0, %v6752_v53  ;;  %v6754_v16 = vpop.eup %6753  ;;  %v2582_v53 = vld [vmem:[%s11501_s3 + $0x150] sm:$0xff] }
 0x4a1   :  { %6757 = vrcp.f32 %v2214_v61  ;;  %v6756_v43 = vpop.eup %6755  ;;  %v2227_v27 = vadd.f32 1.0, %v6754_v16  ;;  %v2586_v61 = vld [vmem:[%s11501_s3 + $0x170] sm:$0xff] }
 0x4a2   :  { %6759 = vrcp.f32 %v2220_v10  ;;  %v9514_v10 = vpack.c.bf16 %v2586_v61, %v2582_v53  ;;  %v2797_v61 = vld [vmem:[%s11503_s4 + $0xb8] sm:$0xff] }
 0x4a3   :  { %6761 = vrcp.f32 %v2227_v27  ;;  %v2598_v27 = vld [vmem:[%s11501_s3 + $0x1d0] sm:$0xff] }
 0x4ab   :  { %v6758_v12 = vpop.eup %6757 }
 0x4ac   :  { %v6760_v62 = vpop.eup %6759  ;;  %v2231_v28 = vmul.f32 %v6758_v12, %v6756_v43  ;;  %v2590_v43 = vld [vmem:[%s11501_s3 + $0x190] sm:$0xff] }
 0x4ad   :  { %v2230_v47 = vmul.f32 %v6760_v62, %v9123_v41  ;;  %v2555_v41 = vld [vmem:[%s11501_s3 + $0x78] sm:$0xff]  ;;  %v6762_v21 = vpop.eup %6761  ;;  %v2594_v12 = vld [vmem:[%s11501_s3 + $0x1b0] sm:$0xff] }
 0x4ae   :  { %v9414_v49 = vpack.c.bf16 %v2555_v41, %v2551_v63  ;;  %v9534_v62 = vpack.c.bf16 %v2594_v12, %v2590_v43  ;;  %v2778_v63 = vld [vmem:[%s11503_s4 + $0x20] sm:$0xff] }
 0x4af   :  { %v9395_v60 = vadd.f32 %v2231_v28, %v2230_v47  ;;  %v2602_v47 = vld [vmem:[%s11501_s3 + $0x1f0] sm:$0xff] }
 0x4b1   :  { %6763 = vtanh.f32 %v9395_v60 }
 0x4bb   :  { %v6764_v58 = vpop.eup %6763 }
 0x4bc   :  { %v9412_v3 = vmul.f32 %v6764_v58, %v6762_v21  ;;  %v9578_v21 = vpack.c.bf16 %v2778_v63, %v2774_v38  ;;  %v2776_v58 = vld [vmem:[%s11503_s4 + $0x10] sm:$0xff]  ;;  %v2798_v38 = vld [vmem:[%s11503_s4 + $0xc0] sm:$0xff] }
 0x4bd   :  { %v2802_v63 = vld [vmem:[%s11503_s4 + $0xe0] sm:$0xff] }
 0x4be   :  { %2432 = vmatmul.mubr.f32.vlgmr.msra.gmra.mrb[14].mxu0 %v9412_v3  ;;  %2503 = vmatmul.mubr.f32.vlgmr.msra.gmra.mrb[38].mxu1 %v9412_v3 }
 0x4bf   :  { %5791 = vmatpush1.bf16.msra.mxu0 %v9138_v1  ;;  %5823 = vmatpush1.bf16.msra.mxu1 %v9410_v42  ;;  %v2567_v1 = vld [vmem:[%s11501_s3 + $0xd8] sm:$0xff] }
 0x4c0   :  { %5793 = vmatprep.subr.bf16.mxu0 %v9142_v22  ;;  %5825 = vmatprep.subr.bf16.mxu1 %v9414_v49  ;;  %v2571_v22 = vld [vmem:[%s11501_s3 + $0xf8] sm:$0xff] }
 0x4c1   :  { %2668 = vmatprep.mubr.f32.mxu0 %v11724_v44  ;;  %2739 = vmatprep.mubr.f32.mxu1 %v11724_v44  ;;  %v9458_v24 = vpack.c.bf16 %v2571_v22, %v2567_v1  ;;  %v2782_v1 = vld [vmem:[%s11503_s4 + $0x40] sm:$0xff] }
 0x4c2   :  { %v2786_v22 = vld [vmem:[%s11503_s4 + $0x60] sm:$0xff] }
 0x4c3   :  { %5795 = vmatpush1.bf16.msra.mxu0 %v9160_v2  ;;  %5827 = vmatpush1.bf16.msra.mxu1 %v9432_v11  ;;  %v2575_v2 = vld [vmem:[%s11501_s3 + $0x118] sm:$0xff]  ;;  %v9614_v23 = vpack.c.bf16 %v2786_v22, %v2782_v1  ;;  %v2811_v1 = vld [vmem:[%s11503_s4 + $0x128] sm:$0xff] }
 0x4c4   :  { %5797 = vmatprep.subr.bf16.mxu0 %v9164_v59  ;;  %5829 = vmatprep.subr.bf16.mxu1 %v9436_v25  ;;  %v2579_v59 = vld [vmem:[%s11501_s3 + $0x138] sm:$0xff] }
 0x4c5   :  { %v9478_v56 = vpack.c.bf16 %v2579_v59, %v2575_v2  ;;  %v2784_v2 = vld [vmem:[%s11503_s4 + $0x50] sm:$0xff]  ;;  %v2809_v22 = vld [vmem:[%s11503_s4 + $0x118] sm:$0xff] }
 0x4c6   :  { %v2788_v59 = vld [vmem:[%s11503_s4 + $0x70] sm:$0xff] }
 0x4c7   :  { %5799 = vmatpush1.bf16.msra.mxu0 %v9182_v37  ;;  %5831 = vmatpush1.bf16.msra.mxu1 %v9454_v51  ;;  %v2583_v37 = vld [vmem:[%s11501_s3 + $0x158] sm:$0xff]  ;;  %v9623_v46 = vpack.c.bf16 %v2788_v59, %v2784_v2  ;;  %v9709_v2 = vpack.c.bf16 %v2811_v1, %v2807_v32  ;;  %v2816_v32 = vld [vmem:[%s11503_s4 + $0x150] sm:$0xff] }
 0x4c8   :  { %5801 = vmatprep.subr.bf16.mxu0 %v9186_v52  ;;  %5833 = vmatprep.subr.bf16.mxu1 %v9458_v24  ;;  %v2587_v52 = vld [vmem:[%s11501_s3 + $0x178] sm:$0xff]  ;;  %v2820_v1 = vld [vmem:[%s11503_s4 + $0x170] sm:$0xff] }
 0x4c9   :  { %v9498_v45 = vpack.c.bf16 %v2587_v52, %v2583_v37  ;;  %v2795_v37 = vld [vmem:[%s11503_s4 + $0xa8] sm:$0xff]  ;;  %v2793_v52 = vld [vmem:[%s11503_s4 + $0x98] sm:$0xff] }
 0x4ca   :  { %v9637_v53 = vpack.c.bf16 %v2795_v37, %v2791_v29  ;;  %v9648_v43 = vpack.c.bf16 %v2797_v61, %v2793_v52  ;;  %v2813_v59 = vld [vmem:[%s11503_s4 + $0x138] sm:$0xff]  ;;  %v2806_v29 = vld [vmem:[%s11503_s4 + $0x100] sm:$0xff] }
 0x4cb   :  { %5803 = vmatpush1.bf16.msra.mxu0 %v9202_v13  ;;  %5835 = vmatpush1.bf16.msra.mxu1 %v9474_v9  ;;  %v2591_v13 = vld [vmem:[%s11501_s3 + $0x198] sm:$0xff]  ;;  %v2810_v37 = vld [vmem:[%s11503_s4 + $0x120] sm:$0xff]  ;;  %v9720_v52 = vpack.c.bf16 %v2813_v59, %v2809_v22  ;;  %v9767_v22 = vpack.c.bf16 %v2820_v1, %v2816_v32  ;;  %v2823_v59 = vld [vmem:[%s11503_s4 + $0x188] sm:$0xff] }
 0x4cc   :  { %5805 = vmatprep.subr.bf16.mxu0 %v9206_v18  ;;  %5837 = vmatprep.subr.bf16.mxu1 %v9478_v56  ;;  %v2595_v18 = vld [vmem:[%s11501_s3 + $0x1b8] sm:$0xff]  ;;  %v9722_v61 = vpack.c.bf16 %v2810_v37, %v2806_v29  ;;  %v2827_v29 = vld [vmem:[%s11503_s4 + $0x1a8] sm:$0xff] }
 0x4cd   :  { %v9518_v16 = vpack.c.bf16 %v2595_v18, %v2591_v13  ;;  %v2790_v13 = vld [vmem:[%s11503_s4 + $0x80] sm:$0xff]  ;;  %v2825_v37 = vld [vmem:[%s11503_s4 + $0x198] sm:$0xff]  ;;  %v2831_v1 = vld [vmem:[%s11503_s4 + $0x1c8] sm:$0xff] }
 0x4ce   :  { %v2794_v18 = vld [vmem:[%s11503_s4 + $0xa0] sm:$0xff] }
 0x4cf   :  { %5807 = vmatpush1.bf16.msra.mxu0 %v9222_v57  ;;  %5839 = vmatpush1.bf16.msra.mxu1 %v9494_v48  ;;  %v2599_v57 = vld [vmem:[%s11501_s3 + $0x1d8] sm:$0xff]  ;;  %v9650_v12 = vpack.c.bf16 %v2794_v18, %v2790_v13  ;;  %v2808_v13 = vld [vmem:[%s11503_s4 + $0x110] sm:$0xff] }
 0x4d0   :  { %5809 = vmatprep.subr.bf16.mxu0 %v9226_v39  ;;  %5841 = vmatprep.subr.bf16.mxu1 %v9498_v45  ;;  %v2603_v39 = vld [vmem:[%s11501_s3 + $0x1f8] sm:$0xff]  ;;  %v2812_v18 = vld [vmem:[%s11503_s4 + $0x130] sm:$0xff] }
 0x4d1   :  { %v9538_v28 = vpack.c.bf16 %v2603_v39, %v2599_v57  ;;  %v2792_v57 = vld [vmem:[%s11503_s4 + $0x90] sm:$0xff] }
 0x4d2   :  { %v2796_v39 = vld [vmem:[%s11503_s4 + $0xb0] sm:$0xff] }
 0x4d3   :  { %5811 = vmatpush1.bf16.msra.mxu0 %v9242_v36  ;;  %5843 = vmatpush1.bf16.msra.mxu1 %v9514_v10  ;;  %v9548_v36 = vpack.c.bf16 %v2602_v47, %v2598_v27  ;;  %v9659_v27 = vpack.c.bf16 %v2796_v39, %v2792_v57  ;;  %v2799_v47 = vld [vmem:[%s11503_s4 + $0xc8] sm:$0xff]  ;;  %v9731_v57 = vpack.c.bf16 %v2812_v18, %v2808_v13  ;;  %v2829_v18 = vld [vmem:[%s11503_s4 + $0x1b8] sm:$0xff] }
 0x4d4   :  { %5813 = vmatprep.subr.bf16.mxu0 %v9246_v17  ;;  %5845 = vmatprep.subr.bf16.mxu1 %v9518_v16  ;;  %v2775_v17 = vld [vmem:[%s11503_s4 + $0x8] sm:$0xff]  ;;  %v9781_v13 = vpack.c.bf16 %v2827_v29, %v2823_v59  ;;  %v2833_v29 = vld [vmem:[%s11503_s4 + $0x1d8] sm:$0xff] }
 0x4d5   :  { %v2815_v39 = vld [vmem:[%s11503_s4 + $0x148] sm:$0xff] }
 0x4d6   :  { %v2835_v59 = vld [vmem:[%s11503_s4 + $0x1e8] sm:$0xff] }
 0x4d7   :  { %5815 = vmatpush1.bf16.msra.mxu0 %v9262_v8  ;;  %5847 = vmatpush1.bf16.msra.mxu1 %v9534_v62  ;;  %v2779_v8 = vld [vmem:[%s11503_s4 + $0x28] sm:$0xff] }
 0x4d8   :  { %5817 = vmatprep.subr.bf16.mxu0 %v9266_v5  ;;  %5849 = vmatprep.subr.bf16.mxu1 %v9538_v28  ;;  %v2777_v5 = vld [vmem:[%s11503_s4 + $0x18] sm:$0xff]  ;;  %v9565_v0 = vpack.c.bf16 %v2779_v8, %v2775_v17  ;;  %v2803_v17 = vld [vmem:[%s11503_s4 + $0xe8] sm:$0xff] }
 0x4d9   :  { %v2801_v8 = vld [vmem:[%s11503_s4 + $0xd8] sm:$0xff] }
 0x4db   :  { %5819 = vmatpush1.bf16.msra.mxu0 %v9276_v19  ;;  %5851 = vmatpush1.bf16.msra.mxu1 %v9548_v36  ;;  %v2781_v19 = vld [vmem:[%s11503_s4 + $0x38] sm:$0xff] }
 0x4dc   :  { %v9576_v41 = vpack.c.bf16 %v2781_v19, %v2777_v5  ;;  %5853 = vmatprep.subr.bf16.mxu0 %v9565_v0  ;;  %v9673_v5 = vpack.c.bf16 %v2803_v17, %v2799_v47  ;;  %v2805_v19 = vld [vmem:[%s11503_s4 + $0xf8] sm:$0xff]  ;;  %v2819_v47 = vld [vmem:[%s11503_s4 + $0x168] sm:$0xff] }
 0x4dd   :  { %v2817_v17 = vld [vmem:[%s11503_s4 + $0x158] sm:$0xff] }
 0x4de   :  { %2669 = vmatmul.mubr.f32.vlgmr.msra.gmra.mrb[16].mxu0 %v9412_v3  ;;  %2740 = vmatmul.mubr.f32.vlgmr.msra.gmra.mrb[24].mxu1 %v9412_v3  ;;  %v2780_v3 = vld [vmem:[%s11503_s4 + $0x30] sm:$0xff] }
 0x4df   :  { %v9587_v4 = vpack.c.bf16 %v2780_v3, %v2776_v58  ;;  %5917 = vmatprep.subr.bf16.mxu1 %v9576_v41  ;;  %5855 = vmatpush1.bf16.msra.mxu0 %v9578_v21  ;;  %v9684_v58 = vpack.c.bf16 %v2805_v19, %v2801_v8  ;;  %v9686_v3 = vpack.c.bf16 %v2802_v63, %v2798_v38  ;;  %v2821_v19 = vld [vmem:[%s11503_s4 + $0x178] sm:$0xff]  ;;  %v2814_v38 = vld [vmem:[%s11503_s4 + $0x140] sm:$0xff] }
 0x4e0   :  { %5857 = vmatprep.subr.bf16.mxu0 %v9601_v34  ;;  %v9745_v8 = vpack.c.bf16 %v2819_v47, %v2815_v39  ;;  %v2818_v63 = vld [vmem:[%s11503_s4 + $0x160] sm:$0xff]  ;;  %v9756_v26 = vpack.c.bf16 %v2821_v19, %v2817_v17  ;;  %v9792_v17 = vpack.c.bf16 %v2829_v18, %v2825_v37  ;;  %v9817_v37 = vpack.c.bf16 %v2835_v59, %v2831_v1  ;;  %v2837_v18 = vld [vmem:[%s11503_s4 + $0x1f8] sm:$0xff]  ;;  %v2832_v1 = vld [vmem:[%s11503_s4 + $0x1d0] sm:$0xff] }
 0x4e1   :  { %5919 = vmatpush1.bf16.msra.mxu1 %v9587_v4  ;;  %v9758_v14 = vpack.c.bf16 %v2818_v63, %v2814_v38  ;;  %v2822_v39 = vld [vmem:[%s11503_s4 + $0x180] sm:$0xff]  ;;  %v2824_v38 = vld [vmem:[%s11503_s4 + $0x190] sm:$0xff] }
 0x4e2   :  { %5921 = vmatprep.subr.bf16.mxu1 %v9612_v40  ;;  %v2826_v47 = vld [vmem:[%s11503_s4 + $0x1a0] sm:$0xff]  ;;  %11851 = vst [vmem:[#allocation5_spill] sm:$0xff] %v9792_v17  ;;  %v2828_v63 = vld [vmem:[%s11503_s4 + $0x1b0] sm:$0xff]  ;;  %11854 = vst [vmem:[#allocation8_spill] sm:$0xff] %v9817_v37 }
 0x4e3   :  { %5859 = vmatpush1.bf16.msra.mxu0 %v9614_v23  ;;  %v9794_v19 = vpack.c.bf16 %v2826_v47, %v2822_v39  ;;  %v9803_v32 = vpack.c.bf16 %v2828_v63, %v2824_v38  ;;  %v2830_v39 = vld [vmem:[%s11503_s4 + $0x1c0] sm:$0xff]  ;;  %v9828_v38 = vpack.c.bf16 %v2837_v18, %v2833_v29  ;;  %v2836_v59 = vld [vmem:[%s11503_s4 + $0x1f0] sm:$0xff]  ;;  %v2839_v29 = vld [vmem:[%s11503_s4 + $0x208] sm:$0xff] }
 0x4e4   :  { %5861 = vmatprep.subr.bf16.mxu0 %v9637_v53  ;;  %v2834_v47 = vld [vmem:[%s11503_s4 + $0x1e0] sm:$0xff]  ;;  %v9839_v54 = vpack.c.bf16 %v2836_v59, %v2832_v1  ;;  %v2843_v18 = vld [vmem:[%s11503_s4 + $0x228] sm:$0xff]  ;;  %v2845_v1 = vld [vmem:[%s11503_s4 + $0x238] sm:$0xff] }
 0x4e5   :  { %5923 = vmatpush1.bf16.msra.mxu1 %v9623_v46  ;;  %11852 = vst [vmem:[#allocation6_spill] sm:$0xff] %v9794_v19  ;;  %11853 = vst [vmem:[#allocation7_spill] sm:$0xff] %v9803_v32  ;;  %v9830_v63 = vpack.c.bf16 %v2834_v47, %v2830_v39  ;;  %v2841_v39 = vld [vmem:[%s11503_s4 + $0x218] sm:$0xff]  ;;  %v9853_v47 = vpack.c.bf16 %v2843_v18, %v2839_v29  ;;  %v2838_v59 = vld [vmem:[%s11503_s4 + $0x200] sm:$0xff] }
 0x4e6   :  { %5925 = vmatprep.subr.bf16.mxu1 %v9648_v43  ;;  %11855 = vst [vmem:[#allocation9_spill] sm:$0xff] %v9828_v38  ;;  %11857 = vst [vmem:[#allocation11_spill] sm:$0xff] %v9839_v54  ;;  %v2840_v29 = vld [vmem:[%s11503_s4 + $0x210] sm:$0xff] }
 0x4e7   :  { %5863 = vmatpush1.bf16.msra.mxu0 %v9650_v12  ;;  %11856 = vst [vmem:[#allocation10_spill] sm:$0xff] %v9830_v63  ;;  %11858 = vst [vmem:[#allocation12_spill] sm:$0xff] %v9853_v47  ;;  %v2844_v18 = vld [vmem:[%s11503_s4 + $0x230] sm:$0xff] }
 0x4e8   :  { %5865 = vmatprep.subr.bf16.mxu0 %v9673_v5 }
 0x4e9   :  { %5927 = vmatpush1.bf16.msra.mxu1 %v9659_v27 }
 0x4ea   :  { %5929 = vmatprep.subr.bf16.mxu1 %v9684_v58 }
 0x4eb   :  { %5867 = vmatpush1.bf16.msra.mxu0 %v9686_v3 }
 0x4ec   :  { %5869 = vmatprep.subr.bf16.mxu0 %v9709_v2 }
 0x4ed   :  { %5931 = vmatpush1.bf16.msra.mxu1 %v9695_v35 }
 0x4ee   :  { %5933 = vmatprep.subr.bf16.mxu1 %v9720_v52 }
 0x4ef   :  { %5871 = vmatpush1.bf16.msra.mxu0 %v9722_v61 }
 0x4f0   :  { %5873 = vmatprep.subr.bf16.mxu0 %v9745_v8 }
 0x4f1   :  { %5935 = vmatpush1.bf16.msra.mxu1 %v9731_v57 }
 0x4f2   :  { %5937 = vmatprep.subr.bf16.mxu1 %v9756_v26 }
 0x4f3   :  { %5875 = vmatpush1.bf16.msra.mxu0 %v9758_v14 }
 0x4f4   :  { %5877 = vmatprep.subr.bf16.mxu0 %v9781_v13 }
 0x4f5   :  { %5939 = vmatpush1.bf16.msra.mxu1 %v9767_v22 }
 0x4f6   :  { %5941 = vmatprep.subr.bf16.mxu1 %v9792_v17 }
 0x4f7   :  { %5879 = vmatpush1.bf16.msra.mxu0 %v9794_v19 }
 0x4f8   :  { %5881 = vmatprep.subr.bf16.mxu0 %v9817_v37 }
 0x4f9   :  { %5943 = vmatpush1.bf16.msra.mxu1 %v9803_v32  ;;  %v2888_v32 = vld [vmem:[%s11503_s4 + $0x390] sm:$0xff] }
 0x4fa   :  { %5945 = vmatprep.subr.bf16.mxu1 %v9828_v38  ;;  %v9866_v38 = vpack.c.bf16 %v2842_v7, %v2838_v59  ;;  %v2847_v7 = vld [vmem:[%s11503_s4 + $0x248] sm:$0xff] }
 0x4fb   :  { %5883 = vmatpush1.bf16.msra.mxu0 %v9830_v63  ;;  %v9864_v63 = vpack.c.bf16 %v2845_v1, %v2841_v39  ;;  %v2851_v39 = vld [vmem:[%s11503_s4 + $0x268] sm:$0xff]  ;;  %v2849_v1 = vld [vmem:[%s11503_s4 + $0x258] sm:$0xff] }
 0x4fc   :  { %11860 = vst [vmem:[#allocation14_spill] sm:$0xff] %v9866_v38  ;;  %5885 = vmatprep.subr.bf16.mxu0 %v9853_v47  ;;  %v9889_v59 = vpack.c.bf16 %v2851_v39, %v2847_v7  ;;  %v2848_v7 = vld [vmem:[%s11503_s4 + $0x250] sm:$0xff] }
 0x4fd   :  { %5947 = vmatpush1.bf16.msra.mxu1 %v9839_v54  ;;  %11859 = vst [vmem:[#allocation13_spill] sm:$0xff] %v9864_v63  ;;  %v9875_v54 = vpack.c.bf16 %v2844_v18, %v2840_v29  ;;  %v2853_v29 = vld [vmem:[%s11503_s4 + $0x278] sm:$0xff]  ;;  %v2846_v18 = vld [vmem:[%s11503_s4 + $0x240] sm:$0xff]  ;;  %v2852_v39 = vld [vmem:[%s11503_s4 + $0x270] sm:$0xff] }
 0x4fe   :  { %5949 = vmatprep.subr.bf16.mxu1 %v9864_v63  ;;  %11862 = vst [vmem:[#allocation16_spill] sm:$0xff] %v9889_v59  ;;  %v9900_v63 = vpack.c.bf16 %v2853_v29, %v2849_v1  ;;  %v2859_v1 = vld [vmem:[%s11503_s4 + $0x2a8] sm:$0xff]  ;;  %v2857_v29 = vld [vmem:[%s11503_s4 + $0x298] sm:$0xff] }
 0x4ff   :  { %11861 = vst [vmem:[#allocation15_spill] sm:$0xff] %v9875_v54  ;;  %5887 = vmatpush1.bf16.msra.mxu0 %v9866_v38  ;;  %v2850_v38 = vld [vmem:[%s11503_s4 + $0x260] sm:$0xff] }
 0x500   :  { %11863 = vst [vmem:[#allocation17_spill] sm:$0xff] %v9900_v63  ;;  %v9902_v47 = vpack.c.bf16 %v2850_v38, %v2846_v18  ;;  %5889 = vmatprep.subr.bf16.mxu0 %v9889_v59  ;;  %v2855_v38 = vld [vmem:[%s11503_s4 + $0x288] sm:$0xff] }
 0x501   :  { %5951 = vmatpush1.bf16.msra.mxu1 %v9875_v54  ;;  %v9911_v54 = vpack.c.bf16 %v2852_v39, %v2848_v7  ;;  %v9925_v18 = vpack.c.bf16 %v2859_v1, %v2855_v38  ;;  %v2861_v7 = vld [vmem:[%s11503_s4 + $0x2b8] sm:$0xff]  ;;  %v2854_v39 = vld [vmem:[%s11503_s4 + $0x280] sm:$0xff]  ;;  %v2856_v38 = vld [vmem:[%s11503_s4 + $0x290] sm:$0xff] }
 0x502   :  { %11864 = vst [vmem:[#allocation18_spill] sm:$0xff] %v9902_v47  ;;  %5953 = vmatprep.subr.bf16.mxu1 %v9900_v63  ;;  %v9936_v63 = vpack.c.bf16 %v2861_v7, %v2857_v29  ;;  %v2860_v1 = vld [vmem:[%s11503_s4 + $0x2b0] sm:$0xff]  ;;  %v2867_v29 = vld [vmem:[%s11503_s4 + $0x2e8] sm:$0xff]  ;;  %v2865_v7 = vld [vmem:[%s11503_s4 + $0x2d8] sm:$0xff] }
 0x503   :  { %11865 = vst [vmem:[#allocation19_spill] sm:$0xff] %v9911_v54  ;;  %5891 = vmatpush1.bf16.msra.mxu0 %v9902_v47  ;;  %11866 = vst [vmem:[#allocation20_spill] sm:$0xff] %v9925_v18  ;;  %v2858_v47 = vld [vmem:[%s11503_s4 + $0x2a0] sm:$0xff] }
 0x504   :  { %11867 = vst [vmem:[#allocation21_spill] sm:$0xff] %v9936_v63  ;;  %v9938_v59 = vpack.c.bf16 %v2858_v47, %v2854_v39  ;;  %5893 = vmatprep.subr.bf16.mxu0 %v9925_v18  ;;  %v2863_v47 = vld [vmem:[%s11503_s4 + $0x2c8] sm:$0xff] }
 0x505   :  { %5955 = vmatpush1.bf16.msra.mxu1 %v9911_v54  ;;  %v9947_v54 = vpack.c.bf16 %v2860_v1, %v2856_v38  ;;  %v9961_v39 = vpack.c.bf16 %v2867_v29, %v2863_v47  ;;  %v2869_v38 = vld [vmem:[%s11503_s4 + $0x2f8] sm:$0xff]  ;;  %v2862_v1 = vld [vmem:[%s11503_s4 + $0x2c0] sm:$0xff]  ;;  %v2864_v47 = vld [vmem:[%s11503_s4 + $0x2d0] sm:$0xff] }
 0x506   :  { %11868 = vst [vmem:[#allocation22_spill] sm:$0xff] %v9938_v59  ;;  %5957 = vmatprep.subr.bf16.mxu1 %v9936_v63  ;;  %v9972_v63 = vpack.c.bf16 %v2869_v38, %v2865_v7  ;;  %v2868_v29 = vld [vmem:[%s11503_s4 + $0x2f0] sm:$0xff]  ;;  %v2875_v7 = vld [vmem:[%s11503_s4 + $0x328] sm:$0xff]  ;;  %v2873_v38 = vld [vmem:[%s11503_s4 + $0x318] sm:$0xff] }
 0x507   :  { %11869 = vst [vmem:[#allocation23_spill] sm:$0xff] %v9947_v54  ;;  %5895 = vmatpush1.bf16.msra.mxu0 %v9938_v59  ;;  %11870 = vst [vmem:[#allocation24_spill] sm:$0xff] %v9961_v39  ;;  %v2866_v59 = vld [vmem:[%s11503_s4 + $0x2e0] sm:$0xff] }
 0x508   :  { %11871 = vst [vmem:[#allocation25_spill] sm:$0xff] %v9972_v63  ;;  %v9974_v18 = vpack.c.bf16 %v2866_v59, %v2862_v1  ;;  %5897 = vmatprep.subr.bf16.mxu0 %v9961_v39  ;;  %v2871_v59 = vld [vmem:[%s11503_s4 + $0x308] sm:$0xff] }
 0x509   :  { %5959 = vmatpush1.bf16.msra.mxu1 %v9947_v54  ;;  %v9983_v54 = vpack.c.bf16 %v2868_v29, %v2864_v47  ;;  %v9997_v1 = vpack.c.bf16 %v2875_v7, %v2871_v59  ;;  %v2877_v47 = vld [vmem:[%s11503_s4 + $0x338] sm:$0xff]  ;;  %v2870_v29 = vld [vmem:[%s11503_s4 + $0x300] sm:$0xff]  ;;  %v2872_v59 = vld [vmem:[%s11503_s4 + $0x310] sm:$0xff] }
 0x50a   :  { %11872 = vst [vmem:[#allocation26_spill] sm:$0xff] %v9974_v18  ;;  %5961 = vmatprep.subr.bf16.mxu1 %v9972_v63  ;;  %v10008_v63 = vpack.c.bf16 %v2877_v47, %v2873_v38  ;;  %v2876_v7 = vld [vmem:[%s11503_s4 + $0x330] sm:$0xff]  ;;  %v2883_v38 = vld [vmem:[%s11503_s4 + $0x368] sm:$0xff]  ;;  %v2881_v47 = vld [vmem:[%s11503_s4 + $0x358] sm:$0xff] }
 0x50b   :  { %11873 = vst [vmem:[#allocation27_spill] sm:$0xff] %v9983_v54  ;;  %5899 = vmatpush1.bf16.msra.mxu0 %v9974_v18  ;;  %11874 = vst [vmem:[#allocation28_spill] sm:$0xff] %v9997_v1  ;;  %v2874_v18 = vld [vmem:[%s11503_s4 + $0x320] sm:$0xff] }
 0x50c   :  { %11875 = vst [vmem:[#allocation29_spill] sm:$0xff] %v10008_v63  ;;  %v10010_v39 = vpack.c.bf16 %v2874_v18, %v2870_v29  ;;  %5901 = vmatprep.subr.bf16.mxu0 %v9997_v1  ;;  %v2879_v18 = vld [vmem:[%s11503_s4 + $0x348] sm:$0xff] }
 0x50d   :  { %5963 = vmatpush1.bf16.msra.mxu1 %v9983_v54  ;;  %v10019_v54 = vpack.c.bf16 %v2876_v7, %v2872_v59  ;;  %v10033_v29 = vpack.c.bf16 %v2883_v38, %v2879_v18  ;;  %v2885_v59 = vld [vmem:[%s11503_s4 + $0x378] sm:$0xff]  ;;  %v2878_v7 = vld [vmem:[%s11503_s4 + $0x340] sm:$0xff]  ;;  %v2880_v18 = vld [vmem:[%s11503_s4 + $0x350] sm:$0xff] }
 0x50e   :  { %11876 = vst [vmem:[#allocation30_spill] sm:$0xff] %v10010_v39  ;;  %5965 = vmatprep.subr.bf16.mxu1 %v10008_v63  ;;  %v10044_v63 = vpack.c.bf16 %v2885_v59, %v2881_v47  ;;  %v2884_v38 = vld [vmem:[%s11503_s4 + $0x370] sm:$0xff]  ;;  %v2889_v47 = vld [vmem:[%s11503_s4 + $0x398] sm:$0xff] }
 0x50f   :  { %11877 = vst [vmem:[#allocation31_spill] sm:$0xff] %v10019_v54  ;;  %5903 = vmatpush1.bf16.msra.mxu0 %v10010_v39  ;;  %11878 = vst [vmem:[#allocation32_spill] sm:$0xff] %v10033_v29  ;;  %v2882_v39 = vld [vmem:[%s11503_s4 + $0x360] sm:$0xff]  ;;  %v10058_v37 = vpack.c.bf16 %v2884_v38, %v2880_v18  ;;  %v2893_v59 = vld [vmem:[%s11503_s4 + $0x3b8] sm:$0xff] }
 0x510   :  { %11879 = vst [vmem:[#allocation33_spill] sm:$0xff] %v10044_v63  ;;  %v10046_v1 = vpack.c.bf16 %v2882_v39, %v2878_v7  ;;  %5905 = vmatprep.subr.bf16.mxu0 %v10033_v29  ;;  %v2891_v39 = vld [vmem:[%s11503_s4 + $0x3a8] sm:$0xff]  ;;  %v10073_v18 = vpack.c.bf16 %v2893_v59, %v2889_v47  ;;  %v2886_v38 = vld [vmem:[%s11503_s4 + $0x380] sm:$0xff] }
 0x511   :  { %5967 = vmatpush1.bf16.msra.mxu1 %v10019_v54  ;;  %v2887_v54 = vld [vmem:[%s11503_s4 + $0x388] sm:$0xff]  ;;  %11881 = vst [vmem:[#allocation35_spill] sm:$0xff] %v10058_v37  ;;  %v2890_v29 = vld [vmem:[%s11503_s4 + $0x3a0] sm:$0xff] }
 0x512   :  { %11880 = vst [vmem:[#allocation34_spill] sm:$0xff] %v10046_v1  ;;  %5969 = vmatprep.subr.bf16.mxu1 %v10044_v63  ;;  %v10071_v7 = vpack.c.bf16 %v2891_v39, %v2887_v54  ;;  %11883 = vst [vmem:[#allocation37_spill] sm:$0xff] %v10073_v18  ;;  %v10085_v63 = vpack.c.bf16 %v2890_v29, %v2886_v38  ;;  %v2892_v54 = vld [vmem:[%s11503_s4 + $0x3b0] sm:$0xff]  ;;  %v2895_v39 = vld [vmem:[%s11503_s4 + $0x3c8] sm:$0xff] }
 0x513   :  { %5907 = vmatpush1.bf16.msra.mxu0 %v10046_v1  ;;  %v2899_v47 = vld [vmem:[%s11503_s4 + $0x3e8] sm:$0xff]  ;;  %v10098_v59 = vpack.c.bf16 %v2892_v54, %v2888_v32  ;;  %v2897_v38 = vld [vmem:[%s11503_s4 + $0x3d8] sm:$0xff]  ;;  %v2894_v1 = vld [vmem:[%s11503_s4 + $0x3c0] sm:$0xff] }
 0x514   :  { %11882 = vst [vmem:[#allocation36_spill] sm:$0xff] %v10071_v7  ;;  %11884 = vst [vmem:[#allocation38_spill] sm:$0xff] %v10085_v63  ;;  %5909 = vmatprep.subr.bf16.mxu0 %v10071_v7  ;;  %v10100_v29 = vpack.c.bf16 %v2899_v47, %v2895_v39  ;;  %v2898_v32 = vld [vmem:[%s11503_s4 + $0x3e0] sm:$0xff]  ;;  %v2896_v54 = vld [vmem:[%s11503_s4 + $0x3d0] sm:$0xff] }
 0x515   :  { %5971 = vmatpush1.bf16.msra.mxu1 %v10058_v37  ;;  %11885 = vst [vmem:[#allocation39_spill] sm:$0xff] %v10098_v59  ;;  %v2901_v37 = vld [vmem:[%s11503_s4 + $0x3f8] sm:$0xff]  ;;  %v2900_v39 = vld [vmem:[%s11503_s4 + $0x3f0] sm:$0xff]  ;;  %v10123_v47 = vpack.c.bf16 %v2898_v32, %v2894_v1 }
 0x516   :  { %5973 = vmatprep.subr.bf16.mxu1 %v10073_v18  ;;  %11886 = vst [vmem:[#allocation40_spill] sm:$0xff] %v10100_v29  ;;  %v10111_v19 = vpack.c.bf16 %v2901_v37, %v2897_v38  ;;  %v3080_v37 = vld [vmem:[%s11501_s3 + $0x8] sm:$0xff]  ;;  %v10133_v18 = vpack.c.bf16 %v2900_v39, %v2896_v54 }
 0x517   :  { %5911 = vmatpush1.bf16.msra.mxu0 %v10085_v63  ;;  %11888 = vst [vmem:[#allocation42_spill] sm:$0xff] %v10123_v47  ;;  %v3084_v38 = vld [vmem:[%s11501_s3 + $0x28] sm:$0xff] }
 0x518   :  { %11887 = vst [vmem:[#allocation41_spill] sm:$0xff] %v10111_v19  ;;  %5913 = vmatprep.subr.bf16.mxu0 %v10100_v29  ;;  %11889 = vst [vmem:[#allocation55_spill] sm:$0xff] %v10133_v18  ;;  %v10135_v7 = vpack.c.bf16 %v3084_v38, %v3080_v37 }
 0x519   :  { %5975 = vmatpush1.bf16.msra.mxu1 %v10098_v59 }
 0x51a   :  { %11890 = vst [vmem:[#allocation56_spill] sm:$0xff] %v10135_v7  ;;  %5977 = vmatprep.subr.bf16.mxu1 %v10111_v19 }
 0x51b   :  { %5915 = vmatpush1.bf16.msra.mxu0 %v10123_v47 }
 0x51c   :  { %5981 = vmatprep.subr.bf16.mxu0 %v10135_v7 }
 0x51d   :  { %5979 = vmatpush1.bf16.msra.mxu1 %v10133_v18 }
 0x51e   :  { %6013 = vmatprep.subr.bf16.mxu1 %v9355_v55 }
 0x591   :  { %v2433_v1 = vpop.f32.mrb[14].mxu0  ;;  %v2504_v32 = vpop.f32.mrb[38].mxu1 }
 0x592   :  { %v2434_v59 = vadd.f32 %v2433_v1, %v9361_v20  ;;  %v2435_v63 = vpop.f32.mrb[15].mxu0  ;;  %v2506_v29 = vpop.f32.mrb[39].mxu1  ;;  %v2505_v18 = vadd.f32 %v2504_v32, %v9379_v15  ;;  %v11891_v15 = vld [vmem:[#allocation47_spill] sm:$0xff] }
 0x593   :  { %v2436_v54 = vadd.f32 %v2435_v63, %v9366_v33  ;;  %v2507_v38 = vadd.f32 %v2506_v29, %v9373_v31 }
 0x594   :  { %v4860_v39 = vmul.f32 -1.442695, %v2434_v59 }
 0x595   :  { %v4861_v37 = vmul.f32 -1.442695, %v2436_v54  ;;  %v4862_v47 = vmul.f32 -1.442695, %v2507_v38 }
 0x596   :  { %6765 = vpow2.f32 %v4860_v39 }
 0x597   :  { %6767 = vpow2.f32 %v4861_v37 }
 0x598   :  { %6769 = vpow2.f32 %v4862_v47 }
 0x599   :  { %6771 = vtanh.f32 %v2505_v18 }
 0x5a0   :  { %v6766_v7 = vpop.eup %6765 }
 0x5a1   :  { %v6768_v19 = vpop.eup %6767  ;;  %v2512_v55 = vadd.f32 1.0, %v6766_v7 }
 0x5a2   :  { %v2518_v17 = vadd.f32 1.0, %v6768_v19  ;;  %v6770_v20 = vpop.eup %6769  ;;  %v11892_v19 = vld [vmem:[#allocation48_spill] sm:$0xff] }
 0x5a3   :  { %6773 = vrcp.f32 %v2512_v55  ;;  %v6772_v1 = vpop.eup %6771  ;;  %v2525_v54 = vadd.f32 1.0, %v6770_v20 }
 0x5a4   :  { %6775 = vrcp.f32 %v2518_v17 }
 0x5a5   :  { %6777 = vrcp.f32 %v2525_v54 }
 0x5ad   :  { %v6774_v33 = vpop.eup %6773 }
 0x5ae   :  { %v6776_v63 = vpop.eup %6775  ;;  %v2529_v59 = vmul.f32 %v6774_v33, %v6772_v1 }
 0x5af   :  { %v2528_v39 = vmul.f32 %v6776_v63, %v9383_v6  ;;  %v6778_v6 = vpop.eup %6777 }
 0x5b1   :  { %v2670_v31 = vpop.f32.mrb[16].mxu0  ;;  %v2741_v29 = vpop.f32.mrb[24].mxu1  ;;  %v10147_v37 = vadd.f32 %v2529_v59, %v2528_v39 }
 0x5b2   :  { %v2746_v7 = vadd.f32 %v2670_v31, %v11891_v15  ;;  %v2672_v47 = vpop.f32.mrb[17].mxu0  ;;  %v2743_v18 = vpop.f32.mrb[25].mxu1  ;;  %v6628_v33 = vadd.f32 %v2741_v29, %v8082_v30 }
 0x5b3   :  { %v2747_v32 = vadd.f32 %v2672_v47, %v11892_v19  ;;  %6779 = vtanh.f32 %v10147_v37  ;;  %v6629_v55 = vadd.f32 %v2743_v18, %v8084_v50 }
 0x5b4   :  { %v4863_v17 = vmul.f32 -1.442695, %v2746_v7 }
 0x5b5   :  { %v4864_v38 = vmul.f32 -1.442695, %v2747_v32  ;;  %v4865_v1 = vmul.f32 -1.442695, %v6629_v55  ;;  %v3083_v55 = vld [vmem:[%s11501_s3 + $0x20] sm:$0xff] }
 0x5b6   :  { %6781 = vpow2.f32 %v4863_v17 }
 0x5b7   :  { %6783 = vpow2.f32 %v4864_v38  ;;  %v3079_v38 = vld [vmem:[%s11501_s3] sm:$0xff] }
 0x5b8   :  { %6785 = vpow2.f32 %v4865_v1 }
 0x5b9   :  { %6787 = vtanh.f32 %v6628_v33  ;;  %v10174_v33 = vpack.c.bf16 %v3083_v55, %v3079_v38  ;;  %v3103_v55 = vld [vmem:[%s11501_s3 + $0xc0] sm:$0xff] }
 0x5bd   :  { %v6780_v20 = vpop.eup %6779 }
 0x5be   :  { %v10154_v63 = vmul.f32 %v6780_v20, %v6778_v6  ;;  %v3088_v6 = vld [vmem:[%s11501_s3 + $0x48] sm:$0xff] }
 0x5c0   :  { %11893 = vst [vmem:[#allocation45_spill] sm:$0xff] %v10154_v63  ;;  %v6782_v59 = vpop.eup %6781  ;;  %2970 = vmatprep.mubr.f32.mxu0 %v10154_v63  ;;  %3041 = vmatprep.mubr.f32.mxu1 %v10154_v63  ;;  %v3920_v63 = vld [vmem:[%s11503_s4 + $0x220] sm:$0xff] }
 0x5c1   :  { %v6784_v54 = vpop.eup %6783  ;;  %v2753_v39 = vadd.f32 1.0, %v6782_v59 }
 0x5c2   :  { %v2759_v31 = vadd.f32 1.0, %v6784_v54  ;;  %v6786_v15 = vpop.eup %6785 }
 0x5c3   :  { %6789 = vrcp.f32 %v2753_v39  ;;  %v6788_v7 = vpop.eup %6787  ;;  %v2766_v29 = vadd.f32 1.0, %v6786_v15  ;;  %v3087_v39 = vld [vmem:[%s11501_s3 + $0x40] sm:$0xff]  ;;  %v3096_v15 = vld [vmem:[%s11501_s3 + $0x88] sm:$0xff] }
 0x5c4   :  { %6791 = vrcp.f32 %v2759_v31  ;;  %v3091_v31 = vld [vmem:[%s11501_s3 + $0x60] sm:$0xff] }
 0x5c5   :  { %6793 = vrcp.f32 %v2766_v29  ;;  %v3099_v29 = vld [vmem:[%s11501_s3 + $0xa0] sm:$0xff] }
 0x5cd   :  { %v6790_v47 = vpop.eup %6789 }
 0x5ce   :  { %v6792_v18 = vpop.eup %6791  ;;  %v2770_v19 = vmul.f32 %v6790_v47, %v6788_v7  ;;  %v3100_v7 = vld [vmem:[%s11501_s3 + $0xa8] sm:$0xff]  ;;  %v10196_v47 = vpack.c.bf16 %v3091_v31, %v3087_v39  ;;  %v3115_v39 = vld [vmem:[%s11501_s3 + $0x120] sm:$0xff] }
 0x5cf   :  { %v2769_v32 = vmul.f32 %v6792_v18, %v9395_v60  ;;  %v3092_v60 = vld [vmem:[%s11501_s3 + $0x68] sm:$0xff]  ;;  %v6794_v20 = vpop.eup %6793  ;;  %v10200_v18 = vpack.c.bf16 %v3100_v7, %v3096_v15  ;;  %v3119_v7 = vld [vmem:[%s11501_s3 + $0x140] sm:$0xff] }
 0x5d0   :  { %v10178_v54 = vpack.c.bf16 %v3092_v60, %v3088_v6  ;;  %v3107_v6 = vld [vmem:[%s11501_s3 + $0xe0] sm:$0xff]  ;;  %v3116_v60 = vld [vmem:[%s11501_s3 + $0x128] sm:$0xff] }
 0x5d1   :  { %v10159_v17 = vadd.f32 %v2770_v19, %v2769_v32  ;;  %v3095_v19 = vld [vmem:[%s11501_s3 + $0x80] sm:$0xff]  ;;  %v3108_v32 = vld [vmem:[%s11501_s3 + $0xe8] sm:$0xff] }
 0x5d2   :  { %v3124_v31 = vld [vmem:[%s11501_s3 + $0x168] sm:$0xff] }
 0x5d3   :  { %6795 = vtanh.f32 %v10159_v17 }
 0x5dd   :  { %v6796_v1 = vpop.eup %6795 }
 0x5de   :  { %v10176_v59 = vmul.f32 %v6796_v1, %v6794_v20  ;;  %v3111_v1 = vld [vmem:[%s11501_s3 + $0x100] sm:$0xff] }
 0x5e0   :  { %2971 = vmatmul.mubr.f32.vlgmr.msra.gmra.mrb[18].mxu0 %v10176_v59  ;;  %3042 = vmatmul.mubr.f32.vlgmr.msra.gmra.mrb[40].mxu1 %v10176_v59 }
 0x5e1   :  { %5983 = vmatpush1.bf16.msra.mxu0 %v10174_v33  ;;  %6015 = vmatpush1.bf16.msra.mxu1 %v9410_v42  ;;  %v3104_v42 = vld [vmem:[%s11501_s3 + $0xc8] sm:$0xff] }
 0x5e2   :  { %5985 = vmatprep.subr.bf16.mxu0 %v10178_v54  ;;  %6017 = vmatprep.subr.bf16.mxu1 %v9414_v49  ;;  %v10218_v49 = vpack.c.bf16 %v3099_v29, %v3095_v19  ;;  %v10222_v38 = vpack.c.bf16 %v3108_v32, %v3104_v42  ;;  %v3123_v19 = vld [vmem:[%s11501_s3 + $0x160] sm:$0xff]  ;;  %v3132_v29 = vld [vmem:[%s11501_s3 + $0x1a8] sm:$0xff] }
 0x5e3   :  { %3207 = vmatprep.mubr.f32.mxu0 %v11724_v44  ;;  %3278 = vmatprep.mubr.f32.mxu1 %v11724_v44  ;;  %v3127_v32 = vld [vmem:[%s11501_s3 + $0x180] sm:$0xff] }
 0x5e5   :  { %5987 = vmatpush1.bf16.msra.mxu0 %v10196_v47  ;;  %6019 = vmatpush1.bf16.msra.mxu1 %v9432_v11  ;;  %v3112_v11 = vld [vmem:[%s11501_s3 + $0x108] sm:$0xff] }
 0x5e6   :  { %5989 = vmatprep.subr.bf16.mxu0 %v10200_v18  ;;  %6021 = vmatprep.subr.bf16.mxu1 %v9436_v25  ;;  %v10238_v25 = vpack.c.bf16 %v3107_v6, %v3103_v55  ;;  %v10242_v20 = vpack.c.bf16 %v3116_v60, %v3112_v11  ;;  %v3131_v55 = vld [vmem:[%s11501_s3 + $0x1a0] sm:$0xff]  ;;  %v3140_v6 = vld [vmem:[%s11501_s3 + $0x1e8] sm:$0xff] }
 0x5e7   :  { %v3135_v60 = vld [vmem:[%s11501_s3 + $0x1c0] sm:$0xff] }
 0x5e9   :  { %5991 = vmatpush1.bf16.msra.mxu0 %v10218_v49  ;;  %6023 = vmatpush1.bf16.msra.mxu1 %v9454_v51  ;;  %v3120_v51 = vld [vmem:[%s11501_s3 + $0x148] sm:$0xff] }
 0x5ea   :  { %5993 = vmatprep.subr.bf16.mxu0 %v10222_v38  ;;  %6025 = vmatprep.subr.bf16.mxu1 %v9458_v24  ;;  %v10258_v24 = vpack.c.bf16 %v3115_v39, %v3111_v1  ;;  %v10262_v15 = vpack.c.bf16 %v3124_v31, %v3120_v51  ;;  %v3139_v1 = vld [vmem:[%s11501_s3 + $0x1e0] sm:$0xff]  ;;  %v11924_v39 = vld [vmem:[#allocation35_spill] sm:$0xff]  ;;  %v11926_v31 = vld [vmem:[#allocation37_spill] sm:$0xff] }
 0x5eb   :  { %v11925_v51 = vld [vmem:[#allocation36_spill] sm:$0xff] }
 0x5ed   :  { %5995 = vmatpush1.bf16.msra.mxu0 %v10238_v25  ;;  %6027 = vmatpush1.bf16.msra.mxu1 %v9474_v9  ;;  %v3128_v9 = vld [vmem:[%s11501_s3 + $0x188] sm:$0xff] }
 0x5ee   :  { %5997 = vmatprep.subr.bf16.mxu0 %v10242_v20  ;;  %6029 = vmatprep.subr.bf16.mxu1 %v9478_v56  ;;  %v10278_v56 = vpack.c.bf16 %v3123_v19, %v3119_v7  ;;  %v10282_v42 = vpack.c.bf16 %v3132_v29, %v3128_v9  ;;  %v11927_v7 = vld [vmem:[#allocation38_spill] sm:$0xff]  ;;  %v11928_v19 = vld [vmem:[#allocation39_spill] sm:$0xff]  ;;  %v11929_v9 = vld [vmem:[#allocation40_spill] sm:$0xff] }
 0x5ef   :  { %v11930_v29 = vld [vmem:[#allocation41_spill] sm:$0xff] }
 0x5f1   :  { %5999 = vmatpush1.bf16.msra.mxu0 %v10258_v24  ;;  %6031 = vmatpush1.bf16.msra.mxu1 %v9494_v48  ;;  %v3136_v48 = vld [vmem:[%s11501_s3 + $0x1c8] sm:$0xff] }
 0x5f2   :  { %6001 = vmatprep.subr.bf16.mxu0 %v10262_v15  ;;  %6033 = vmatprep.subr.bf16.mxu1 %v9498_v45  ;;  %v10298_v45 = vpack.c.bf16 %v3131_v55, %v3127_v32  ;;  %v10302_v11 = vpack.c.bf16 %v3140_v6, %v3136_v48  ;;  %v11931_v32 = vld [vmem:[#allocation42_spill] sm:$0xff]  ;;  %v11932_v55 = vld [vmem:[#allocation55_spill] sm:$0xff]  ;;  %v11933_v48 = vld [vmem:[#allocation56_spill] sm:$0xff] }
 0x5f3   :  { %v3621_v6 = vld [vmem:[%s11501_s3 + $0x18] sm:$0xff] }
 0x5f5   :  { %6003 = vmatpush1.bf16.msra.mxu0 %v10278_v56  ;;  %6035 = vmatpush1.bf16.msra.mxu1 %v9514_v10  ;;  %v10312_v10 = vpack.c.bf16 %v3139_v1, %v3135_v60  ;;  %v3625_v60 = vld [vmem:[%s11501_s3 + $0x38] sm:$0xff] }
 0x5f6   :  { %6005 = vmatprep.subr.bf16.mxu0 %v10282_v42  ;;  %6037 = vmatprep.subr.bf16.mxu1 %v9518_v16  ;;  %v11894_v16 = vld [vmem:[#allocation5_spill] sm:$0xff]  ;;  %v10391_v1 = vpack.c.bf16 %v3625_v60, %v3621_v6 }
 0x5f9   :  { %6007 = vmatpush1.bf16.msra.mxu0 %v10298_v45  ;;  %6039 = vmatpush1.bf16.msra.mxu1 %v9534_v62  ;;  %v11895_v62 = vld [vmem:[#allocation6_spill] sm:$0xff] }
 0x5fa   :  { %6009 = vmatprep.subr.bf16.mxu0 %v10302_v11  ;;  %6041 = vmatprep.subr.bf16.mxu1 %v9538_v28  ;;  %v11896_v28 = vld [vmem:[#allocation7_spill] sm:$0xff] }
 0x5fd   :  { %6011 = vmatpush1.bf16.msra.mxu0 %v10312_v10  ;;  %6043 = vmatpush1.bf16.msra.mxu1 %v9548_v36  ;;  %v11897_v36 = vld [vmem:[#allocation8_spill] sm:$0xff] }
 0x5fe   :  { %6045 = vmatprep.subr.bf16.mxu0 %v9565_v0  ;;  %6109 = vmatprep.subr.bf16.mxu1 %v9576_v41  ;;  %v11898_v0 = vld [vmem:[#allocation9_spill] sm:$0xff]  ;;  %v11899_v41 = vld [vmem:[#allocation10_spill] sm:$0xff] }
 0x600   :  { %3208 = vmatmul.mubr.f32.vlgmr.msra.gmra.mrb[20].mxu0 %v10176_v59  ;;  %3279 = vmatmul.mubr.f32.vlgmr.msra.gmra.mrb[26].mxu1 %v10176_v59  ;;  %v11923_v59 = vld [vmem:[#allocation34_spill] sm:$0xff] }
 0x601   :  { %6047 = vmatpush1.bf16.msra.mxu0 %v9578_v21  ;;  %6111 = vmatpush1.bf16.msra.mxu1 %v9587_v4  ;;  %v11900_v21 = vld [vmem:[#allocation11_spill] sm:$0xff]  ;;  %v11901_v4 = vld [vmem:[#allocation12_spill] sm:$0xff] }
 0x602   :  { %6049 = vmatprep.subr.bf16.mxu0 %v9601_v34  ;;  %6113 = vmatprep.subr.bf16.mxu1 %v9612_v40  ;;  %v11902_v34 = vld [vmem:[#allocation13_spill] sm:$0xff]  ;;  %v11903_v40 = vld [vmem:[#allocation14_spill] sm:$0xff] }
 0x605   :  { %6051 = vmatpush1.bf16.msra.mxu0 %v9614_v23  ;;  %6115 = vmatpush1.bf16.msra.mxu1 %v9623_v46  ;;  %v11904_v23 = vld [vmem:[#allocation15_spill] sm:$0xff]  ;;  %v11905_v46 = vld [vmem:[#allocation16_spill] sm:$0xff] }
 0x606   :  { %6053 = vmatprep.subr.bf16.mxu0 %v9637_v53  ;;  %6117 = vmatprep.subr.bf16.mxu1 %v9648_v43  ;;  %v11906_v53 = vld [vmem:[#allocation17_spill] sm:$0xff]  ;;  %v11907_v43 = vld [vmem:[#allocation18_spill] sm:$0xff] }
 0x609   :  { %6055 = vmatpush1.bf16.msra.mxu0 %v9650_v12  ;;  %6119 = vmatpush1.bf16.msra.mxu1 %v9659_v27  ;;  %v11908_v12 = vld [vmem:[#allocation19_spill] sm:$0xff]  ;;  %v11909_v27 = vld [vmem:[#allocation20_spill] sm:$0xff] }
 0x60a   :  { %6057 = vmatprep.subr.bf16.mxu0 %v9673_v5  ;;  %6121 = vmatprep.subr.bf16.mxu1 %v9684_v58  ;;  %v11910_v5 = vld [vmem:[#allocation21_spill] sm:$0xff]  ;;  %v11911_v58 = vld [vmem:[#allocation22_spill] sm:$0xff] }
 0x60d   :  { %6059 = vmatpush1.bf16.msra.mxu0 %v9686_v3  ;;  %6123 = vmatpush1.bf16.msra.mxu1 %v9695_v35  ;;  %v11912_v3 = vld [vmem:[#allocation23_spill] sm:$0xff]  ;;  %v11913_v35 = vld [vmem:[#allocation24_spill] sm:$0xff] }
 0x60e   :  { %6061 = vmatprep.subr.bf16.mxu0 %v9709_v2  ;;  %6125 = vmatprep.subr.bf16.mxu1 %v9720_v52  ;;  %v11914_v2 = vld [vmem:[#allocation25_spill] sm:$0xff]  ;;  %v11915_v52 = vld [vmem:[#allocation26_spill] sm:$0xff] }
 0x611   :  { %6063 = vmatpush1.bf16.msra.mxu0 %v9722_v61  ;;  %6127 = vmatpush1.bf16.msra.mxu1 %v9731_v57  ;;  %v11916_v61 = vld [vmem:[#allocation27_spill] sm:$0xff]  ;;  %v11917_v57 = vld [vmem:[#allocation28_spill] sm:$0xff] }
 0x612   :  { %6065 = vmatprep.subr.bf16.mxu0 %v9745_v8  ;;  %6129 = vmatprep.subr.bf16.mxu1 %v9756_v26  ;;  %v11918_v8 = vld [vmem:[#allocation29_spill] sm:$0xff]  ;;  %v11919_v26 = vld [vmem:[#allocation30_spill] sm:$0xff] }
 0x615   :  { %6067 = vmatpush1.bf16.msra.mxu0 %v9758_v14  ;;  %6131 = vmatpush1.bf16.msra.mxu1 %v9767_v22  ;;  %v11920_v14 = vld [vmem:[#allocation31_spill] sm:$0xff]  ;;  %v11921_v22 = vld [vmem:[#allocation32_spill] sm:$0xff] }
 0x616   :  { %6069 = vmatprep.subr.bf16.mxu0 %v9781_v13  ;;  %6133 = vmatprep.subr.bf16.mxu1 %v11894_v16  ;;  %v11922_v13 = vld [vmem:[#allocation33_spill] sm:$0xff]  ;;  %v10397_v16 = vld [vmem:[%s11505_s5] sm:$0xff] }
 0x619   :  { %6071 = vmatpush1.bf16.msra.mxu0 %v11895_v62  ;;  %6135 = vmatpush1.bf16.msra.mxu1 %v11896_v28  ;;  %v10402_v62 = vld [vmem:[%s11505_s5 + $0x8] sm:$0xff] }
 0x61a   :  { %6073 = vmatprep.subr.bf16.mxu0 %v11897_v36  ;;  %6137 = vmatprep.subr.bf16.mxu1 %v11898_v0 }
 0x61d   :  { %6075 = vmatpush1.bf16.msra.mxu0 %v11899_v41  ;;  %6139 = vmatpush1.bf16.msra.mxu1 %v11900_v21 }
 0x61e   :  { %6077 = vmatprep.subr.bf16.mxu0 %v11901_v4  ;;  %6141 = vmatprep.subr.bf16.mxu1 %v11902_v34 }
 0x621   :  { %6079 = vmatpush1.bf16.msra.mxu0 %v11903_v40  ;;  %6143 = vmatpush1.bf16.msra.mxu1 %v11904_v23  ;;  %v10409_v23 = vld [vmem:[%s11505_s5 + $0x18] sm:$0xff] }
 0x622   :  { %6081 = vmatprep.subr.bf16.mxu0 %v11905_v46  ;;  %6145 = vmatprep.subr.bf16.mxu1 %v11906_v53  ;;  %v10415_v53 = vld [vmem:[%s11505_s5 + $0x10] sm:$0xff] }
 0x625   :  { %6083 = vmatpush1.bf16.msra.mxu0 %v11907_v43  ;;  %6147 = vmatpush1.bf16.msra.mxu1 %v11908_v12 }
 0x626   :  { %6085 = vmatprep.subr.bf16.mxu0 %v11909_v27  ;;  %6149 = vmatprep.subr.bf16.mxu1 %v11910_v5 }
 0x629   :  { %6087 = vmatpush1.bf16.msra.mxu0 %v11911_v58  ;;  %6151 = vmatpush1.bf16.msra.mxu1 %v11912_v3 }
 0x62a   :  { %6089 = vmatprep.subr.bf16.mxu0 %v11913_v35  ;;  %6153 = vmatprep.subr.bf16.mxu1 %v11914_v2 }
 0x62d   :  { %6091 = vmatpush1.bf16.msra.mxu0 %v11915_v52  ;;  %6155 = vmatpush1.bf16.msra.mxu1 %v11916_v61 }
 0x62e   :  { %6093 = vmatprep.subr.bf16.mxu0 %v11917_v57  ;;  %6157 = vmatprep.subr.bf16.mxu1 %v11918_v8 }
 0x631   :  { %6095 = vmatpush1.bf16.msra.mxu0 %v11919_v26  ;;  %6159 = vmatpush1.bf16.msra.mxu1 %v11920_v14 }
 0x632   :  { %6097 = vmatprep.subr.bf16.mxu0 %v11921_v22  ;;  %6161 = vmatprep.subr.bf16.mxu1 %v11922_v13 }
 0x635   :  { %6099 = vmatpush1.bf16.msra.mxu0 %v11923_v59  ;;  %6163 = vmatpush1.bf16.msra.mxu1 %v11924_v39  ;;  %v11934_v59 = vld [vmem:[#allocation49_spill] sm:$0xff] }
 0x636   :  { %6101 = vmatprep.subr.bf16.mxu0 %v11925_v51  ;;  %6165 = vmatprep.subr.bf16.mxu1 %v11926_v31 }
 0x639   :  { %6103 = vmatpush1.bf16.msra.mxu0 %v11927_v7  ;;  %6167 = vmatpush1.bf16.msra.mxu1 %v11928_v19  ;;  %v11935_v7 = vld [vmem:[#allocation50_spill] sm:$0xff] }
 0x63a   :  { %6105 = vmatprep.subr.bf16.mxu0 %v11929_v9  ;;  %6169 = vmatprep.subr.bf16.mxu1 %v11930_v29 }
 0x63d   :  { %6107 = vmatpush1.bf16.msra.mxu0 %v11931_v32  ;;  %6171 = vmatpush1.bf16.msra.mxu1 %v11932_v55 }
 0x63e   :  { %6173 = vmatprep.subr.bf16.mxu0 %v11933_v48  ;;  %6205 = vmatprep.subr.bf16.mxu1 %v10391_v1 }
 0x6b3   :  { %v2972_v28 = vpop.f32.mrb[18].mxu0  ;;  %v3043_v36 = vpop.f32.mrb[40].mxu1 }
 0x6b4   :  { %v2973_v0 = vadd.f32 %v2972_v28, %v10397_v16  ;;  %v2974_v41 = vpop.f32.mrb[19].mxu0  ;;  %v3045_v21 = vpop.f32.mrb[41].mxu1  ;;  %v3044_v12 = vadd.f32 %v3043_v36, %v10415_v53 }
 0x6b5   :  { %v2975_v4 = vadd.f32 %v2974_v41, %v10402_v62  ;;  %v3046_v46 = vadd.f32 %v3045_v21, %v10409_v23 }
 0x6b6   :  { %v4866_v34 = vmul.f32 -1.442695, %v2973_v0 }
 0x6b7   :  { %v4867_v40 = vmul.f32 -1.442695, %v2975_v4  ;;  %v4868_v43 = vmul.f32 -1.442695, %v3046_v46 }
 0x6b8   :  { %6797 = vpow2.f32 %v4866_v34 }
 0x6b9   :  { %6799 = vpow2.f32 %v4867_v40 }
 0x6ba   :  { %6801 = vpow2.f32 %v4868_v43 }
 0x6bb   :  { %6803 = vtanh.f32 %v3044_v12 }
 0x6c2   :  { %v6798_v27 = vpop.eup %6797 }
 0x6c3   :  { %v6800_v5 = vpop.eup %6799  ;;  %v3051_v58 = vadd.f32 1.0, %v6798_v27 }
 0x6c4   :  { %v3057_v3 = vadd.f32 1.0, %v6800_v5  ;;  %v6802_v35 = vpop.eup %6801  ;;  %v3620_v5 = vld [vmem:[%s11501_s3 + $0x10] sm:$0xff] }
 0x6c5   :  { %6805 = vrcp.f32 %v3051_v58  ;;  %v6804_v2 = vpop.eup %6803  ;;  %v3064_v8 = vadd.f32 1.0, %v6802_v35  ;;  %v3624_v58 = vld [vmem:[%s11501_s3 + $0x30] sm:$0xff] }
 0x6c6   :  { %6807 = vrcp.f32 %v3057_v3  ;;  %v3629_v3 = vld [vmem:[%s11501_s3 + $0x58] sm:$0xff] }
 0x6c7   :  { %6809 = vrcp.f32 %v3064_v8  ;;  %v3628_v8 = vld [vmem:[%s11501_s3 + $0x50] sm:$0xff] }
 0x6cf   :  { %v6806_v52 = vpop.eup %6805 }
 0x6d0   :  { %v6808_v61 = vpop.eup %6807  ;;  %v3068_v57 = vmul.f32 %v6806_v52, %v6804_v2  ;;  %v10446_v52 = vpack.c.bf16 %v3624_v58, %v3620_v5  ;;  %v3852_v58 = vld [vmem:[%s11503_s4] sm:$0xff] }
 0x6d1   :  { %v3067_v26 = vmul.f32 %v6808_v61, %v10147_v37  ;;  %v6810_v37 = vpop.eup %6809 }
 0x6d3   :  { %v3209_v14 = vpop.f32.mrb[20].mxu0  ;;  %v3280_v22 = vpop.f32.mrb[26].mxu1  ;;  %v10419_v13 = vadd.f32 %v3068_v57, %v3067_v26  ;;  %v3632_v26 = vld [vmem:[%s11501_s3 + $0x70] sm:$0xff] }
 0x6d4   :  { %v3285_v39 = vadd.f32 %v3209_v14, %v11934_v59  ;;  %v3211_v51 = vpop.f32.mrb[21].mxu0  ;;  %v3282_v31 = vpop.f32.mrb[27].mxu1  ;;  %v6630_v6 = vadd.f32 %v3280_v22, %v8082_v30  ;;  %v3637_v14 = vld [vmem:[%s11501_s3 + $0x98] sm:$0xff]  ;;  %v10468_v59 = vpack.c.bf16 %v3632_v26, %v3628_v8  ;;  %v3861_v26 = vld [vmem:[%s11503_s4 + $0x48] sm:$0xff] }
 0x6d5   :  { %v3286_v19 = vadd.f32 %v3211_v51, %v11935_v7  ;;  %6811 = vtanh.f32 %v10419_v13  ;;  %v6631_v32 = vadd.f32 %v3282_v31, %v8084_v50  ;;  %v3641_v22 = vld [vmem:[%s11501_s3 + $0xb8] sm:$0xff]  ;;  %v3636_v51 = vld [vmem:[%s11501_s3 + $0x90] sm:$0xff] }
 0x6d6   :  { %v4869_v9 = vmul.f32 -1.442695, %v3285_v39  ;;  %v10472_v39 = vpack.c.bf16 %v3641_v22, %v3637_v14  ;;  %v3640_v31 = vld [vmem:[%s11501_s3 + $0xb0] sm:$0xff]  ;;  %v3865_v14 = vld [vmem:[%s11503_s4 + $0x68] sm:$0xff]  ;;  %v3863_v22 = vld [vmem:[%s11503_s4 + $0x58] sm:$0xff] }
 0x6d7   :  { %v4870_v29 = vmul.f32 -1.442695, %v3286_v19  ;;  %v4871_v48 = vmul.f32 -1.442695, %v6631_v32  ;;  %v10490_v7 = vpack.c.bf16 %v3640_v31, %v3636_v51  ;;  %v10637_v51 = vpack.c.bf16 %v3865_v14, %v3861_v26  ;;  %v3867_v31 = vld [vmem:[%s11503_s4 + $0x78] sm:$0xff]  ;;  %v3878_v26 = vld [vmem:[%s11503_s4 + $0xd0] sm:$0xff] }
 0x6d8   :  { %6813 = vpow2.f32 %v4869_v9  ;;  %v3644_v9 = vld [vmem:[%s11501_s3 + $0xd0] sm:$0xff] }
 0x6d9   :  { %6815 = vpow2.f32 %v4870_v29  ;;  %v3648_v29 = vld [vmem:[%s11501_s3 + $0xf0] sm:$0xff] }
 0x6da   :  { %6817 = vpow2.f32 %v4871_v48  ;;  %v10510_v32 = vpack.c.bf16 %v3648_v29, %v3644_v9  ;;  %v3656_v48 = vld [vmem:[%s11501_s3 + $0x130] sm:$0xff]  ;;  %v10648_v9 = vpack.c.bf16 %v3867_v31, %v3863_v22  ;;  %v3885_v31 = vld [vmem:[%s11503_s4 + $0x108] sm:$0xff] }
 0x6db   :  { %6819 = vtanh.f32 %v6630_v6  ;;  %v3882_v14 = vld [vmem:[%s11503_s4 + $0xf0] sm:$0xff] }
 0x6dc   :  { %v10731_v22 = vpack.c.bf16 %v3882_v14, %v3878_v26 }
 0x6df   :  { %v6812_v55 = vpop.eup %6811 }
 0x6e0   :  { %v10426_v60 = vmul.f32 %v6812_v55, %v6810_v37  ;;  %v3652_v55 = vld [vmem:[%s11501_s3 + $0x110] sm:$0xff] }
 0x6e1   :  { %v10530_v6 = vpack.c.bf16 %v3656_v48, %v3652_v55  ;;  %v3869_v48 = vld [vmem:[%s11503_s4 + $0x88] sm:$0xff] }
 0x6e2   :  { %11936 = vst [vmem:[#allocation46_spill] sm:$0xff] %v10426_v60  ;;  %v6814_v28 = vpop.eup %6813  ;;  %3509 = vmatprep.mubr.f32.mxu0 %v10426_v60  ;;  %3580 = vmatprep.mubr.f32.mxu1 %v10426_v60 }
 0x6e3   :  { %v6816_v36 = vpop.eup %6815  ;;  %v3292_v0 = vadd.f32 1.0, %v6814_v28 }
 0x6e4   :  { %v3298_v41 = vadd.f32 1.0, %v6816_v36  ;;  %v6818_v21 = vpop.eup %6817  ;;  %v3660_v36 = vld [vmem:[%s11501_s3 + $0x150] sm:$0xff] }
 0x6e5   :  { %6821 = vrcp.f32 %v3292_v0  ;;  %v6820_v4 = vpop.eup %6819  ;;  %v3305_v43 = vadd.f32 1.0, %v6818_v21  ;;  %v3664_v0 = vld [vmem:[%s11501_s3 + $0x170] sm:$0xff] }
 0x6e6   :  { %6823 = vrcp.f32 %v3298_v41  ;;  %v10550_v41 = vpack.c.bf16 %v3664_v0, %v3660_v36  ;;  %v3875_v0 = vld [vmem:[%s11503_s4 + $0xb8] sm:$0xff] }
 0x6e7   :  { %6825 = vrcp.f32 %v3305_v43  ;;  %v3676_v43 = vld [vmem:[%s11501_s3 + $0x1d0] sm:$0xff] }
 0x6ef   :  { %v6822_v34 = vpop.eup %6821 }
 0x6f0   :  { %v6824_v40 = vpop.eup %6823  ;;  %v3309_v46 = vmul.f32 %v6822_v34, %v6820_v4  ;;  %v3668_v4 = vld [vmem:[%s11501_s3 + $0x190] sm:$0xff] }
 0x6f1   :  { %v3308_v12 = vmul.f32 %v6824_v40, %v10159_v17  ;;  %v3633_v17 = vld [vmem:[%s11501_s3 + $0x78] sm:$0xff]  ;;  %v6826_v35 = vpop.eup %6825  ;;  %v3672_v34 = vld [vmem:[%s11501_s3 + $0x1b0] sm:$0xff] }
 0x6f2   :  { %v10450_v57 = vpack.c.bf16 %v3633_v17, %v3629_v3  ;;  %v10570_v40 = vpack.c.bf16 %v3672_v34, %v3668_v4  ;;  %v3856_v3 = vld [vmem:[%s11503_s4 + $0x20] sm:$0xff] }
 0x6f3   :  { %v10431_v27 = vadd.f32 %v3309_v46, %v3308_v12  ;;  %v3680_v12 = vld [vmem:[%s11501_s3 + $0x1f0] sm:$0xff] }
 0x6f5   :  { %6827 = vtanh.f32 %v10431_v27 }
 0x6ff   :  { %v6828_v2 = vpop.eup %6827 }
 0x700   :  { %v10448_v61 = vmul.f32 %v6828_v2, %v6826_v35  ;;  %v10614_v35 = vpack.c.bf16 %v3856_v3, %v3852_v58  ;;  %v3854_v2 = vld [vmem:[%s11503_s4 + $0x10] sm:$0xff]  ;;  %v3876_v58 = vld [vmem:[%s11503_s4 + $0xc0] sm:$0xff] }
 0x701   :  { %v3880_v3 = vld [vmem:[%s11503_s4 + $0xe0] sm:$0xff] }
 0x702   :  { %3510 = vmatmul.mubr.f32.vlgmr.msra.gmra.mrb[22].mxu0 %v10448_v61  ;;  %3581 = vmatmul.mubr.f32.vlgmr.msra.gmra.mrb[42].mxu1 %v10448_v61 }
 0x703   :  { %6175 = vmatpush1.bf16.msra.mxu0 %v10174_v33  ;;  %6207 = vmatpush1.bf16.msra.mxu1 %v10446_v52  ;;  %v3645_v33 = vld [vmem:[%s11501_s3 + $0xd8] sm:$0xff] }
 0x704   :  { %6177 = vmatprep.subr.bf16.mxu0 %v10178_v54  ;;  %6209 = vmatprep.subr.bf16.mxu1 %v10450_v57  ;;  %v3649_v54 = vld [vmem:[%s11501_s3 + $0xf8] sm:$0xff] }
 0x705   :  { %3746 = vmatprep.mubr.f32.mxu0 %v11724_v44  ;;  %3817 = vmatprep.mubr.f32.mxu1 %v11724_v44  ;;  %v10494_v19 = vpack.c.bf16 %v3649_v54, %v3645_v33  ;;  %v3860_v33 = vld [vmem:[%s11503_s4 + $0x40] sm:$0xff] }
 0x706   :  { %v3864_v54 = vld [vmem:[%s11503_s4 + $0x60] sm:$0xff] }
 0x707   :  { %6179 = vmatpush1.bf16.msra.mxu0 %v10196_v47  ;;  %6211 = vmatpush1.bf16.msra.mxu1 %v10468_v59  ;;  %v3653_v47 = vld [vmem:[%s11501_s3 + $0x118] sm:$0xff]  ;;  %v10650_v29 = vpack.c.bf16 %v3864_v54, %v3860_v33  ;;  %v3889_v33 = vld [vmem:[%s11503_s4 + $0x128] sm:$0xff] }
 0x708   :  { %6181 = vmatprep.subr.bf16.mxu0 %v10200_v18  ;;  %6213 = vmatprep.subr.bf16.mxu1 %v10472_v39  ;;  %v3657_v18 = vld [vmem:[%s11501_s3 + $0x138] sm:$0xff] }
 0x709   :  { %v10514_v37 = vpack.c.bf16 %v3657_v18, %v3653_v47  ;;  %v3862_v47 = vld [vmem:[%s11503_s4 + $0x50] sm:$0xff]  ;;  %v3887_v54 = vld [vmem:[%s11503_s4 + $0x118] sm:$0xff] }
 0x70a   :  { %v3866_v18 = vld [vmem:[%s11503_s4 + $0x70] sm:$0xff] }
 0x70b   :  { %6183 = vmatpush1.bf16.msra.mxu0 %v10218_v49  ;;  %6215 = vmatpush1.bf16.msra.mxu1 %v10490_v7  ;;  %v3661_v49 = vld [vmem:[%s11501_s3 + $0x158] sm:$0xff]  ;;  %v10659_v55 = vpack.c.bf16 %v3866_v18, %v3862_v47  ;;  %v10745_v47 = vpack.c.bf16 %v3889_v33, %v3885_v31  ;;  %v3894_v31 = vld [vmem:[%s11503_s4 + $0x150] sm:$0xff] }
 0x70c   :  { %6185 = vmatprep.subr.bf16.mxu0 %v10222_v38  ;;  %6217 = vmatprep.subr.bf16.mxu1 %v10494_v19  ;;  %v3665_v38 = vld [vmem:[%s11501_s3 + $0x178] sm:$0xff]  ;;  %v3898_v33 = vld [vmem:[%s11503_s4 + $0x170] sm:$0xff] }
 0x70d   :  { %v10534_v28 = vpack.c.bf16 %v3665_v38, %v3661_v49  ;;  %v3873_v49 = vld [vmem:[%s11503_s4 + $0xa8] sm:$0xff]  ;;  %v3871_v38 = vld [vmem:[%s11503_s4 + $0x98] sm:$0xff] }
 0x70e   :  { %v10673_v36 = vpack.c.bf16 %v3873_v49, %v3869_v48  ;;  %v10684_v4 = vpack.c.bf16 %v3875_v0, %v3871_v38  ;;  %v3891_v18 = vld [vmem:[%s11503_s4 + $0x138] sm:$0xff]  ;;  %v3884_v48 = vld [vmem:[%s11503_s4 + $0x100] sm:$0xff] }
 0x70f   :  { %6187 = vmatpush1.bf16.msra.mxu0 %v10238_v25  ;;  %6219 = vmatpush1.bf16.msra.mxu1 %v10510_v32  ;;  %v3669_v25 = vld [vmem:[%s11501_s3 + $0x198] sm:$0xff]  ;;  %v3888_v49 = vld [vmem:[%s11503_s4 + $0x120] sm:$0xff]  ;;  %v10756_v38 = vpack.c.bf16 %v3891_v18, %v3887_v54  ;;  %v10803_v54 = vpack.c.bf16 %v3898_v33, %v3894_v31  ;;  %v3901_v18 = vld [vmem:[%s11503_s4 + $0x188] sm:$0xff] }
 0x710   :  { %6189 = vmatprep.subr.bf16.mxu0 %v10242_v20  ;;  %6221 = vmatprep.subr.bf16.mxu1 %v10514_v37  ;;  %v3673_v20 = vld [vmem:[%s11501_s3 + $0x1b8] sm:$0xff]  ;;  %v10758_v0 = vpack.c.bf16 %v3888_v49, %v3884_v48  ;;  %v3905_v48 = vld [vmem:[%s11503_s4 + $0x1a8] sm:$0xff] }
 0x711   :  { %v10554_v21 = vpack.c.bf16 %v3673_v20, %v3669_v25  ;;  %v3868_v25 = vld [vmem:[%s11503_s4 + $0x80] sm:$0xff]  ;;  %v3903_v49 = vld [vmem:[%s11503_s4 + $0x198] sm:$0xff]  ;;  %v3909_v33 = vld [vmem:[%s11503_s4 + $0x1c8] sm:$0xff] }
 0x712   :  { %v3872_v20 = vld [vmem:[%s11503_s4 + $0xa0] sm:$0xff] }
 0x713   :  { %6191 = vmatpush1.bf16.msra.mxu0 %v10258_v24  ;;  %6223 = vmatpush1.bf16.msra.mxu1 %v10530_v6  ;;  %v3677_v24 = vld [vmem:[%s11501_s3 + $0x1d8] sm:$0xff]  ;;  %v10686_v34 = vpack.c.bf16 %v3872_v20, %v3868_v25  ;;  %v3886_v25 = vld [vmem:[%s11503_s4 + $0x110] sm:$0xff] }
 0x714   :  { %6193 = vmatprep.subr.bf16.mxu0 %v10262_v15  ;;  %6225 = vmatprep.subr.bf16.mxu1 %v10534_v28  ;;  %v3681_v15 = vld [vmem:[%s11501_s3 + $0x1f8] sm:$0xff]  ;;  %v3890_v20 = vld [vmem:[%s11503_s4 + $0x130] sm:$0xff] }
 0x715   :  { %v10574_v46 = vpack.c.bf16 %v3681_v15, %v3677_v24  ;;  %v3870_v24 = vld [vmem:[%s11503_s4 + $0x90] sm:$0xff] }
 0x716   :  { %v3874_v15 = vld [vmem:[%s11503_s4 + $0xb0] sm:$0xff] }
 0x717   :  { %6195 = vmatpush1.bf16.msra.mxu0 %v10278_v56  ;;  %6227 = vmatpush1.bf16.msra.mxu1 %v10550_v41  ;;  %v10584_v56 = vpack.c.bf16 %v3680_v12, %v3676_v43  ;;  %v10695_v43 = vpack.c.bf16 %v3874_v15, %v3870_v24  ;;  %v3877_v12 = vld [vmem:[%s11503_s4 + $0xc8] sm:$0xff]  ;;  %v10767_v24 = vpack.c.bf16 %v3890_v20, %v3886_v25  ;;  %v3907_v20 = vld [vmem:[%s11503_s4 + $0x1b8] sm:$0xff] }
 0x718   :  { %6197 = vmatprep.subr.bf16.mxu0 %v10282_v42  ;;  %6229 = vmatprep.subr.bf16.mxu1 %v10554_v21  ;;  %v3853_v42 = vld [vmem:[%s11503_s4 + $0x8] sm:$0xff]  ;;  %v10817_v25 = vpack.c.bf16 %v3905_v48, %v3901_v18  ;;  %v3911_v48 = vld [vmem:[%s11503_s4 + $0x1d8] sm:$0xff] }
 0x719   :  { %v3893_v15 = vld [vmem:[%s11503_s4 + $0x148] sm:$0xff] }
 0x71a   :  { %v3913_v18 = vld [vmem:[%s11503_s4 + $0x1e8] sm:$0xff] }
 0x71b   :  { %6199 = vmatpush1.bf16.msra.mxu0 %v10298_v45  ;;  %6231 = vmatpush1.bf16.msra.mxu1 %v10570_v40  ;;  %v3857_v45 = vld [vmem:[%s11503_s4 + $0x28] sm:$0xff] }
 0x71c   :  { %6201 = vmatprep.subr.bf16.mxu0 %v10302_v11  ;;  %6233 = vmatprep.subr.bf16.mxu1 %v10574_v46  ;;  %v3855_v11 = vld [vmem:[%s11503_s4 + $0x18] sm:$0xff]  ;;  %v10601_v5 = vpack.c.bf16 %v3857_v45, %v3853_v42  ;;  %v3881_v42 = vld [vmem:[%s11503_s4 + $0xe8] sm:$0xff] }
 0x71d   :  { %v3879_v45 = vld [vmem:[%s11503_s4 + $0xd8] sm:$0xff] }
 0x71f   :  { %6203 = vmatpush1.bf16.msra.mxu0 %v10312_v10  ;;  %6235 = vmatpush1.bf16.msra.mxu1 %v10584_v56  ;;  %v3859_v10 = vld [vmem:[%s11503_s4 + $0x38] sm:$0xff] }
 0x720   :  { %v10612_v17 = vpack.c.bf16 %v3859_v10, %v3855_v11  ;;  %6237 = vmatprep.subr.bf16.mxu0 %v10601_v5  ;;  %v10709_v11 = vpack.c.bf16 %v3881_v42, %v3877_v12  ;;  %v3883_v10 = vld [vmem:[%s11503_s4 + $0xf8] sm:$0xff]  ;;  %v3897_v12 = vld [vmem:[%s11503_s4 + $0x168] sm:$0xff] }
 0x721   :  { %v3895_v42 = vld [vmem:[%s11503_s4 + $0x158] sm:$0xff] }
 0x722   :  { %3747 = vmatmul.mubr.f32.vlgmr.msra.gmra.mrb[24].mxu0 %v10448_v61  ;;  %3818 = vmatmul.mubr.f32.vlgmr.msra.gmra.mrb[28].mxu1 %v10448_v61  ;;  %v3858_v61 = vld [vmem:[%s11503_s4 + $0x30] sm:$0xff] }
 0x723   :  { %v10623_v8 = vpack.c.bf16 %v3858_v61, %v3854_v2  ;;  %6301 = vmatprep.subr.bf16.mxu1 %v10612_v17  ;;  %6239 = vmatpush1.bf16.msra.mxu0 %v10614_v35  ;;  %v10720_v2 = vpack.c.bf16 %v3883_v10, %v3879_v45  ;;  %v10722_v61 = vpack.c.bf16 %v3880_v3, %v3876_v58  ;;  %v3899_v10 = vld [vmem:[%s11503_s4 + $0x178] sm:$0xff]  ;;  %v3892_v58 = vld [vmem:[%s11503_s4 + $0x140] sm:$0xff] }
 0x724   :  { %6241 = vmatprep.subr.bf16.mxu0 %v10637_v51  ;;  %v10781_v45 = vpack.c.bf16 %v3897_v12, %v3893_v15  ;;  %v3896_v3 = vld [vmem:[%s11503_s4 + $0x160] sm:$0xff]  ;;  %v10792_v26 = vpack.c.bf16 %v3899_v10, %v3895_v42  ;;  %v10828_v42 = vpack.c.bf16 %v3907_v20, %v3903_v49  ;;  %v10853_v49 = vpack.c.bf16 %v3913_v18, %v3909_v33  ;;  %v3915_v20 = vld [vmem:[%s11503_s4 + $0x1f8] sm:$0xff]  ;;  %v3910_v33 = vld [vmem:[%s11503_s4 + $0x1d0] sm:$0xff] }
 0x725   :  { %6303 = vmatpush1.bf16.msra.mxu1 %v10623_v8  ;;  %v10794_v14 = vpack.c.bf16 %v3896_v3, %v3892_v58  ;;  %v3900_v15 = vld [vmem:[%s11503_s4 + $0x180] sm:$0xff]  ;;  %v3902_v58 = vld [vmem:[%s11503_s4 + $0x190] sm:$0xff] }
 0x726   :  { %6305 = vmatprep.subr.bf16.mxu1 %v10648_v9  ;;  %v3904_v12 = vld [vmem:[%s11503_s4 + $0x1a0] sm:$0xff]  ;;  %11937 = vst [vmem:[#allocation47_spill] sm:$0xff] %v10828_v42  ;;  %v3906_v3 = vld [vmem:[%s11503_s4 + $0x1b0] sm:$0xff]  ;;  %11940 = vst [vmem:[#allocation6_spill] sm:$0xff] %v10853_v49 }
 0x727   :  { %6243 = vmatpush1.bf16.msra.mxu0 %v10650_v29  ;;  %v10830_v10 = vpack.c.bf16 %v3904_v12, %v3900_v15  ;;  %v10839_v31 = vpack.c.bf16 %v3906_v3, %v3902_v58  ;;  %v3908_v15 = vld [vmem:[%s11503_s4 + $0x1c0] sm:$0xff]  ;;  %v10864_v58 = vpack.c.bf16 %v3915_v20, %v3911_v48  ;;  %v3914_v18 = vld [vmem:[%s11503_s4 + $0x1f0] sm:$0xff]  ;;  %v3917_v48 = vld [vmem:[%s11503_s4 + $0x208] sm:$0xff] }
 0x728   :  { %6245 = vmatprep.subr.bf16.mxu0 %v10673_v36  ;;  %v3912_v12 = vld [vmem:[%s11503_s4 + $0x1e0] sm:$0xff]  ;;  %v10875_v60 = vpack.c.bf16 %v3914_v18, %v3910_v33  ;;  %v3921_v20 = vld [vmem:[%s11503_s4 + $0x228] sm:$0xff]  ;;  %v3923_v33 = vld [vmem:[%s11503_s4 + $0x238] sm:$0xff] }
 0x729   :  { %6307 = vmatpush1.bf16.msra.mxu1 %v10659_v55  ;;  %11938 = vst [vmem:[#allocation48_spill] sm:$0xff] %v10830_v10  ;;  %11939 = vst [vmem:[#allocation5_spill] sm:$0xff] %v10839_v31  ;;  %v10866_v3 = vpack.c.bf16 %v3912_v12, %v3908_v15  ;;  %v3919_v15 = vld [vmem:[%s11503_s4 + $0x218] sm:$0xff]  ;;  %v10889_v12 = vpack.c.bf16 %v3921_v20, %v3917_v48  ;;  %v3916_v18 = vld [vmem:[%s11503_s4 + $0x200] sm:$0xff] }
 0x72a   :  { %6309 = vmatprep.subr.bf16.mxu1 %v10684_v4  ;;  %11941 = vst [vmem:[#allocation7_spill] sm:$0xff] %v10864_v58  ;;  %11943 = vst [vmem:[#allocation9_spill] sm:$0xff] %v10875_v60  ;;  %v3918_v48 = vld [vmem:[%s11503_s4 + $0x210] sm:$0xff] }
 0x72b   :  { %6247 = vmatpush1.bf16.msra.mxu0 %v10686_v34  ;;  %11942 = vst [vmem:[#allocation8_spill] sm:$0xff] %v10866_v3  ;;  %11944 = vst [vmem:[#allocation10_spill] sm:$0xff] %v10889_v12  ;;  %v3922_v20 = vld [vmem:[%s11503_s4 + $0x230] sm:$0xff] }
 0x72c   :  { %6249 = vmatprep.subr.bf16.mxu0 %v10709_v11 }
 0x72d   :  { %6311 = vmatpush1.bf16.msra.mxu1 %v10695_v43 }
 0x72e   :  { %6313 = vmatprep.subr.bf16.mxu1 %v10720_v2 }
 0x72f   :  { %6251 = vmatpush1.bf16.msra.mxu0 %v10722_v61 }
 0x730   :  { %6253 = vmatprep.subr.bf16.mxu0 %v10745_v47 }
 0x731   :  { %6315 = vmatpush1.bf16.msra.mxu1 %v10731_v22 }
 0x732   :  { %6317 = vmatprep.subr.bf16.mxu1 %v10756_v38 }
 0x733   :  { %6255 = vmatpush1.bf16.msra.mxu0 %v10758_v0 }
 0x734   :  { %6257 = vmatprep.subr.bf16.mxu0 %v10781_v45 }
 0x735   :  { %6319 = vmatpush1.bf16.msra.mxu1 %v10767_v24 }
 0x736   :  { %6321 = vmatprep.subr.bf16.mxu1 %v10792_v26 }
 0x737   :  { %6259 = vmatpush1.bf16.msra.mxu0 %v10794_v14 }
 0x738   :  { %6261 = vmatprep.subr.bf16.mxu0 %v10817_v25 }
 0x739   :  { %6323 = vmatpush1.bf16.msra.mxu1 %v10803_v54 }
 0x73a   :  { %6325 = vmatprep.subr.bf16.mxu1 %v10828_v42 }
 0x73b   :  { %6263 = vmatpush1.bf16.msra.mxu0 %v10830_v10 }
 0x73c   :  { %6265 = vmatprep.subr.bf16.mxu0 %v10853_v49 }
 0x73d   :  { %6327 = vmatpush1.bf16.msra.mxu1 %v10839_v31  ;;  %v3966_v31 = vld [vmem:[%s11503_s4 + $0x390] sm:$0xff] }
 0x73e   :  { %6329 = vmatprep.subr.bf16.mxu1 %v10864_v58  ;;  %v10902_v58 = vpack.c.bf16 %v3920_v63, %v3916_v18  ;;  %v3925_v63 = vld [vmem:[%s11503_s4 + $0x248] sm:$0xff] }
 0x73f   :  { %6267 = vmatpush1.bf16.msra.mxu0 %v10866_v3  ;;  %v10900_v3 = vpack.c.bf16 %v3923_v33, %v3919_v15  ;;  %v3929_v15 = vld [vmem:[%s11503_s4 + $0x268] sm:$0xff]  ;;  %v3927_v33 = vld [vmem:[%s11503_s4 + $0x258] sm:$0xff] }
 0x740   :  { %11946 = vst [vmem:[#allocation12_spill] sm:$0xff] %v10902_v58  ;;  %6269 = vmatprep.subr.bf16.mxu0 %v10889_v12  ;;  %v10925_v18 = vpack.c.bf16 %v3929_v15, %v3925_v63  ;;  %v3926_v63 = vld [vmem:[%s11503_s4 + $0x250] sm:$0xff] }
 0x741   :  { %6331 = vmatpush1.bf16.msra.mxu1 %v10875_v60  ;;  %11945 = vst [vmem:[#allocation11_spill] sm:$0xff] %v10900_v3  ;;  %v10911_v60 = vpack.c.bf16 %v3922_v20, %v3918_v48  ;;  %v3931_v48 = vld [vmem:[%s11503_s4 + $0x278] sm:$0xff]  ;;  %v3924_v20 = vld [vmem:[%s11503_s4 + $0x240] sm:$0xff]  ;;  %v3930_v15 = vld [vmem:[%s11503_s4 + $0x270] sm:$0xff] }
 0x742   :  { %6333 = vmatprep.subr.bf16.mxu1 %v10900_v3  ;;  %11948 = vst [vmem:[#allocation14_spill] sm:$0xff] %v10925_v18  ;;  %v10936_v3 = vpack.c.bf16 %v3931_v48, %v3927_v33  ;;  %v3937_v33 = vld [vmem:[%s11503_s4 + $0x2a8] sm:$0xff]  ;;  %v3935_v48 = vld [vmem:[%s11503_s4 + $0x298] sm:$0xff] }
 0x743   :  { %11947 = vst [vmem:[#allocation13_spill] sm:$0xff] %v10911_v60  ;;  %6271 = vmatpush1.bf16.msra.mxu0 %v10902_v58  ;;  %v3928_v58 = vld [vmem:[%s11503_s4 + $0x260] sm:$0xff] }
 0x744   :  { %11949 = vst [vmem:[#allocation15_spill] sm:$0xff] %v10936_v3  ;;  %v10938_v12 = vpack.c.bf16 %v3928_v58, %v3924_v20  ;;  %6273 = vmatprep.subr.bf16.mxu0 %v10925_v18  ;;  %v3933_v58 = vld [vmem:[%s11503_s4 + $0x288] sm:$0xff] }
 0x745   :  { %6335 = vmatpush1.bf16.msra.mxu1 %v10911_v60  ;;  %v10947_v60 = vpack.c.bf16 %v3930_v15, %v3926_v63  ;;  %v10961_v20 = vpack.c.bf16 %v3937_v33, %v3933_v58  ;;  %v3939_v63 = vld [vmem:[%s11503_s4 + $0x2b8] sm:$0xff]  ;;  %v3932_v15 = vld [vmem:[%s11503_s4 + $0x280] sm:$0xff]  ;;  %v3934_v58 = vld [vmem:[%s11503_s4 + $0x290] sm:$0xff] }
 0x746   :  { %11950 = vst [vmem:[#allocation16_spill] sm:$0xff] %v10938_v12  ;;  %6337 = vmatprep.subr.bf16.mxu1 %v10936_v3  ;;  %v10972_v3 = vpack.c.bf16 %v3939_v63, %v3935_v48  ;;  %v3938_v33 = vld [vmem:[%s11503_s4 + $0x2b0] sm:$0xff]  ;;  %v3945_v48 = vld [vmem:[%s11503_s4 + $0x2e8] sm:$0xff]  ;;  %v3943_v63 = vld [vmem:[%s11503_s4 + $0x2d8] sm:$0xff] }
 0x747   :  { %11951 = vst [vmem:[#allocation17_spill] sm:$0xff] %v10947_v60  ;;  %6275 = vmatpush1.bf16.msra.mxu0 %v10938_v12  ;;  %11952 = vst [vmem:[#allocation18_spill] sm:$0xff] %v10961_v20  ;;  %v3936_v12 = vld [vmem:[%s11503_s4 + $0x2a0] sm:$0xff] }
 0x748   :  { %11953 = vst [vmem:[#allocation19_spill] sm:$0xff] %v10972_v3  ;;  %v10974_v18 = vpack.c.bf16 %v3936_v12, %v3932_v15  ;;  %6277 = vmatprep.subr.bf16.mxu0 %v10961_v20  ;;  %v3941_v12 = vld [vmem:[%s11503_s4 + $0x2c8] sm:$0xff] }
 0x749   :  { %6339 = vmatpush1.bf16.msra.mxu1 %v10947_v60  ;;  %v10983_v60 = vpack.c.bf16 %v3938_v33, %v3934_v58  ;;  %v10997_v15 = vpack.c.bf16 %v3945_v48, %v3941_v12  ;;  %v3947_v58 = vld [vmem:[%s11503_s4 + $0x2f8] sm:$0xff]  ;;  %v3940_v33 = vld [vmem:[%s11503_s4 + $0x2c0] sm:$0xff]  ;;  %v3942_v12 = vld [vmem:[%s11503_s4 + $0x2d0] sm:$0xff] }
 0x74a   :  { %11954 = vst [vmem:[#allocation20_spill] sm:$0xff] %v10974_v18  ;;  %6341 = vmatprep.subr.bf16.mxu1 %v10972_v3  ;;  %v11008_v3 = vpack.c.bf16 %v3947_v58, %v3943_v63  ;;  %v3946_v48 = vld [vmem:[%s11503_s4 + $0x2f0] sm:$0xff]  ;;  %v3953_v63 = vld [vmem:[%s11503_s4 + $0x328] sm:$0xff]  ;;  %v3951_v58 = vld [vmem:[%s11503_s4 + $0x318] sm:$0xff] }
 0x74b   :  { %11955 = vst [vmem:[#allocation21_spill] sm:$0xff] %v10983_v60  ;;  %6279 = vmatpush1.bf16.msra.mxu0 %v10974_v18  ;;  %11956 = vst [vmem:[#allocation22_spill] sm:$0xff] %v10997_v15  ;;  %v3944_v18 = vld [vmem:[%s11503_s4 + $0x2e0] sm:$0xff] }
 0x74c   :  { %11957 = vst [vmem:[#allocation23_spill] sm:$0xff] %v11008_v3  ;;  %v11010_v20 = vpack.c.bf16 %v3944_v18, %v3940_v33  ;;  %6281 = vmatprep.subr.bf16.mxu0 %v10997_v15  ;;  %v3949_v18 = vld [vmem:[%s11503_s4 + $0x308] sm:$0xff] }
 0x74d   :  { %6343 = vmatpush1.bf16.msra.mxu1 %v10983_v60  ;;  %v11019_v60 = vpack.c.bf16 %v3946_v48, %v3942_v12  ;;  %v11033_v33 = vpack.c.bf16 %v3953_v63, %v3949_v18  ;;  %v3955_v12 = vld [vmem:[%s11503_s4 + $0x338] sm:$0xff]  ;;  %v3948_v48 = vld [vmem:[%s11503_s4 + $0x300] sm:$0xff]  ;;  %v3950_v18 = vld [vmem:[%s11503_s4 + $0x310] sm:$0xff] }
 0x74e   :  { %11958 = vst [vmem:[#allocation24_spill] sm:$0xff] %v11010_v20  ;;  %6345 = vmatprep.subr.bf16.mxu1 %v11008_v3  ;;  %v11044_v3 = vpack.c.bf16 %v3955_v12, %v3951_v58  ;;  %v3954_v63 = vld [vmem:[%s11503_s4 + $0x330] sm:$0xff]  ;;  %v3961_v58 = vld [vmem:[%s11503_s4 + $0x368] sm:$0xff]  ;;  %v3959_v12 = vld [vmem:[%s11503_s4 + $0x358] sm:$0xff] }
 0x74f   :  { %11959 = vst [vmem:[#allocation25_spill] sm:$0xff] %v11019_v60  ;;  %6283 = vmatpush1.bf16.msra.mxu0 %v11010_v20  ;;  %11960 = vst [vmem:[#allocation26_spill] sm:$0xff] %v11033_v33  ;;  %v3952_v20 = vld [vmem:[%s11503_s4 + $0x320] sm:$0xff] }
 0x750   :  { %11961 = vst [vmem:[#allocation27_spill] sm:$0xff] %v11044_v3  ;;  %v11046_v15 = vpack.c.bf16 %v3952_v20, %v3948_v48  ;;  %6285 = vmatprep.subr.bf16.mxu0 %v11033_v33  ;;  %v3957_v20 = vld [vmem:[%s11503_s4 + $0x348] sm:$0xff] }
 0x751   :  { %6347 = vmatpush1.bf16.msra.mxu1 %v11019_v60  ;;  %v11055_v60 = vpack.c.bf16 %v3954_v63, %v3950_v18  ;;  %v11069_v48 = vpack.c.bf16 %v3961_v58, %v3957_v20  ;;  %v3963_v18 = vld [vmem:[%s11503_s4 + $0x378] sm:$0xff]  ;;  %v3956_v63 = vld [vmem:[%s11503_s4 + $0x340] sm:$0xff]  ;;  %v3958_v20 = vld [vmem:[%s11503_s4 + $0x350] sm:$0xff] }
 0x752   :  { %11962 = vst [vmem:[#allocation28_spill] sm:$0xff] %v11046_v15  ;;  %6349 = vmatprep.subr.bf16.mxu1 %v11044_v3  ;;  %v11080_v3 = vpack.c.bf16 %v3963_v18, %v3959_v12  ;;  %v3962_v58 = vld [vmem:[%s11503_s4 + $0x370] sm:$0xff]  ;;  %v3967_v12 = vld [vmem:[%s11503_s4 + $0x398] sm:$0xff] }
 0x753   :  { %11963 = vst [vmem:[#allocation29_spill] sm:$0xff] %v11055_v60  ;;  %6287 = vmatpush1.bf16.msra.mxu0 %v11046_v15  ;;  %11964 = vst [vmem:[#allocation30_spill] sm:$0xff] %v11069_v48  ;;  %v3960_v15 = vld [vmem:[%s11503_s4 + $0x360] sm:$0xff]  ;;  %v11094_v49 = vpack.c.bf16 %v3962_v58, %v3958_v20  ;;  %v3971_v18 = vld [vmem:[%s11503_s4 + $0x3b8] sm:$0xff] }
 0x754   :  { %11965 = vst [vmem:[#allocation31_spill] sm:$0xff] %v11080_v3  ;;  %v11082_v33 = vpack.c.bf16 %v3960_v15, %v3956_v63  ;;  %6289 = vmatprep.subr.bf16.mxu0 %v11069_v48  ;;  %v3969_v15 = vld [vmem:[%s11503_s4 + $0x3a8] sm:$0xff]  ;;  %v11109_v20 = vpack.c.bf16 %v3971_v18, %v3967_v12  ;;  %v3964_v58 = vld [vmem:[%s11503_s4 + $0x380] sm:$0xff] }
 0x755   :  { %6351 = vmatpush1.bf16.msra.mxu1 %v11055_v60  ;;  %v3965_v60 = vld [vmem:[%s11503_s4 + $0x388] sm:$0xff]  ;;  %11967 = vst [vmem:[#allocation33_spill] sm:$0xff] %v11094_v49  ;;  %v3968_v48 = vld [vmem:[%s11503_s4 + $0x3a0] sm:$0xff] }
 0x756   :  { %11966 = vst [vmem:[#allocation32_spill] sm:$0xff] %v11082_v33  ;;  %6353 = vmatprep.subr.bf16.mxu1 %v11080_v3  ;;  %v11107_v63 = vpack.c.bf16 %v3969_v15, %v3965_v60  ;;  %11969 = vst [vmem:[#allocation35_spill] sm:$0xff] %v11109_v20  ;;  %v11121_v3 = vpack.c.bf16 %v3968_v48, %v3964_v58  ;;  %v3970_v60 = vld [vmem:[%s11503_s4 + $0x3b0] sm:$0xff]  ;;  %v3973_v15 = vld [vmem:[%s11503_s4 + $0x3c8] sm:$0xff] }
 0x757   :  { %6291 = vmatpush1.bf16.msra.mxu0 %v11082_v33  ;;  %v3977_v12 = vld [vmem:[%s11503_s4 + $0x3e8] sm:$0xff]  ;;  %v11134_v18 = vpack.c.bf16 %v3970_v60, %v3966_v31  ;;  %v3975_v58 = vld [vmem:[%s11503_s4 + $0x3d8] sm:$0xff]  ;;  %v3972_v33 = vld [vmem:[%s11503_s4 + $0x3c0] sm:$0xff] }
 0x758   :  { %11968 = vst [vmem:[#allocation34_spill] sm:$0xff] %v11107_v63  ;;  %11970 = vst [vmem:[#allocation36_spill] sm:$0xff] %v11121_v3  ;;  %6293 = vmatprep.subr.bf16.mxu0 %v11107_v63  ;;  %v11136_v48 = vpack.c.bf16 %v3977_v12, %v3973_v15  ;;  %v3976_v31 = vld [vmem:[%s11503_s4 + $0x3e0] sm:$0xff]  ;;  %v3974_v60 = vld [vmem:[%s11503_s4 + $0x3d0] sm:$0xff] }
 0x759   :  { %6355 = vmatpush1.bf16.msra.mxu1 %v11094_v49  ;;  %11971 = vst [vmem:[#allocation37_spill] sm:$0xff] %v11134_v18  ;;  %v3979_v49 = vld [vmem:[%s11503_s4 + $0x3f8] sm:$0xff]  ;;  %v3978_v15 = vld [vmem:[%s11503_s4 + $0x3f0] sm:$0xff]  ;;  %v11159_v12 = vpack.c.bf16 %v3976_v31, %v3972_v33 }
 0x75a   :  { %6357 = vmatprep.subr.bf16.mxu1 %v11109_v20  ;;  %11972 = vst [vmem:[#allocation38_spill] sm:$0xff] %v11136_v48  ;;  %v11147_v10 = vpack.c.bf16 %v3979_v49, %v3975_v58  ;;  %v4158_v49 = vld [vmem:[%s11501_s3 + $0x8] sm:$0xff]  ;;  %v11169_v20 = vpack.c.bf16 %v3978_v15, %v3974_v60 }
 0x75b   :  { %6295 = vmatpush1.bf16.msra.mxu0 %v11121_v3  ;;  %11974 = vst [vmem:[#allocation40_spill] sm:$0xff] %v11159_v12  ;;  %v4162_v58 = vld [vmem:[%s11501_s3 + $0x28] sm:$0xff] }
 0x75c   :  { %11973 = vst [vmem:[#allocation39_spill] sm:$0xff] %v11147_v10  ;;  %6297 = vmatprep.subr.bf16.mxu0 %v11136_v48  ;;  %11975 = vst [vmem:[#allocation41_spill] sm:$0xff] %v11169_v20  ;;  %v6364_v63 = vpack.c.bf16 %v4162_v58, %v4158_v49 }
 0x75d   :  { %6359 = vmatpush1.bf16.msra.mxu1 %v11134_v18 }
 0x75e   :  { %6361 = vmatprep.subr.bf16.mxu1 %v11147_v10 }
 0x75f   :  { %6299 = vmatpush1.bf16.msra.mxu0 %v11159_v12 }
 0x760   :  { %6365 = vmatprep.subr.bf16.mxu0 %v6364_v63 }
 0x761   :  { %6363 = vmatpush1.bf16.msra.mxu1 %v11169_v20 }
 0x762   :  { %6397 = vmatprep.subr.bf16.mxu1 %v10391_v1 }
 0x7d5   :  { %v3511_v33 = vpop.f32.mrb[22].mxu0  ;;  %v3582_v31 = vpop.f32.mrb[42].mxu1 }
 0x7d6   :  { %v3512_v3 = vadd.f32 %v3511_v33, %v10397_v16  ;;  %v3513_v42 = vpop.f32.mrb[23].mxu0  ;;  %v3584_v18 = vpop.f32.mrb[43].mxu1  ;;  %v3583_v20 = vadd.f32 %v3582_v31, %v10415_v53  ;;  %v11976_v53 = vld [vmem:[#allocation51_spill] sm:$0xff] }
 0x7d7   :  { %v3514_v48 = vadd.f32 %v3513_v42, %v10402_v62  ;;  %v3585_v49 = vadd.f32 %v3584_v18, %v10409_v23 }
 0x7d8   :  { %v4872_v60 = vmul.f32 -1.442695, %v3512_v3 }
 0x7d9   :  { %v4873_v15 = vmul.f32 -1.442695, %v3514_v48  ;;  %v4874_v58 = vmul.f32 -1.442695, %v3585_v49 }
 0x7da   :  { %6829 = vpow2.f32 %v4872_v60 }
 0x7db   :  { %6831 = vpow2.f32 %v4873_v15 }
 0x7dc   :  { %6833 = vpow2.f32 %v4874_v58 }
 0x7dd   :  { %6835 = vtanh.f32 %v3583_v20 }
 0x7e4   :  { %v6830_v63 = vpop.eup %6829 }
 0x7e5   :  { %v6832_v12 = vpop.eup %6831  ;;  %v3590_v1 = vadd.f32 1.0, %v6830_v63 }
 0x7e6   :  { %v3596_v10 = vadd.f32 1.0, %v6832_v12  ;;  %v6834_v16 = vpop.eup %6833  ;;  %v11977_v12 = vld [vmem:[#allocation52_spill] sm:$0xff] }
 0x7e7   :  { %6837 = vrcp.f32 %v3590_v1  ;;  %v6836_v33 = vpop.eup %6835  ;;  %v3603_v48 = vadd.f32 1.0, %v6834_v16 }
 0x7e8   :  { %6839 = vrcp.f32 %v3596_v10 }
 0x7e9   :  { %6841 = vrcp.f32 %v3603_v48 }
 0x7f1   :  { %v6838_v62 = vpop.eup %6837 }
 0x7f2   :  { %v6840_v42 = vpop.eup %6839  ;;  %v3607_v3 = vmul.f32 %v6838_v62, %v6836_v33 }
 0x7f3   :  { %v3606_v60 = vmul.f32 %v6840_v42, %v10419_v13  ;;  %v6842_v13 = vpop.eup %6841 }
 0x7f5   :  { %v3748_v23 = vpop.f32.mrb[24].mxu0  ;;  %v3819_v18 = vpop.f32.mrb[28].mxu1  ;;  %v11180_v15 = vadd.f32 %v3607_v3, %v3606_v60 }
 0x7f6   :  { %v3824_v31 = vadd.f32 %v3748_v23, %v11976_v53  ;;  %v3750_v49 = vpop.f32.mrb[25].mxu0  ;;  %v3821_v20 = vpop.f32.mrb[29].mxu1  ;;  %v6632_v62 = vadd.f32 %v3819_v18, %v8082_v30 }
 0x7f7   :  { %v3825_v58 = vadd.f32 %v3750_v49, %v11977_v12  ;;  %6843 = vtanh.f32 %v11180_v15  ;;  %v6633_v1 = vadd.f32 %v3821_v20, %v8084_v50 }
 0x7f8   :  { %v4875_v10 = vmul.f32 -1.442695, %v3824_v31 }
 0x7f9   :  { %v4876_v63 = vmul.f32 -1.442695, %v3825_v58  ;;  %v4877_v33 = vmul.f32 -1.442695, %v6633_v1  ;;  %v4161_v1 = vld [vmem:[%s11501_s3 + $0x20] sm:$0xff] }
 0x7fa   :  { %6845 = vpow2.f32 %v4875_v10 }
 0x7fb   :  { %6847 = vpow2.f32 %v4876_v63  ;;  %v4157_v63 = vld [vmem:[%s11501_s3] sm:$0xff] }
 0x7fc   :  { %6849 = vpow2.f32 %v4877_v33 }
 0x7fd   :  { %6851 = vtanh.f32 %v6632_v62  ;;  %v6366_v62 = vpack.c.bf16 %v4161_v1, %v4157_v63  ;;  %v4181_v1 = vld [vmem:[%s11501_s3 + $0xc0] sm:$0xff] }
 0x801   :  { %v6844_v16 = vpop.eup %6843 }
 0x802   :  { %v11187_v42 = vmul.f32 %v6844_v16, %v6842_v13  ;;  %v4166_v13 = vld [vmem:[%s11501_s3 + $0x48] sm:$0xff] }
 0x804   :  { %v6846_v3 = vpop.eup %6845  ;;  %4048 = vmatprep.mubr.f32.mxu0 %v11187_v42  ;;  %4119 = vmatprep.mubr.f32.mxu1 %v11187_v42 }
 0x805   :  { %v6848_v48 = vpop.eup %6847  ;;  %v3831_v60 = vadd.f32 1.0, %v6846_v3 }
 0x806   :  { %v3837_v23 = vadd.f32 1.0, %v6848_v48  ;;  %v6850_v53 = vpop.eup %6849 }
 0x807   :  { %6853 = vrcp.f32 %v3831_v60  ;;  %v6852_v31 = vpop.eup %6851  ;;  %v3844_v18 = vadd.f32 1.0, %v6850_v53  ;;  %v4165_v60 = vld [vmem:[%s11501_s3 + $0x40] sm:$0xff]  ;;  %v4174_v53 = vld [vmem:[%s11501_s3 + $0x88] sm:$0xff] }
 0x808   :  { %6855 = vrcp.f32 %v3837_v23  ;;  %v4169_v23 = vld [vmem:[%s11501_s3 + $0x60] sm:$0xff] }
 0x809   :  { %6857 = vrcp.f32 %v3844_v18  ;;  %v4177_v18 = vld [vmem:[%s11501_s3 + $0xa0] sm:$0xff] }
 0x811   :  { %v6854_v49 = vpop.eup %6853 }
 0x812   :  { %v6856_v20 = vpop.eup %6855  ;;  %v3848_v12 = vmul.f32 %v6854_v49, %v6852_v31  ;;  %v4178_v31 = vld [vmem:[%s11501_s3 + $0xa8] sm:$0xff]  ;;  %v6370_v49 = vpack.c.bf16 %v4169_v23, %v4165_v60  ;;  %v4197_v60 = vld [vmem:[%s11501_s3 + $0x140] sm:$0xff] }
 0x813   :  { %v3847_v58 = vmul.f32 %v6856_v20, %v10431_v27  ;;  %v4170_v27 = vld [vmem:[%s11501_s3 + $0x68] sm:$0xff]  ;;  %v6858_v16 = vpop.eup %6857  ;;  %v6372_v20 = vpack.c.bf16 %v4178_v31, %v4174_v53  ;;  %v4201_v23 = vld [vmem:[%s11501_s3 + $0x160] sm:$0xff] }
 0x814   :  { %v6368_v48 = vpack.c.bf16 %v4170_v27, %v4166_v13  ;;  %v4185_v13 = vld [vmem:[%s11501_s3 + $0xe0] sm:$0xff]  ;;  %v4206_v53 = vld [vmem:[%s11501_s3 + $0x188] sm:$0xff] }
 0x815   :  { %v11192_v10 = vadd.f32 %v3848_v12, %v3847_v58  ;;  %v4173_v12 = vld [vmem:[%s11501_s3 + $0x80] sm:$0xff]  ;;  %v4182_v58 = vld [vmem:[%s11501_s3 + $0xc8] sm:$0xff] }
 0x817   :  { %6859 = vtanh.f32 %v11192_v10 }
 0x821   :  { %v6860_v33 = vpop.eup %6859 }
 0x822   :  { %v11207_v3 = vmul.f32 %v6860_v33, %v6858_v16  ;;  %v4189_v16 = vld [vmem:[%s11501_s3 + $0x100] sm:$0xff] }
 0x823   :  { %v4193_v33 = vld [vmem:[%s11501_s3 + $0x120] sm:$0xff] }
 0x824   :  { %4049 = vmatmul.mubr.f32.vlgmr.msra.gmra.mrb[26].mxu0 %v11207_v3  ;;  %4120 = vmatmul.mubr.f32.vlgmr.msra.gmra.mrb[44].mxu1 %v11207_v3 }
 0x825   :  { %6367 = vmatpush1.bf16.msra.mxu0 %v6366_v62  ;;  %6399 = vmatpush1.bf16.msra.mxu1 %v10446_v52  ;;  %v4186_v52 = vld [vmem:[%s11501_s3 + $0xe8] sm:$0xff] }
 0x826   :  { %6369 = vmatprep.subr.bf16.mxu0 %v6368_v48  ;;  %6401 = vmatprep.subr.bf16.mxu1 %v10450_v57  ;;  %v6374_v57 = vpack.c.bf16 %v4177_v18, %v4173_v12  ;;  %v6376_v63 = vpack.c.bf16 %v4186_v52, %v4182_v58  ;;  %v4198_v62 = vld [vmem:[%s11501_s3 + $0x148] sm:$0xff]  ;;  %v4213_v58 = vld [vmem:[%s11501_s3 + $0x1c0] sm:$0xff] }
 0x827   :  { %4285 = vmatprep.mubr.f32.mxu0 %v11724_v44  ;;  %4356 = vmatprep.mubr.f32.mxu1 %v11724_v44  ;;  %v4190_v44 = vld [vmem:[%s11501_s3 + $0x108] sm:$0xff]  ;;  %v4217_v52 = vld [vmem:[%s11501_s3 + $0x1e0] sm:$0xff] }
 0x828   :  { %v4214_v12 = vld [vmem:[%s11501_s3 + $0x1c8] sm:$0xff] }
 0x829   :  { %6371 = vmatpush1.bf16.msra.mxu0 %v6370_v49  ;;  %6403 = vmatpush1.bf16.msra.mxu1 %v10468_v59  ;;  %v4194_v59 = vld [vmem:[%s11501_s3 + $0x128] sm:$0xff]  ;;  %v4205_v49 = vld [vmem:[%s11501_s3 + $0x180] sm:$0xff] }
 0x82a   :  { %6373 = vmatprep.subr.bf16.mxu0 %v6372_v20  ;;  %6405 = vmatprep.subr.bf16.mxu1 %v10472_v39  ;;  %v6378_v39 = vpack.c.bf16 %v4185_v13, %v4181_v1  ;;  %v6380_v27 = vpack.c.bf16 %v4194_v59, %v4190_v44  ;;  %v4209_v20 = vld [vmem:[%s11501_s3 + $0x1a0] sm:$0xff]  ;;  %v12010_v1 = vld [vmem:[#allocation35_spill] sm:$0xff]  ;;  %v12012_v44 = vld [vmem:[#allocation37_spill] sm:$0xff] }
 0x82b   :  { %v12011_v13 = vld [vmem:[#allocation36_spill] sm:$0xff]  ;;  %v12013_v59 = vld [vmem:[#allocation38_spill] sm:$0xff] }
 0x82d   :  { %6375 = vmatpush1.bf16.msra.mxu0 %v6374_v57  ;;  %6407 = vmatpush1.bf16.msra.mxu1 %v10490_v7  ;;  %v4202_v7 = vld [vmem:[%s11501_s3 + $0x168] sm:$0xff]  ;;  %v6394_v57 = vpack.c.bf16 %v4217_v52, %v4213_v58 }
 0x82e   :  { %6377 = vmatprep.subr.bf16.mxu0 %v6376_v63  ;;  %6409 = vmatprep.subr.bf16.mxu1 %v10494_v19  ;;  %v6382_v19 = vpack.c.bf16 %v4193_v33, %v4189_v16  ;;  %v6384_v48 = vpack.c.bf16 %v4202_v7, %v4198_v62  ;;  %v12009_v63 = vld [vmem:[#allocation34_spill] sm:$0xff]  ;;  %v12016_v16 = vld [vmem:[#allocation41_spill] sm:$0xff]  ;;  %v4699_v33 = vld [vmem:[%s11506_s6] sm:$0xff] }
 0x82f   :  { %v4700_v62 = vld [vmem:[%s11506_s6 + $0x8] sm:$0xff] }
 0x830   :  { %v11378_v7 = vpack.c.bf16 %v4700_v62, %v4699_v33 }
 0x831   :  { %6379 = vmatpush1.bf16.msra.mxu0 %v6378_v39  ;;  %6411 = vmatpush1.bf16.msra.mxu1 %v10510_v32  ;;  %v4210_v32 = vld [vmem:[%s11501_s3 + $0x1a8] sm:$0xff]  ;;  %v12014_v39 = vld [vmem:[#allocation39_spill] sm:$0xff] }
 0x832   :  { %6381 = vmatprep.subr.bf16.mxu0 %v6380_v27  ;;  %6413 = vmatprep.subr.bf16.mxu1 %v10514_v37  ;;  %v6386_v37 = vpack.c.bf16 %v4201_v23, %v4197_v60  ;;  %v6388_v31 = vpack.c.bf16 %v4210_v32, %v4206_v53  ;;  %v12015_v27 = vld [vmem:[#allocation40_spill] sm:$0xff] }
 0x835   :  { %6383 = vmatpush1.bf16.msra.mxu0 %v6382_v19  ;;  %6415 = vmatpush1.bf16.msra.mxu1 %v10530_v6  ;;  %v4218_v6 = vld [vmem:[%s11501_s3 + $0x1e8] sm:$0xff]  ;;  %v11384_v19 = vld [vmem:[%s11505_s5] sm:$0xff] }
 0x836   :  { %6385 = vmatprep.subr.bf16.mxu0 %v6384_v48  ;;  %6417 = vmatprep.subr.bf16.mxu1 %v10534_v28  ;;  %v6390_v28 = vpack.c.bf16 %v4209_v20, %v4205_v49  ;;  %v6392_v18 = vpack.c.bf16 %v4218_v6, %v4214_v12  ;;  %v11389_v48 = vld [vmem:[%s11505_s5 + $0x8] sm:$0xff]  ;;  %v11396_v12 = vld [vmem:[%s11505_s5 + $0x18] sm:$0xff] }
 0x839   :  { %6387 = vmatpush1.bf16.msra.mxu0 %v6386_v37  ;;  %6419 = vmatpush1.bf16.msra.mxu1 %v10550_v41  ;;  %v11978_v41 = vld [vmem:[#allocation47_spill] sm:$0xff] }
 0x83a   :  { %6389 = vmatprep.subr.bf16.mxu0 %v6388_v31  ;;  %6421 = vmatprep.subr.bf16.mxu1 %v10554_v21  ;;  %v11979_v21 = vld [vmem:[#allocation48_spill] sm:$0xff] }
 0x83d   :  { %6391 = vmatpush1.bf16.msra.mxu0 %v6390_v28  ;;  %6423 = vmatpush1.bf16.msra.mxu1 %v10570_v40  ;;  %v11980_v40 = vld [vmem:[#allocation5_spill] sm:$0xff]  ;;  %v11402_v28 = vld [vmem:[%s11505_s5 + $0x10] sm:$0xff] }
 0x83e   :  { %6393 = vmatprep.subr.bf16.mxu0 %v6392_v18  ;;  %6425 = vmatprep.subr.bf16.mxu1 %v10574_v46  ;;  %v11981_v46 = vld [vmem:[#allocation6_spill] sm:$0xff] }
 0x841   :  { %6395 = vmatpush1.bf16.msra.mxu0 %v6394_v57  ;;  %6427 = vmatpush1.bf16.msra.mxu1 %v10584_v56  ;;  %v11982_v56 = vld [vmem:[#allocation7_spill] sm:$0xff] }
 0x842   :  { %6429 = vmatprep.subr.bf16.mxu0 %v10601_v5  ;;  %6493 = vmatprep.subr.bf16.mxu1 %v10612_v17  ;;  %v11983_v5 = vld [vmem:[#allocation8_spill] sm:$0xff]  ;;  %v11984_v17 = vld [vmem:[#allocation9_spill] sm:$0xff] }
 0x844   :  { %4286 = vmatmul.mubr.f32.vlgmr.msra.gmra.mrb[28].mxu0 %v11207_v3  ;;  %4357 = vmatmul.mubr.f32.vlgmr.msra.gmra.mrb[30].mxu1 %v11207_v3  ;;  %v12008_v3 = vld [vmem:[#allocation33_spill] sm:$0xff] }
 0x845   :  { %6431 = vmatpush1.bf16.msra.mxu0 %v10614_v35  ;;  %6495 = vmatpush1.bf16.msra.mxu1 %v10623_v8  ;;  %v11985_v35 = vld [vmem:[#allocation10_spill] sm:$0xff]  ;;  %v11986_v8 = vld [vmem:[#allocation11_spill] sm:$0xff] }
 0x846   :  { %6433 = vmatprep.subr.bf16.mxu0 %v10637_v51  ;;  %6497 = vmatprep.subr.bf16.mxu1 %v10648_v9  ;;  %v11987_v51 = vld [vmem:[#allocation12_spill] sm:$0xff]  ;;  %v11988_v9 = vld [vmem:[#allocation13_spill] sm:$0xff] }
 0x849   :  { %6435 = vmatpush1.bf16.msra.mxu0 %v10650_v29  ;;  %6499 = vmatpush1.bf16.msra.mxu1 %v10659_v55  ;;  %v11989_v29 = vld [vmem:[#allocation14_spill] sm:$0xff]  ;;  %v11990_v55 = vld [vmem:[#allocation15_spill] sm:$0xff] }
 0x84a   :  { %6437 = vmatprep.subr.bf16.mxu0 %v10673_v36  ;;  %6501 = vmatprep.subr.bf16.mxu1 %v10684_v4  ;;  %v11991_v36 = vld [vmem:[#allocation16_spill] sm:$0xff]  ;;  %v11992_v4 = vld [vmem:[#allocation17_spill] sm:$0xff] }
 0x84d   :  { %6439 = vmatpush1.bf16.msra.mxu0 %v10686_v34  ;;  %6503 = vmatpush1.bf16.msra.mxu1 %v10695_v43  ;;  %v11993_v34 = vld [vmem:[#allocation18_spill] sm:$0xff]  ;;  %v11994_v43 = vld [vmem:[#allocation19_spill] sm:$0xff] }
 0x84e   :  { %6441 = vmatprep.subr.bf16.mxu0 %v10709_v11  ;;  %6505 = vmatprep.subr.bf16.mxu1 %v10720_v2  ;;  %v11995_v11 = vld [vmem:[#allocation20_spill] sm:$0xff]  ;;  %v11996_v2 = vld [vmem:[#allocation21_spill] sm:$0xff] }
 0x851   :  { %6443 = vmatpush1.bf16.msra.mxu0 %v10722_v61  ;;  %6507 = vmatpush1.bf16.msra.mxu1 %v10731_v22  ;;  %v11997_v61 = vld [vmem:[#allocation22_spill] sm:$0xff]  ;;  %v11998_v22 = vld [vmem:[#allocation23_spill] sm:$0xff] }
 0x852   :  { %6445 = vmatprep.subr.bf16.mxu0 %v10745_v47  ;;  %6509 = vmatprep.subr.bf16.mxu1 %v10756_v38  ;;  %v11999_v47 = vld [vmem:[#allocation24_spill] sm:$0xff]  ;;  %v12000_v38 = vld [vmem:[#allocation25_spill] sm:$0xff] }
 0x855   :  { %6447 = vmatpush1.bf16.msra.mxu0 %v10758_v0  ;;  %6511 = vmatpush1.bf16.msra.mxu1 %v10767_v24  ;;  %v12001_v0 = vld [vmem:[#allocation26_spill] sm:$0xff]  ;;  %v12002_v24 = vld [vmem:[#allocation27_spill] sm:$0xff] }
 0x856   :  { %6449 = vmatprep.subr.bf16.mxu0 %v10781_v45  ;;  %6513 = vmatprep.subr.bf16.mxu1 %v10792_v26  ;;  %v12003_v45 = vld [vmem:[#allocation28_spill] sm:$0xff]  ;;  %v12004_v26 = vld [vmem:[#allocation29_spill] sm:$0xff] }
 0x859   :  { %6451 = vmatpush1.bf16.msra.mxu0 %v10794_v14  ;;  %6515 = vmatpush1.bf16.msra.mxu1 %v10803_v54  ;;  %v12005_v14 = vld [vmem:[#allocation30_spill] sm:$0xff]  ;;  %v12006_v54 = vld [vmem:[#allocation31_spill] sm:$0xff] }
 0x85a   :  { %6453 = vmatprep.subr.bf16.mxu0 %v10817_v25  ;;  %6517 = vmatprep.subr.bf16.mxu1 %v11978_v41  ;;  %v12007_v25 = vld [vmem:[#allocation32_spill] sm:$0xff] }
 0x85d   :  { %6455 = vmatpush1.bf16.msra.mxu0 %v11979_v21  ;;  %6519 = vmatpush1.bf16.msra.mxu1 %v11980_v40 }
 0x85e   :  { %6457 = vmatprep.subr.bf16.mxu0 %v11981_v46  ;;  %6521 = vmatprep.subr.bf16.mxu1 %v11982_v56 }
 0x861   :  { %6459 = vmatpush1.bf16.msra.mxu0 %v11983_v5  ;;  %6523 = vmatpush1.bf16.msra.mxu1 %v11984_v17 }
 0x862   :  { %6461 = vmatprep.subr.bf16.mxu0 %v11985_v35  ;;  %6525 = vmatprep.subr.bf16.mxu1 %v11986_v8 }
 0x865   :  { %6463 = vmatpush1.bf16.msra.mxu0 %v11987_v51  ;;  %6527 = vmatpush1.bf16.msra.mxu1 %v11988_v9 }
 0x866   :  { %6465 = vmatprep.subr.bf16.mxu0 %v11989_v29  ;;  %6529 = vmatprep.subr.bf16.mxu1 %v11990_v55  ;;  %v12017_v55 = vld [vmem:[#allocation53_spill] sm:$0xff] }
 0x869   :  { %6467 = vmatpush1.bf16.msra.mxu0 %v11991_v36  ;;  %6531 = vmatpush1.bf16.msra.mxu1 %v11992_v4 }
 0x86a   :  { %6469 = vmatprep.subr.bf16.mxu0 %v11993_v34  ;;  %6533 = vmatprep.subr.bf16.mxu1 %v11994_v43  ;;  %v12018_v43 = vld [vmem:[#allocation54_spill] sm:$0xff] }
 0x86d   :  { %6471 = vmatpush1.bf16.msra.mxu0 %v11995_v11  ;;  %6535 = vmatpush1.bf16.msra.mxu1 %v11996_v2 }
 0x86e   :  { %6473 = vmatprep.subr.bf16.mxu0 %v11997_v61  ;;  %6537 = vmatprep.subr.bf16.mxu1 %v11998_v22 }
 0x871   :  { %6475 = vmatpush1.bf16.msra.mxu0 %v11999_v47  ;;  %6539 = vmatpush1.bf16.msra.mxu1 %v12000_v38 }
 0x872   :  { %6477 = vmatprep.subr.bf16.mxu0 %v12001_v0  ;;  %6541 = vmatprep.subr.bf16.mxu1 %v12002_v24 }
 0x875   :  { %6479 = vmatpush1.bf16.msra.mxu0 %v12003_v45  ;;  %6543 = vmatpush1.bf16.msra.mxu1 %v12004_v26 }
 0x876   :  { %6481 = vmatprep.subr.bf16.mxu0 %v12005_v14  ;;  %6545 = vmatprep.subr.bf16.mxu1 %v12006_v54 }
 0x879   :  { %6483 = vmatpush1.bf16.msra.mxu0 %v12007_v25  ;;  %6547 = vmatpush1.bf16.msra.mxu1 %v12008_v3 }
 0x87a   :  { %6485 = vmatprep.subr.bf16.mxu0 %v12009_v63  ;;  %6549 = vmatprep.subr.bf16.mxu1 %v12010_v1 }
 0x87d   :  { %6487 = vmatpush1.bf16.msra.mxu0 %v12011_v13  ;;  %6551 = vmatpush1.bf16.msra.mxu1 %v12012_v44 }
 0x87e   :  { %6489 = vmatprep.subr.bf16.mxu0 %v12013_v59  ;;  %6553 = vmatprep.subr.bf16.mxu1 %v12014_v39  ;;  %v4701_v59 = vld [vmem:[%s11506_s6 + $0x10] sm:$0xff]  ;;  %v4702_v39 = vld [vmem:[%s11506_s6 + $0x18] sm:$0xff] }
 0x87f   :  { %v6560_v62 = vpack.c.bf16 %v4702_v39, %v4701_v59 }
 0x881   :  { %6491 = vmatpush1.bf16.msra.mxu0 %v12015_v27  ;;  %6555 = vmatpush1.bf16.msra.mxu1 %v12016_v16 }
 0x882   :  { %6557 = vmatprep.subr.bf16.mxu0 %v11378_v7 }
 0x8f7   :  { %v4050_v60 = vpop.f32.mrb[26].mxu0  ;;  %v4121_v23 = vpop.f32.mrb[44].mxu1 }
 0x8f8   :  { %v4051_v53 = vadd.f32 %v4050_v60, %v11384_v19  ;;  %v4052_v32 = vpop.f32.mrb[27].mxu0  ;;  %v4123_v37 = vpop.f32.mrb[45].mxu1  ;;  %v4122_v58 = vadd.f32 %v4121_v23, %v11402_v28  ;;  %v4703_v60 = vld [vmem:[%s11506_s6 + $0x20] sm:$0xff] }
 0x8f9   :  { %v4053_v31 = vadd.f32 %v4052_v32, %v11389_v48  ;;  %v4124_v6 = vadd.f32 %v4123_v37, %v11396_v12  ;;  %v12019_v23 = vld [vmem:[#allocation4_spill] sm:$0xff]  ;;  %v4705_v32 = vld [vmem:[%s11506_s6 + $0x30] sm:$0xff]  ;;  %v4706_v37 = vld [vmem:[%s11506_s6 + $0x38] sm:$0xff] }
 0x8fa   :  { %v4878_v49 = vmul.f32 -1.442695, %v4051_v53 }
 0x8fb   :  { %v4879_v20 = vmul.f32 -1.442695, %v4053_v31  ;;  %v4880_v18 = vmul.f32 -1.442695, %v4124_v6  ;;  %v6568_v31 = vpack.c.bf16 %v4706_v37, %v4705_v32  ;;  %v4709_v6 = vld [vmem:[%s11506_s6 + $0x50] sm:$0xff] }
 0x8fc   :  { %6861 = vpow2.f32 %v4878_v49  ;;  %v4707_v49 = vld [vmem:[%s11506_s6 + $0x40] sm:$0xff] }
 0x8fd   :  { %6863 = vpow2.f32 %v4879_v20 }
 0x8fe   :  { %6865 = vpow2.f32 %v4880_v18  ;;  %v4710_v18 = vld [vmem:[%s11506_s6 + $0x58] sm:$0xff] }
 0x8ff   :  { %6867 = vtanh.f32 %v4122_v58  ;;  %v6576_v58 = vpack.c.bf16 %v4710_v18, %v4709_v6 }
 0x906   :  { %v6862_v52 = vpop.eup %6861 }
 0x907   :  { %v6864_v57 = vpop.eup %6863  ;;  %v4129_v41 = vadd.f32 1.0, %v6862_v52  ;;  %v4711_v52 = vld [vmem:[%s11506_s6 + $0x60] sm:$0xff] }
 0x908   :  { %v4135_v21 = vadd.f32 1.0, %v6864_v57  ;;  %v6866_v40 = vpop.eup %6865  ;;  %v4712_v57 = vld [vmem:[%s11506_s6 + $0x68] sm:$0xff] }
 0x909   :  { %6869 = vrcp.f32 %v4129_v41  ;;  %v6868_v46 = vpop.eup %6867  ;;  %v4142_v35 = vadd.f32 1.0, %v6866_v40  ;;  %v6580_v41 = vpack.c.bf16 %v4712_v57, %v4711_v52  ;;  %v4714_v40 = vld [vmem:[%s11506_s6 + $0x78] sm:$0xff] }
 0x90a   :  { %6871 = vrcp.f32 %v4135_v21  ;;  %v4713_v21 = vld [vmem:[%s11506_s6 + $0x70] sm:$0xff] }
 0x90b   :  { %6873 = vrcp.f32 %v4142_v35  ;;  %v12023_v35 = vld [vmem:[#allocation46_spill] sm:$0xff] }
 0x913   :  { %v6870_v56 = vpop.eup %6869 }
 0x914   :  { %v6872_v5 = vpop.eup %6871  ;;  %v4146_v17 = vmul.f32 %v6870_v56, %v6868_v46  ;;  %v6584_v46 = vpack.c.bf16 %v4714_v40, %v4713_v21  ;;  %v12020_v56 = vld [vmem:[#allocation43_spill] sm:$0xff] }
 0x915   :  { %v4145_v8 = vmul.f32 %v6872_v5, %v11180_v15  ;;  %v6874_v15 = vpop.eup %6873  ;;  %v12021_v5 = vld [vmem:[#allocation44_spill] sm:$0xff] }
 0x917   :  { %v4287_v51 = vpop.f32.mrb[28].mxu0  ;;  %v4358_v9 = vpop.f32.mrb[30].mxu1  ;;  %v11406_v29 = vadd.f32 %v4146_v17, %v4145_v8  ;;  %v12022_v17 = vld [vmem:[#allocation45_spill] sm:$0xff] }
 0x918   :  { %v4363_v36 = vadd.f32 %v4287_v51, %v12017_v55  ;;  %v4289_v4 = vpop.f32.mrb[29].mxu0  ;;  %v4360_v34 = vpop.f32.mrb[31].mxu1  ;;  %v6634_v0 = vadd.f32 %v4358_v9, %v8082_v30 }
 0x919   :  { %v4364_v11 = vadd.f32 %v4289_v4, %v12018_v43  ;;  %6875 = vtanh.f32 %v11406_v29  ;;  %v6635_v22 = vadd.f32 %v4360_v34, %v8084_v50 }
 0x91a   :  { %v4881_v2 = vmul.f32 -1.442695, %v4363_v36 }
 0x91b   :  { %v4882_v61 = vmul.f32 -1.442695, %v4364_v11  ;;  %v4883_v38 = vmul.f32 -1.442695, %v6635_v22 }
 0x91c   :  { %6877 = vpow2.f32 %v4881_v2 }
 0x91d   :  { %6879 = vpow2.f32 %v4882_v61 }
 0x91e   :  { %6881 = vpow2.f32 %v4883_v38 }
 0x91f   :  { %6883 = vtanh.f32 %v6634_v0 }
 0x923   :  { %v6876_v47 = vpop.eup %6875 }
 0x924   :  { %v11413_v24 = vmul.f32 %v6876_v47, %v6874_v15 }
 0x926   :  { %v6878_v45 = vpop.eup %6877  ;;  %4587 = vmatprep.mubr.f32.mxu0 %v11413_v24  ;;  %4658 = vmatprep.mubr.f32.mxu1 %v11413_v24 }
 0x927   :  { %v6880_v26 = vpop.eup %6879  ;;  %v4370_v14 = vadd.f32 1.0, %v6878_v45 }
 0x928   :  { %v4376_v54 = vadd.f32 1.0, %v6880_v26  ;;  %v6882_v50 = vpop.eup %6881 }
 0x929   :  { %6885 = vrcp.f32 %v4370_v14  ;;  %v6884_v25 = vpop.eup %6883  ;;  %v4383_v30 = vadd.f32 1.0, %v6882_v50 }
 0x92a   :  { %6887 = vrcp.f32 %v4376_v54 }
 0x92b   :  { %6889 = vrcp.f32 %v4383_v30 }
 0x933   :  { %v6886_v3 = vpop.eup %6885 }
 0x934   :  { %v6888_v63 = vpop.eup %6887  ;;  %v4387_v1 = vmul.f32 %v6886_v3, %v6884_v25 }
 0x935   :  { %v4386_v13 = vmul.f32 %v6888_v63, %v11192_v10  ;;  %v6890_v27 = vpop.eup %6889  ;;  %v4704_v10 = vld [vmem:[%s11506_s6 + $0x28] sm:$0xff] }
 0x936   :  { %v6564_v53 = vpack.c.bf16 %v4704_v10, %v4703_v60 }
 0x937   :  { %v4388_v44 = vadd.f32 %v4387_v1, %v4386_v13 }
 0x939   :  { %6891 = vtanh.f32 %v4388_v44 }
 0x943   :  { %v6892_v16 = vpop.eup %6891 }
 0x944   :  { %v4390_v33 = vmul.f32 %v6892_v16, %v6890_v27 }
 0x946   :  { %4588 = vmatmul.mubr.f32.vlgmr.msra.gmra.mrb[30].mxu0 %v4390_v33  ;;  %4659 = vmatmul.mubr.f32.vlgmr.msra.gmra.mrb[46].mxu1 %v4390_v33 }
 0x947   :  { %6559 = vmatpush3.bf16.msra.mxu0 %v11378_v7  ;;  %4944 = vmatprep.mubr.f32.mxu0 %v12019_v23  ;;  %v4708_v7 = vld [vmem:[%s11506_s6 + $0x48] sm:$0xff] }
 0x948   :  { %6561 = vmatprep.subr.bf16.mxu0 %v6560_v62  ;;  %v6572_v20 = vpack.c.bf16 %v4708_v7, %v4707_v49 }
 0x94b   :  { %6563 = vmatpush3.bf16.msra.mxu0 %v6560_v62 }
 0x94c   :  { %6565 = vmatprep.subr.bf16.mxu0 %v6564_v53 }
 0x94f   :  { %6567 = vmatpush3.bf16.msra.mxu0 %v6564_v53 }
 0x950   :  { %6569 = vmatprep.subr.bf16.mxu0 %v6568_v31 }
 0x953   :  { %6571 = vmatpush3.bf16.msra.mxu0 %v6568_v31 }
 0x954   :  { %6573 = vmatprep.subr.bf16.mxu0 %v6572_v20 }
 0x957   :  { %6575 = vmatpush3.bf16.msra.mxu0 %v6572_v20 }
 0x958   :  { %6577 = vmatprep.subr.bf16.mxu0 %v6576_v58 }
 0x95b   :  { %6579 = vmatpush3.bf16.msra.mxu0 %v6576_v58 }
 0x95c   :  { %6581 = vmatprep.subr.bf16.mxu0 %v6580_v41 }
 0x95f   :  { %6583 = vmatpush3.bf16.msra.mxu0 %v6580_v41 }
 0x960   :  { %6585 = vmatprep.subr.bf16.mxu0 %v6584_v46 }
 0x963   :  { %6587 = vmatpush3.bf16.msra.mxu0 %v6584_v46 }
 0x966   :  { %4945 = vmatmul.mubr.f32.vlgmr.msra.gmra.mrb[32].mxu0 %v12020_v56 }
 0x967   :  { %4947 = vmatprep.mubr.f32.mxu0 %v12021_v5 }
 0x96a   :  { %4948 = vmatmul.mubr.f32.gmra.mrb[34].mxu0 %v12022_v17 }
 0x96b   :  { %4950 = vmatprep.mubr.f32.mxu0 %v12023_v35 }
 0x96e   :  { %4951 = vmatmul.mubr.f32.gmra.mrb[36].mxu0 %v11187_v42 }
 0x96f   :  { %4953 = vmatprep.mubr.f32.mxu0 %v11413_v24 }
 0xa19   :  { %v4589_v8 = vpop.f32.mrb[30].mxu0  ;;  %v4660_v51 = vpop.f32.mrb[46].mxu1 }
 0xa1a   :  { %v4590_v9 = vadd.f32 %v4589_v8, %v11384_v19  ;;  %v4591_v55 = vpop.f32.mrb[31].mxu0  ;;  %v4662_v36 = vpop.f32.mrb[47].mxu1  ;;  %v4661_v61 = vadd.f32 %v4660_v51, %v11402_v28 }
 0xa1b   :  { %v4592_v4 = vadd.f32 %v4591_v55, %v11389_v48  ;;  %v4663_v11 = vadd.f32 %v4662_v36, %v11396_v12  ;;  %v4887_v12 = vld [vmem:[%s11507_s7] ss:$0 sm:$0xff] }
 0xa1c   :  { %v4884_v34 = vmul.f32 -1.442695, %v4590_v9 }
 0xa1d   :  { %v4885_v43 = vmul.f32 -1.442695, %v4592_v4  ;;  %v4886_v2 = vmul.f32 -1.442695, %v4663_v11 }
 0xa1e   :  { %6893 = vpow2.f32 %v4884_v34 }
 0xa1f   :  { %6895 = vpow2.f32 %v4885_v43 }
 0xa20   :  { %6897 = vpow2.f32 %v4886_v2 }
 0xa21   :  { %6899 = vtanh.f32 %v4661_v61 }
 0xa28   :  { %v6894_v42 = vpop.eup %6893 }
 0xa29   :  { %v6896_v22 = vpop.eup %6895  ;;  %v4668_v15 = vadd.f32 1.0, %v6894_v42 }
 0xa2a   :  { %v4674_v47 = vadd.f32 1.0, %v6896_v22  ;;  %v6898_v19 = vpop.eup %6897 }
 0xa2b   :  { %6901 = vrcp.f32 %v4668_v15  ;;  %v6900_v38 = vpop.eup %6899  ;;  %v4681_v45 = vadd.f32 1.0, %v6898_v19 }
 0xa2c   :  { %6903 = vrcp.f32 %v4674_v47 }
 0xa2d   :  { %6905 = vrcp.f32 %v4681_v45 }
 0xa35   :  { %v6902_v48 = vpop.eup %6901 }
 0xa36   :  { %v6904_v0 = vpop.eup %6903  ;;  %v4685_v24 = vmul.f32 %v6902_v48, %v6900_v38 }
 0xa37   :  { %v4684_v26 = vmul.f32 %v6904_v0, %v11406_v29  ;;  %v6906_v39 = vpop.eup %6905 }
 0xa39   :  { %v4946_v28 = vpop.f32.mrb[32].mxu0  ;;  %v4686_v14 = vadd.f32 %v4685_v24, %v4684_v26 }
 0xa3a   :  { %v4794_v54 = vadd.f32 %v4946_v28, %v4887_v12  ;;  %v4788_v50 = vpop.f32.mrb[33].mxu0 }
 0xa3b   :  { %v4789_v25 = vadd.f32 %v4887_v12, %v4788_v50  ;;  %6907 = vtanh.f32 %v4686_v14 }
 0xa3c   :  { %4828 = vst [vmem:[%s11508_s8 + $0x8] sm:$0xff] %v4794_v54 }
 0xa3d   :  { %4827 = vst [vmem:[%s11508_s8] sm:$0xff] %v4789_v25  ;;  %v4949_v29 = vpop.f32.mrb[34].mxu0 }
 0xa3e   :  { %v4804_v3 = vadd.f32 %v4949_v29, %v4887_v12  ;;  %v4798_v63 = vpop.f32.mrb[35].mxu0 }
 0xa3f   :  { %v4799_v1 = vadd.f32 %v4887_v12, %v4798_v63 }
 0xa40   :  { %4830 = vst [vmem:[%s11508_s8 + $0x18] sm:$0xff] %v4804_v3 }
 0xa41   :  { %4829 = vst [vmem:[%s11508_s8 + $0x10] sm:$0xff] %v4799_v1  ;;  %v4952_v30 = vpop.f32.mrb[36].mxu0 }
 0xa42   :  { %v4814_v13 = vadd.f32 %v4952_v30, %v4887_v12  ;;  %v4808_v44 = vpop.f32.mrb[37].mxu0 }
 0xa43   :  { %v4809_v59 = vadd.f32 %v4887_v12, %v4808_v44 }
 0xa44   :  { %4832 = vst [vmem:[%s11508_s8 + $0x28] sm:$0xff] %v4814_v13 }
 0xa45   :  { %v6908_v27 = vpop.eup %6907  ;;  %4831 = vst [vmem:[%s11508_s8 + $0x20] sm:$0xff] %v4809_v59 }
 0xa46   :  { %v4688_v16 = vmul.f32 %v6908_v27, %v6906_v39 }
 0xa48   :  { %4954 = vmatmul.mubr.f32.gmra.mrb[38].mxu0 %v4688_v16 }
 0xb1b   :  { %v4955_v33 = vpop.f32.mrb[38].mxu0 }
 0xb1c   :  { %v4824_v62 = vadd.f32 %v4955_v33, %v4887_v12  ;;  %v4818_v60 = vpop.f32.mrb[39].mxu0 }
 0xb1d   :  { %v4819_v10 = vadd.f32 %v4887_v12, %v4818_v60 }
 0xb1e   :  { %4834 = vst [vmem:[%s11508_s8 + $0x38] sm:$0xff] %v4824_v62 }
 0xb1f   :  { %4833 = vst [vmem:[%s11508_s8 + $0x30] sm:$0xff] %v4819_v10 }

</bundles_post_ra>
